<compile_context>
chip_gen: v5e
topology: v5e:2x2
jax: 0.10.0
libtpu: 0.0.40
codegen_flags: <defaults>
</compile_context>

<pallas_src>
import functools

import jax
import jax.numpy as jnp
from jax.experimental import pallas as pl
from jax.experimental.pallas import tpu as pltpu


# --------------------------------------------------------------------------
# Kernel 1: fused cls_distribute (conv3x3 -> ReLU -> conv3x3) + pool conv1x1.
# Per grid step: nb images. Halo padding is done in VMEM; each 3x3 tap is one
# (nb*H*W, Cin) x (Cin, Cout) matmul accumulated in f32. The pool conv is
# folded into a widened (512, 256) center-tap weight. Output is one lane-dense
# 128-wide slab: lanes 0:8 = pool, lanes 8:28 = lane_token, rest zero.
# --------------------------------------------------------------------------
def _conv_fused_kernel(x_ref, w8_ref, b1_ref, wc_ref, w2_ref, bslab_ref,
                       o_ref, xpad_ref, ypad_ref, *, nb, H, W):
    Cin = x_ref.shape[-1]
    M = nb * H * W

    # in-kernel halo for conv1: zero the padded scratch, write the interior.
    xpad_ref[...] = jnp.zeros(xpad_ref.shape, xpad_ref.dtype)
    xpad_ref[:, 1:H + 1, 1:W + 1, :] = x_ref[...].astype(xpad_ref.dtype)

    # conv1 (3x3, 512->128) with the 1x1 pool conv fused into the center tap:
    # wc = [w1_center (128) | pool (8) | zeros]  -> one 256-wide matmul.
    acc1 = jnp.zeros((M, 128), jnp.float32)
    pool128 = None
    t = 0
    for dy in range(3):
        for dx in range(3):
            xs = xpad_ref[:, dy:dy + H, dx:dx + W, :].reshape(M, Cin)
            if dy == 1 and dx == 1:
                wide = jnp.dot(xs, wc_ref[...],
                               preferred_element_type=jnp.float32)   # (M, 256)
                acc1 = acc1 + wide[:, :128]
                pool128 = wide[:, 128:]          # pool output sits in lanes 0:8
            else:
                acc1 = acc1 + jnp.dot(xs, w8_ref[t],
                                      preferred_element_type=jnp.float32)
                t += 1

    y1 = jnp.maximum(acc1 + b1_ref[...], 0.0)    # (M, 128), ReLU

    # conv2 (3x3, 128->20) from a halo-padded VMEM copy of y1. Its weights are
    # pre-placed in output lanes 8:28 so the result adds lane-aligned to pool.
    ypad_ref[...] = jnp.zeros(ypad_ref.shape, ypad_ref.dtype)
    ypad_ref[:, 1:H + 1, 1:W + 1, :] = y1.reshape(nb, H, W, 128).astype(ypad_ref.dtype)

    acc2 = jnp.zeros((M, 128), jnp.float32)
    for dy in range(3):
        for dx in range(3):
            ys = ypad_ref[:, dy:dy + H, dx:dx + W, :].reshape(M, 128)
            acc2 = acc2 + jnp.dot(ys, w2_ref[dy * 3 + dx],
                                  preferred_element_type=jnp.float32)

    slab = pool128 + acc2 + bslab_ref[...]       # lanes 0:8 pool, 8:28 lane_token
    o_ref[...] = slab.reshape(nb, H, W, 128).astype(o_ref.dtype)


def conv_distribute_pool(fea, w8, b1, wc, w2taps, bslab, *, nb):
    """fea: (N, H, W, 512) bf16 (unpadded). Returns (N, H, W, 128) f32 slab."""
    N, H, W, Cin = fea.shape
    assert N % nb == 0
    return pl.pallas_call(
        functools.partial(_conv_fused_kernel, nb=nb, H=H, W=W),
        out_shape=jax.ShapeDtypeStruct((N, H, W, 128), jnp.float32),
        grid=(N // nb,),
        in_specs=[
            pl.BlockSpec((nb, H, W, Cin), lambda n: (n, 0, 0, 0)),
            pl.BlockSpec((8, Cin, 128), lambda n: (0, 0, 0)),
            pl.BlockSpec((1, 128), lambda n: (0, 0)),
            pl.BlockSpec((Cin, 256), lambda n: (0, 0)),
            pl.BlockSpec((9, 128, 128), lambda n: (0, 0, 0)),
            pl.BlockSpec((1, 128), lambda n: (0, 0)),
        ],
        out_specs=pl.BlockSpec((nb, H, W, 128), lambda n: (n, 0, 0, 0)),
        scratch_shapes=[
            pltpu.VMEM((nb, H + 2, W + 2, Cin), jnp.bfloat16),   # padded input
            pltpu.VMEM((nb, H + 2, W + 2, 128), jnp.bfloat16),   # padded y1
        ],
        compiler_params=pltpu.CompilerParams(dimension_semantics=("parallel",)),
    )(fea, w8, b1, wc, w2taps, bslab)


# --------------------------------------------------------------------------
# Kernel 2: fused fea5 assembly + LayerNorm + Linear(input_dim, 2048) + ReLU +
# combined cls_row/cls_col heads.
# Grid = (batch "parallel", hidden "arbitrary"). Per batch step the 20-token
# LN input is built in VMEM from pool (broadcast across tokens) + lane_token
# (per token); LN is computed once under pl.when(j == 0) into bf16 scratches,
# the 2048 hidden never leaves VMEM, and the heads accumulate in a lane-dense
# padded f32 scratch written once at the last hidden step.
# --------------------------------------------------------------------------
def _ln_mlp_heads_kernel(pool_ref, lt_ref, gp_ref, bp_ref, gl_ref, bl_ref,
                         w1p_ref, w1l_ref, b1_ref, w2_ref, b2_ref,
                         o_ref, xnp_ref, xnl_ref, acc_ref, *, eps, k_total):
    j = pl.program_id(1)

    @pl.when(j == 0)
    def _():
        p = pool_ref[0].astype(jnp.float32)                 # (1, Kp)  shared
        l = lt_ref[0].astype(jnp.float32)                   # (20, Kl) per token
        mean = (jnp.sum(p, -1, keepdims=True)
                + jnp.sum(l, -1, keepdims=True)) / k_total  # (20, 1)
        pc = p - mean                                       # (20, Kp)
        lc = l - mean                                       # (20, Kl)
        var = (jnp.sum(pc * pc, -1, keepdims=True)
               + jnp.sum(lc * lc, -1, keepdims=True)) / k_total
        rstd = jax.lax.rsqrt(var + eps)
        xnp_ref[...] = (pc * rstd * gp_ref[...] + bp_ref[...]).astype(xnp_ref.dtype)
        xnl_ref[...] = (lc * rstd * gl_ref[...] + bl_ref[...]).astype(xnl_ref.dtype)
        acc_ref[...] = jnp.zeros(acc_ref.shape, acc_ref.dtype)

    h = (jnp.dot(xnp_ref[...], w1p_ref[...], preferred_element_type=jnp.float32)
         + jnp.dot(xnl_ref[...], w1l_ref[...], preferred_element_type=jnp.float32))
    h = jnp.maximum(h + b1_ref[...], 0.0)
    acc_ref[...] += jnp.dot(h.astype(w2_ref.dtype), w2_ref[...],
                            preferred_element_type=jnp.float32)

    @pl.when(j == pl.num_programs(1) - 1)
    def _():
        o_ref[0] = acc_ref[...] + b2_ref[...]


def ln_mlp_heads(pool_flat, lt_flat, gp, bp, gl, bl, w1p, w1l, b1, w2, b2,
                 *, tn=512, eps=1e-5):
    """pool_flat: (N,1,Kp), lt_flat: (N,20,Kl). Returns (N, 20, Dp) f32."""
    N, _, Kp = pool_flat.shape
    Kl = lt_flat.shape[-1]
    Hd = w1p.shape[-1]
    Dp = w2.shape[-1]
    assert Hd % tn == 0
    k_total = float(Kp + Kl)
    return pl.pallas_call(
        functools.partial(_ln_mlp_heads_kernel, eps=eps, k_total=k_total),
        out_shape=jax.ShapeDtypeStruct((N, 20, Dp), jnp.float32),
        grid=(N, Hd // tn),
        in_specs=[
            pl.BlockSpec((1, 1, Kp), lambda i, j: (i, 0, 0)),
            pl.BlockSpec((1, 20, Kl), lambda i, j: (i, 0, 0)),
            pl.BlockSpec((1, Kp), lambda i, j: (0, 0)),
            pl.BlockSpec((1, Kp), lambda i, j: (0, 0)),
            pl.BlockSpec((1, Kl), lambda i, j: (0, 0)),
            pl.BlockSpec((1, Kl), lambda i, j: (0, 0)),
            pl.BlockSpec((Kp, tn), lambda i, j: (0, j)),
            pl.BlockSpec((Kl, tn), lambda i, j: (0, j)),
            pl.BlockSpec((1, tn), lambda i, j: (0, j)),
            pl.BlockSpec((tn, Dp), lambda i, j: (j, 0)),
            pl.BlockSpec((1, Dp), lambda i, j: (0, 0)),
        ],
        out_specs=pl.BlockSpec((1, 20, Dp), lambda i, j: (i, 0, 0)),
        scratch_shapes=[pltpu.VMEM((20, Kp), jnp.bfloat16),
                        pltpu.VMEM((20, Kl), jnp.bfloat16),
                        pltpu.VMEM((20, Dp), jnp.float32)],
        compiler_params=pltpu.CompilerParams(
            dimension_semantics=("parallel", "arbitrary"),
            vmem_limit_bytes=32 * 1024 * 1024),
    )(pool_flat, lt_flat, gp, bp, gl, bl, w1p, w1l, b1, w2, b2)


# ------------------------------- parsingNet --------------------------------
class ParsingNetPallas:
    """Pallas re-implementation of parsingNet.forward (use_aux=False, backbone='34')."""

    def __init__(self, key, *, num_grid_row, num_cls_row, num_grid_col, num_cls_col,
                 num_lane_on_row, num_lane_on_col, input_height, input_width):
        self.num_grid_row, self.num_cls_row = num_grid_row, num_cls_row
        self.num_grid_col, self.num_cls_col = num_grid_col, num_cls_col
        self.num_lane_on_row, self.num_lane_on_col = num_lane_on_row, num_lane_on_col
        self.input_height, self.input_width = input_height, input_width
        self.dim1 = num_grid_row * num_cls_row
        self.dim2 = 2 * num_cls_row
        self.dim3 = num_grid_col * num_cls_col
        self.dim4 = 2 * num_cls_col
        self.total_dim_row = self.dim1 + self.dim2
        self.total_dim_col = self.dim3 + self.dim4
        self.mlp_mid_dim = 2048
        self.fh = input_height // 32
        self.fw = input_width // 32
        self.kp = 8 * self.fh * self.fw                  # pool part of a token row
        self.kl = self.fh * self.fw                      # lane-token part
        self.input_dim = self.kp + self.kl               # == 9*h*w
        self.tn = 512                                     # hidden tile for MLP kernel

        ks = jax.random.split(key, 8)

        def init(k, shape, scale=0.02):
            return (scale * jax.random.normal(k, shape)).astype(jnp.float32)

        # TODO(synk): the ResNet backbone (self.model) and the use_aux SegHead are
        # not reproduced; the backbone is replaced by a deterministic strided 1x1
        # projection (3 -> 512, stride 32) producing a feature map of correct shape.
        self.backbone_w = init(ks[0], (3, 512))
        self.backbone_b = jnp.zeros((512,), jnp.float32)

        # cls_distribute conv1: Conv2d(512,128,3,p=1); 8 non-center taps.
        cd1_w = init(ks[1], (128, 512, 3, 3))
        cd1_taps = jnp.transpose(cd1_w, (2, 3, 1, 0)).reshape(9, 512, 128)
        noncenter = jnp.array([0, 1, 2, 3, 5, 6, 7, 8])
        self.cd1_w8 = cd1_taps[noncenter].astype(jnp.bfloat16)
        self.cd1_b = jnp.zeros((1, 128), jnp.float32)

        # pool: Conv2d(512, 8, 1) fused into the widened center tap (512, 256).
        pool_w = init(ks[3], (8, 512, 1, 1))
        pool_w2d = jnp.transpose(pool_w.reshape(8, 512), (1, 0))       # (512, 8)
        wc = jnp.zeros((512, 256), jnp.float32)
        wc = wc.at[:, :128].set(cd1_taps[4])
        wc = wc.at[:, 128:136].set(pool_w2d)
        self.wc = wc.astype(jnp.bfloat16)

        # cls_distribute conv2: Conv2d(128,20,3,p=1) placed in output lanes 8:28.
        cd2_w = init(ks[2], (20, 128, 3, 3))
        cd2_taps = jnp.transpose(cd2_w, (2, 3, 1, 0)).reshape(9, 128, 20)
        w2taps = jnp.zeros((9, 128, 128), jnp.float32)
        w2taps = w2taps.at[:, :, 8:28].set(cd2_taps)
        self.cd2_w = w2taps.astype(jnp.bfloat16)

        # combined slab bias: pool bias in lanes 0:8, cd2 bias in lanes 8:28.
        self.bslab = jnp.zeros((1, 128), jnp.float32)

        # cls: LayerNorm(input_dim) split into pool / lane-token halves.
        self.ln_gp = jnp.ones((1, self.kp), jnp.float32)
        self.ln_bp = jnp.zeros((1, self.kp), jnp.float32)
        self.ln_gl = jnp.ones((1, self.kl), jnp.float32)
        self.ln_bl = jnp.zeros((1, self.kl), jnp.float32)

        # Linear(input_dim, 2048) split to match the split LN input.
        fc_w = init(ks[4], (self.input_dim, self.mlp_mid_dim))
        self.fc_w_p = fc_w[:self.kp].astype(jnp.bfloat16)
        self.fc_w_l = fc_w[self.kp:].astype(jnp.bfloat16)
        self.fc_b = jnp.zeros((1, self.mlp_mid_dim), jnp.float32)

        # cls_row / cls_col fused into one lane-dense (128-multiple padded) head.
        row_w = init(ks[5], (self.mlp_mid_dim, self.total_dim_row))
        col_w = init(ks[6], (self.mlp_mid_dim, self.total_dim_col))
        d_heads = self.total_dim_row + self.total_dim_col
        self.head_pad_dim = ((d_heads + 127) // 128) * 128
        head_w = jnp.concatenate([row_w, col_w], axis=1)
        self.head_w = jnp.pad(
            head_w, ((0, 0), (0, self.head_pad_dim - d_heads))).astype(jnp.bfloat16)
        self.head_b = jnp.zeros((1, self.head_pad_dim), jnp.float32)

    @staticmethod
    def _pick_nb(N, h, w, cin=512, budget_bytes=2 * 1024 * 1024):
        """Images per conv grid step: amortize pipeline overhead but keep >=2
        steps (v7x megacore) and bound the padded-input VMEM scratch."""
        per_img = (h + 2) * (w + 2) * cin * 2   # bf16 xpad scratch per image
        cap = min(8, max(1, N // 2))
        best = 1
        for nb in range(1, cap + 1):
            if N % nb == 0 and nb * per_img <= budget_bytes:
                best = nb
        return best

    def __call__(self, x_nchw):
        N = x_nchw.shape[0]
        h, w = self.fh, self.fw

        # --- backbone stub: strided 1x1 projection 3 -> 512 (plain jnp; K=3 is
        #     too small to benefit from a pallas_call) ---
        x_sub = jnp.transpose(x_nchw[:, :, ::32, ::32], (0, 2, 3, 1))    # (N,h,w,3)
        fea = jnp.maximum(
            jnp.einsum('nhwc,cf->nhwf', x_sub, self.backbone_w) + self.backbone_b, 0.0)
        fea = fea.astype(jnp.bfloat16)                                   # (N,h,w,512)

        # --- fused cls_distribute (conv1+ReLU+conv2) + pool conv1x1, one kernel,
        #     lane-dense 128-wide output slab ---
        nb = self._pick_nb(N, h, w)
        slab = conv_distribute_pool(fea, self.cd1_w8, self.cd1_b, self.wc,
                                    self.cd2_w, self.bslab, nb=nb)       # (N,h,w,128)

        pool_nchw = jnp.transpose(slab[..., :8], (0, 3, 1, 2))           # (N,8,h,w)
        lt_nchw = jnp.transpose(slab[..., 8:28], (0, 3, 1, 2))           # (N,20,h,w)
        lane_token = lt_nchw.reshape(N, 20, 1, h, w)

        pool_flat = pool_nchw.reshape(N, 1, self.kp)                     # (N,1,8hw)
        lt_flat = lt_nchw.reshape(N, 20, self.kl)                        # (N,20,hw)

        # --- fused LayerNorm + Linear + ReLU + row/col heads (fea5 assembled
        #     in VMEM; no 20x-duplicated pool tensor in HBM) ---
        out_all = ln_mlp_heads(pool_flat, lt_flat,
                               self.ln_gp, self.ln_bp, self.ln_gl, self.ln_bl,
                               self.fc_w_p, self.fc_w_l, self.fc_b,
                               self.head_w, self.head_b, tn=self.tn)      # (N,20,Dp)

        tdr, tdc = self.total_dim_row, self.total_dim_col
        out_row = jnp.transpose(out_all[:, :10, :tdr], (0, 2, 1))
        out_col = jnp.transpose(out_all[:, 10:, tdr:tdr + tdc], (0, 2, 1))

        pred = {
            'loc_row': out_row[:, :self.dim1, :].reshape(
                N, self.num_grid_row, self.num_cls_row, self.num_lane_on_row),
            'loc_col': out_col[:, :self.dim3, :].reshape(
                N, self.num_grid_col, self.num_cls_col, self.num_lane_on_col),
            'exist_row': out_row[:, self.dim1:self.dim1 + self.dim2, :].reshape(
                N, 2, self.num_cls_row, self.num_lane_on_row),
            'exist_col': out_col[:, self.dim3:self.dim3 + self.dim4, :].reshape(
                N, 2, self.num_cls_col, self.num_lane_on_col),
            'lane_token_row': lane_token[:, :10].sum(axis=1),
            'lane_token_col': lane_token[:, 10:].sum(axis=1),
        }
        return pred


if __name__ == "__main__":
    key = jax.random.PRNGKey(0)
    k_param, k_x = jax.random.split(key)

    cfg = dict(num_grid_row=8, num_cls_row=8, num_grid_col=8, num_cls_col=8,
               num_lane_on_row=10, num_lane_on_col=10,
               input_height=64, input_width=64)
    net = ParsingNetPallas(k_param, **cfg)

    x = jax.random.normal(k_x, (2, 3, 64, 64), dtype=jnp.float32)
    fwd = jax.jit(net.__call__)
    pred = jax.block_until_ready(fwd(x))

    h, w = 64 // 32, 64 // 32
    assert pred['loc_row'].shape == (2, 8, 8, 10)
    assert pred['loc_col'].shape == (2, 8, 8, 10)
    assert pred['exist_row'].shape == (2, 2, 8, 10)
    assert pred['exist_col'].shape == (2, 2, 8, 10)
    assert pred['lane_token_row'].shape == (2, 1, h, w)
    assert pred['lane_token_col'].shape == (2, 1, h, w)
    assert all(bool(jnp.all(jnp.isfinite(v))) for v in pred.values())
    print("KERNEL_OK")
</pallas_src>

<mosaic_0001>
module attributes {stable_mosaic.version = 11 : i64} {
  func.func @_conv_fused_kernel(%arg0: i32, %arg1: memref<1x2x2x512xbf16, #tpu.memory_space<vmem>>, %arg2: memref<8x512x128xbf16, #tpu.memory_space<vmem>>, %arg3: memref<1x128xf32, #tpu.memory_space<vmem>>, %arg4: memref<512x256xbf16, #tpu.memory_space<vmem>>, %arg5: memref<9x128x128xbf16, #tpu.memory_space<vmem>>, %arg6: memref<1x128xf32, #tpu.memory_space<vmem>>, %arg7: memref<1x2x2x128xf32, #tpu.memory_space<vmem>>, %arg8: memref<1x4x4x512xbf16, #tpu.memory_space<vmem>>, %arg9: memref<1x4x4x128xbf16, #tpu.memory_space<vmem>>) attributes {dimension_semantics = [#tpu.dimension_semantics<parallel>], iteration_bounds = array<i64: 2>, scalar_prefetch = 0 : i64, scratch_operands = 2 : i64, tpu.core_type = #tpu.core_type<tc>, window_params = [{transform_indices = @transform_0, window_bounds = array<i64: 1, 2, 2, 512>}, {pipeline_mode = #tpu.pipeline_mode<synchronous>, transform_indices = @transform_1, window_bounds = array<i64: 8, 512, 128>}, {pipeline_mode = #tpu.pipeline_mode<synchronous>, transform_indices = @transform_2, window_bounds = array<i64: 1, 128>}, {pipeline_mode = #tpu.pipeline_mode<synchronous>, transform_indices = @transform_3, window_bounds = array<i64: 512, 256>}, {pipeline_mode = #tpu.pipeline_mode<synchronous>, transform_indices = @transform_4, window_bounds = array<i64: 9, 128, 128>}, {pipeline_mode = #tpu.pipeline_mode<synchronous>, transform_indices = @transform_5, window_bounds = array<i64: 1, 128>}, {transform_indices = @transform_6, window_bounds = array<i64: 1, 2, 2, 128>}]} {
    %cst = arith.constant 0.000000e+00 : bf16
    %0 = vector.broadcast %cst : bf16 to vector<1x4x4x512xbf16>
    %c0 = arith.constant 0 : index
    %c0_0 = arith.constant 0 : index
    %c0_1 = arith.constant 0 : index
    %c0_2 = arith.constant 0 : index
    %1 = vector.load %arg8[%c0, %c0_0, %c0_1, %c0_2] : memref<1x4x4x512xbf16, #tpu.memory_space<vmem>>, vector<1x4x4x512xbf16>
    tpu.vector_store %arg8[%c0, %c0_0, %c0_1, %c0_2], %0 {strides = array<i32>} : memref<1x4x4x512xbf16, #tpu.memory_space<vmem>>, vector<1x4x4x512xbf16>,
    %c0_3 = arith.constant 0 : index
    %c0_4 = arith.constant 0 : index
    %c0_5 = arith.constant 0 : index
    %c0_6 = arith.constant 0 : index
    %2 = vector.load %arg1[%c0_3, %c0_4, %c0_5, %c0_6] : memref<1x2x2x512xbf16, #tpu.memory_space<vmem>>, vector<1x2x2x512xbf16>
    %c0_7 = arith.constant 0 : index
    %c1 = arith.constant 1 : index
    %c1_8 = arith.constant 1 : index
    %c0_9 = arith.constant 0 : index
    %3 = vector.load %arg8[%c0_7, %c1, %c1_8, %c0_9] : memref<1x4x4x512xbf16, #tpu.memory_space<vmem>>, vector<1x2x2x512xbf16>
    tpu.vector_store %arg8[%c0_7, %c1, %c1_8, %c0_9], %2 {strides = array<i32>} : memref<1x4x4x512xbf16, #tpu.memory_space<vmem>>, vector<1x2x2x512xbf16>,
    %cst_10 = arith.constant 0.000000e+00 : f32
    %4 = vector.broadcast %cst_10 : f32 to vector<4x128xf32>
    %c0_11 = arith.constant 0 : index
    %c0_12 = arith.constant 0 : index
    %c0_13 = arith.constant 0 : index
    %c0_14 = arith.constant 0 : index
    %5 = vector.load %arg8[%c0_11, %c0_12, %c0_13, %c0_14] : memref<1x4x4x512xbf16, #tpu.memory_space<vmem>>, vector<1x2x2x512xbf16>
    %6 = vector.shape_cast %5 : vector<1x2x2x512xbf16> to vector<4x512xbf16>
    %c0_15 = arith.constant 0 : index
    %c0_16 = arith.constant 0 : index
    %c0_17 = arith.constant 0 : index
    %7 = vector.load %arg2[%c0_15, %c0_16, %c0_17] : memref<8x512x128xbf16, #tpu.memory_space<vmem>>, vector<1x512x128xbf16>
    %8 = vector.shape_cast %7 : vector<1x512x128xbf16> to vector<512x128xbf16>
    %cst_18 = arith.constant dense<0.000000e+00> : vector<4x128xf32>
    %9 = tpu.matmul %6, %8, %cst_18 {dimension_numbers = #tpu.dot_dimension_numbers<[1], [0], [0], [1], [0, 0, 1, 1], [], []>} : vector<4x512xbf16>, vector<512x128xbf16>, vector<4x128xf32> -> vector<4x128xf32>
    %10 = arith.addf %4, %9 : vector<4x128xf32>
    %c0_19 = arith.constant 0 : index
    %c0_20 = arith.constant 0 : index
    %c1_21 = arith.constant 1 : index
    %c0_22 = arith.constant 0 : index
    %11 = vector.load %arg8[%c0_19, %c0_20, %c1_21, %c0_22] : memref<1x4x4x512xbf16, #tpu.memory_space<vmem>>, vector<1x2x2x512xbf16>
    %12 = vector.shape_cast %11 : vector<1x2x2x512xbf16> to vector<4x512xbf16>
    %c1_23 = arith.constant 1 : index
    %c0_24 = arith.constant 0 : index
    %c0_25 = arith.constant 0 : index
    %13 = vector.load %arg2[%c1_23, %c0_24, %c0_25] : memref<8x512x128xbf16, #tpu.memory_space<vmem>>, vector<1x512x128xbf16>
    %14 = vector.shape_cast %13 : vector<1x512x128xbf16> to vector<512x128xbf16>
    %cst_26 = arith.constant dense<0.000000e+00> : vector<4x128xf32>
    %15 = tpu.matmul %12, %14, %cst_26 {dimension_numbers = #tpu.dot_dimension_numbers<[1], [0], [0], [1], [0, 0, 1, 1], [], []>} : vector<4x512xbf16>, vector<512x128xbf16>, vector<4x128xf32> -> vector<4x128xf32>
    %16 = arith.addf %10, %15 : vector<4x128xf32>
    %c0_27 = arith.constant 0 : index
    %c0_28 = arith.constant 0 : index
    %c2 = arith.constant 2 : index
    %c0_29 = arith.constant 0 : index
    %17 = vector.load %arg8[%c0_27, %c0_28, %c2, %c0_29] : memref<1x4x4x512xbf16, #tpu.memory_space<vmem>>, vector<1x2x2x512xbf16>
    %18 = vector.shape_cast %17 : vector<1x2x2x512xbf16> to vector<4x512xbf16>
    %c2_30 = arith.constant 2 : index
    %c0_31 = arith.constant 0 : index
    %c0_32 = arith.constant 0 : index
    %19 = vector.load %arg2[%c2_30, %c0_31, %c0_32] : memref<8x512x128xbf16, #tpu.memory_space<vmem>>, vector<1x512x128xbf16>
    %20 = vector.shape_cast %19 : vector<1x512x128xbf16> to vector<512x128xbf16>
    %cst_33 = arith.constant dense<0.000000e+00> : vector<4x128xf32>
    %21 = tpu.matmul %18, %20, %cst_33 {dimension_numbers = #tpu.dot_dimension_numbers<[1], [0], [0], [1], [0, 0, 1, 1], [], []>} : vector<4x512xbf16>, vector<512x128xbf16>, vector<4x128xf32> -> vector<4x128xf32>
    %22 = arith.addf %16, %21 : vector<4x128xf32>
    %c0_34 = arith.constant 0 : index
    %c1_35 = arith.constant 1 : index
    %c0_36 = arith.constant 0 : index
    %c0_37 = arith.constant 0 : index
    %23 = vector.load %arg8[%c0_34, %c1_35, %c0_36, %c0_37] : memref<1x4x4x512xbf16, #tpu.memory_space<vmem>>, vector<1x2x2x512xbf16>
    %24 = vector.shape_cast %23 : vector<1x2x2x512xbf16> to vector<4x512xbf16>
    %c3 = arith.constant 3 : index
    %c0_38 = arith.constant 0 : index
    %c0_39 = arith.constant 0 : index
    %25 = vector.load %arg2[%c3, %c0_38, %c0_39] : memref<8x512x128xbf16, #tpu.memory_space<vmem>>, vector<1x512x128xbf16>
    %26 = vector.shape_cast %25 : vector<1x512x128xbf16> to vector<512x128xbf16>
    %cst_40 = arith.constant dense<0.000000e+00> : vector<4x128xf32>
    %27 = tpu.matmul %24, %26, %cst_40 {dimension_numbers = #tpu.dot_dimension_numbers<[1], [0], [0], [1], [0, 0, 1, 1], [], []>} : vector<4x512xbf16>, vector<512x128xbf16>, vector<4x128xf32> -> vector<4x128xf32>
    %28 = arith.addf %22, %27 : vector<4x128xf32>
    %c0_41 = arith.constant 0 : index
    %c1_42 = arith.constant 1 : index
    %c1_43 = arith.constant 1 : index
    %c0_44 = arith.constant 0 : index
    %29 = vector.load %arg8[%c0_41, %c1_42, %c1_43, %c0_44] : memref<1x4x4x512xbf16, #tpu.memory_space<vmem>>, vector<1x2x2x512xbf16>
    %30 = vector.shape_cast %29 : vector<1x2x2x512xbf16> to vector<4x512xbf16>
    %c0_45 = arith.constant 0 : index
    %c0_46 = arith.constant 0 : index
    %31 = vector.load %arg4[%c0_45, %c0_46] : memref<512x256xbf16, #tpu.memory_space<vmem>>, vector<512x256xbf16>
    %cst_47 = arith.constant dense<0.000000e+00> : vector<4x256xf32>
    %32 = tpu.matmul %30, %31, %cst_47 {dimension_numbers = #tpu.dot_dimension_numbers<[1], [0], [0], [1], [0, 0, 1, 1], [], []>} : vector<4x512xbf16>, vector<512x256xbf16>, vector<4x256xf32> -> vector<4x256xf32>
    %33 = vector.extract_strided_slice %32 {offsets = [0, 0], sizes = [4, 128], strides = [1, 1]} : vector<4x256xf32> to vector<4x128xf32>
    %34 = arith.addf %28, %33 : vector<4x128xf32>
    %35 = vector.extract_strided_slice %32 {offsets = [0, 128], sizes = [4, 128], strides = [1, 1]} : vector<4x256xf32> to vector<4x128xf32>
    %c0_48 = arith.constant 0 : index
    %c1_49 = arith.constant 1 : index
    %c2_50 = arith.constant 2 : index
    %c0_51 = arith.constant 0 : index
    %36 = vector.load %arg8[%c0_48, %c1_49, %c2_50, %c0_51] : memref<1x4x4x512xbf16, #tpu.memory_space<vmem>>, vector<1x2x2x512xbf16>
    %37 = vector.shape_cast %36 : vector<1x2x2x512xbf16> to vector<4x512xbf16>
    %c4 = arith.constant 4 : index
    %c0_52 = arith.constant 0 : index
    %c0_53 = arith.constant 0 : index
    %38 = vector.load %arg2[%c4, %c0_52, %c0_53] : memref<8x512x128xbf16, #tpu.memory_space<vmem>>, vector<1x512x128xbf16>
    %39 = vector.shape_cast %38 : vector<1x512x128xbf16> to vector<512x128xbf16>
    %cst_54 = arith.constant dense<0.000000e+00> : vector<4x128xf32>
    %40 = tpu.matmul %37, %39, %cst_54 {dimension_numbers = #tpu.dot_dimension_numbers<[1], [0], [0], [1], [0, 0, 1, 1], [], []>} : vector<4x512xbf16>, vector<512x128xbf16>, vector<4x128xf32> -> vector<4x128xf32>
    %41 = arith.addf %34, %40 : vector<4x128xf32>
    %c0_55 = arith.constant 0 : index
    %c2_56 = arith.constant 2 : index
    %c0_57 = arith.constant 0 : index
    %c0_58 = arith.constant 0 : index
    %42 = vector.load %arg8[%c0_55, %c2_56, %c0_57, %c0_58] : memref<1x4x4x512xbf16, #tpu.memory_space<vmem>>, vector<1x2x2x512xbf16>
    %43 = vector.shape_cast %42 : vector<1x2x2x512xbf16> to vector<4x512xbf16>
    %c5 = arith.constant 5 : index
    %c0_59 = arith.constant 0 : index
    %c0_60 = arith.constant 0 : index
    %44 = vector.load %arg2[%c5, %c0_59, %c0_60] : memref<8x512x128xbf16, #tpu.memory_space<vmem>>, vector<1x512x128xbf16>
    %45 = vector.shape_cast %44 : vector<1x512x128xbf16> to vector<512x128xbf16>
    %cst_61 = arith.constant dense<0.000000e+00> : vector<4x128xf32>
    %46 = tpu.matmul %43, %45, %cst_61 {dimension_numbers = #tpu.dot_dimension_numbers<[1], [0], [0], [1], [0, 0, 1, 1], [], []>} : vector<4x512xbf16>, vector<512x128xbf16>, vector<4x128xf32> -> vector<4x128xf32>
    %47 = arith.addf %41, %46 : vector<4x128xf32>
    %c0_62 = arith.constant 0 : index
    %c2_63 = arith.constant 2 : index
    %c1_64 = arith.constant 1 : index
    %c0_65 = arith.constant 0 : index
    %48 = vector.load %arg8[%c0_62, %c2_63, %c1_64, %c0_65] : memref<1x4x4x512xbf16, #tpu.memory_space<vmem>>, vector<1x2x2x512xbf16>
    %49 = vector.shape_cast %48 : vector<1x2x2x512xbf16> to vector<4x512xbf16>
    %c6 = arith.constant 6 : index
    %c0_66 = arith.constant 0 : index
    %c0_67 = arith.constant 0 : index
    %50 = vector.load %arg2[%c6, %c0_66, %c0_67] : memref<8x512x128xbf16, #tpu.memory_space<vmem>>, vector<1x512x128xbf16>
    %51 = vector.shape_cast %50 : vector<1x512x128xbf16> to vector<512x128xbf16>
    %cst_68 = arith.constant dense<0.000000e+00> : vector<4x128xf32>
    %52 = tpu.matmul %49, %51, %cst_68 {dimension_numbers = #tpu.dot_dimension_numbers<[1], [0], [0], [1], [0, 0, 1, 1], [], []>} : vector<4x512xbf16>, vector<512x128xbf16>, vector<4x128xf32> -> vector<4x128xf32>
    %53 = arith.addf %47, %52 : vector<4x128xf32>
    %c0_69 = arith.constant 0 : index
    %c2_70 = arith.constant 2 : index
    %c2_71 = arith.constant 2 : index
    %c0_72 = arith.constant 0 : index
    %54 = vector.load %arg8[%c0_69, %c2_70, %c2_71, %c0_72] : memref<1x4x4x512xbf16, #tpu.memory_space<vmem>>, vector<1x2x2x512xbf16>
    %55 = vector.shape_cast %54 : vector<1x2x2x512xbf16> to vector<4x512xbf16>
    %c7 = arith.constant 7 : index
    %c0_73 = arith.constant 0 : index
    %c0_74 = arith.constant 0 : index
    %56 = vector.load %arg2[%c7, %c0_73, %c0_74] : memref<8x512x128xbf16, #tpu.memory_space<vmem>>, vector<1x512x128xbf16>
    %57 = vector.shape_cast %56 : vector<1x512x128xbf16> to vector<512x128xbf16>
    %cst_75 = arith.constant dense<0.000000e+00> : vector<4x128xf32>
    %58 = tpu.matmul %55, %57, %cst_75 {dimension_numbers = #tpu.dot_dimension_numbers<[1], [0], [0], [1], [0, 0, 1, 1], [], []>} : vector<4x512xbf16>, vector<512x128xbf16>, vector<4x128xf32> -> vector<4x128xf32>
    %59 = arith.addf %53, %58 : vector<4x128xf32>
    %c0_76 = arith.constant 0 : index
    %c0_77 = arith.constant 0 : index
    %60 = vector.load %arg3[%c0_76, %c0_77] : memref<1x128xf32, #tpu.memory_space<vmem>>, vector<1x128xf32>
    %61 = vector.broadcast %60 : vector<1x128xf32> to vector<4x128xf32>
    %62 = arith.addf %59, %61 : vector<4x128xf32>
    %cst_78 = arith.constant 0.000000e+00 : f32
    %63 = vector.broadcast %cst_78 : f32 to vector<4x128xf32>
    %64 = arith.maximumf %62, %63 : vector<4x128xf32>
    %cst_79 = arith.constant 0.000000e+00 : bf16
    %65 = vector.broadcast %cst_79 : bf16 to vector<1x4x4x128xbf16>
    %c0_80 = arith.constant 0 : index
    %c0_81 = arith.constant 0 : index
    %c0_82 = arith.constant 0 : index
    %c0_83 = arith.constant 0 : index
    %66 = vector.load %arg9[%c0_80, %c0_81, %c0_82, %c0_83] : memref<1x4x4x128xbf16, #tpu.memory_space<vmem>>, vector<1x4x4x128xbf16>
    tpu.vector_store %arg9[%c0_80, %c0_81, %c0_82, %c0_83], %65 {strides = array<i32>} : memref<1x4x4x128xbf16, #tpu.memory_space<vmem>>, vector<1x4x4x128xbf16>,
    %67 = vector.shape_cast %64 : vector<4x128xf32> to vector<1x2x2x128xf32>
    %68 = arith.truncf %67 : vector<1x2x2x128xf32> to vector<1x2x2x128xbf16>
    %c0_84 = arith.constant 0 : index
    %c1_85 = arith.constant 1 : index
    %c1_86 = arith.constant 1 : index
    %c0_87 = arith.constant 0 : index
    %69 = vector.load %arg9[%c0_84, %c1_85, %c1_86, %c0_87] : memref<1x4x4x128xbf16, #tpu.memory_space<vmem>>, vector<1x2x2x128xbf16>
    tpu.vector_store %arg9[%c0_84, %c1_85, %c1_86, %c0_87], %68 {strides = array<i32>} : memref<1x4x4x128xbf16, #tpu.memory_space<vmem>>, vector<1x2x2x128xbf16>,
    %cst_88 = arith.constant 0.000000e+00 : f32
    %70 = vector.broadcast %cst_88 : f32 to vector<4x128xf32>
    %c0_89 = arith.constant 0 : index
    %c0_90 = arith.constant 0 : index
    %c0_91 = arith.constant 0 : index
    %c0_92 = arith.constant 0 : index
    %71 = vector.load %arg9[%c0_89, %c0_90, %c0_91, %c0_92] : memref<1x4x4x128xbf16, #tpu.memory_space<vmem>>, vector<1x2x2x128xbf16>
    %72 = vector.shape_cast %71 : vector<1x2x2x128xbf16> to vector<4x128xbf16>
    %c0_93 = arith.constant 0 : index
    %c0_94 = arith.constant 0 : index
    %c0_95 = arith.constant 0 : index
    %73 = vector.load %arg5[%c0_93, %c0_94, %c0_95] : memref<9x128x128xbf16, #tpu.memory_space<vmem>>, vector<1x128x128xbf16>
    %74 = vector.shape_cast %73 : vector<1x128x128xbf16> to vector<128x128xbf16>
    %cst_96 = arith.constant dense<0.000000e+00> : vector<4x128xf32>
    %75 = tpu.matmul %72, %74, %cst_96 {dimension_numbers = #tpu.dot_dimension_numbers<[1], [0], [0], [1], [0, 0, 1, 1], [], []>} : vector<4x128xbf16>, vector<128x128xbf16>, vector<4x128xf32> -> vector<4x128xf32>
    %76 = arith.addf %70, %75 : vector<4x128xf32>
    %c0_97 = arith.constant 0 : index
    %c0_98 = arith.constant 0 : index
    %c1_99 = arith.constant 1 : index
    %c0_100 = arith.constant 0 : index
    %77 = vector.load %arg9[%c0_97, %c0_98, %c1_99, %c0_100] : memref<1x4x4x128xbf16, #tpu.memory_space<vmem>>, vector<1x2x2x128xbf16>
    %78 = vector.shape_cast %77 : vector<1x2x2x128xbf16> to vector<4x128xbf16>
    %c1_101 = arith.constant 1 : index
    %c0_102 = arith.constant 0 : index
    %c0_103 = arith.constant 0 : index
    %79 = vector.load %arg5[%c1_101, %c0_102, %c0_103] : memref<9x128x128xbf16, #tpu.memory_space<vmem>>, vector<1x128x128xbf16>
    %80 = vector.shape_cast %79 : vector<1x128x128xbf16> to vector<128x128xbf16>
    %cst_104 = arith.constant dense<0.000000e+00> : vector<4x128xf32>
    %81 = tpu.matmul %78, %80, %cst_104 {dimension_numbers = #tpu.dot_dimension_numbers<[1], [0], [0], [1], [0, 0, 1, 1], [], []>} : vector<4x128xbf16>, vector<128x128xbf16>, vector<4x128xf32> -> vector<4x128xf32>
    %82 = arith.addf %76, %81 : vector<4x128xf32>
    %c0_105 = arith.constant 0 : index
    %c0_106 = arith.constant 0 : index
    %c2_107 = arith.constant 2 : index
    %c0_108 = arith.constant 0 : index
    %83 = vector.load %arg9[%c0_105, %c0_106, %c2_107, %c0_108] : memref<1x4x4x128xbf16, #tpu.memory_space<vmem>>, vector<1x2x2x128xbf16>
    %84 = vector.shape_cast %83 : vector<1x2x2x128xbf16> to vector<4x128xbf16>
    %c2_109 = arith.constant 2 : index
    %c0_110 = arith.constant 0 : index
    %c0_111 = arith.constant 0 : index
    %85 = vector.load %arg5[%c2_109, %c0_110, %c0_111] : memref<9x128x128xbf16, #tpu.memory_space<vmem>>, vector<1x128x128xbf16>
    %86 = vector.shape_cast %85 : vector<1x128x128xbf16> to vector<128x128xbf16>
    %cst_112 = arith.constant dense<0.000000e+00> : vector<4x128xf32>
    %87 = tpu.matmul %84, %86, %cst_112 {dimension_numbers = #tpu.dot_dimension_numbers<[1], [0], [0], [1], [0, 0, 1, 1], [], []>} : vector<4x128xbf16>, vector<128x128xbf16>, vector<4x128xf32> -> vector<4x128xf32>
    %88 = arith.addf %82, %87 : vector<4x128xf32>
    %c0_113 = arith.constant 0 : index
    %c1_114 = arith.constant 1 : index
    %c0_115 = arith.constant 0 : index
    %c0_116 = arith.constant 0 : index
    %89 = vector.load %arg9[%c0_113, %c1_114, %c0_115, %c0_116] : memref<1x4x4x128xbf16, #tpu.memory_space<vmem>>, vector<1x2x2x128xbf16>
    %90 = vector.shape_cast %89 : vector<1x2x2x128xbf16> to vector<4x128xbf16>
    %c3_117 = arith.constant 3 : index
    %c0_118 = arith.constant 0 : index
    %c0_119 = arith.constant 0 : index
    %91 = vector.load %arg5[%c3_117, %c0_118, %c0_119] : memref<9x128x128xbf16, #tpu.memory_space<vmem>>, vector<1x128x128xbf16>
    %92 = vector.shape_cast %91 : vector<1x128x128xbf16> to vector<128x128xbf16>
    %cst_120 = arith.constant dense<0.000000e+00> : vector<4x128xf32>
    %93 = tpu.matmul %90, %92, %cst_120 {dimension_numbers = #tpu.dot_dimension_numbers<[1], [0], [0], [1], [0, 0, 1, 1], [], []>} : vector<4x128xbf16>, vector<128x128xbf16>, vector<4x128xf32> -> vector<4x128xf32>
    %94 = arith.addf %88, %93 : vector<4x128xf32>
    %c0_121 = arith.constant 0 : index
    %c1_122 = arith.constant 1 : index
    %c1_123 = arith.constant 1 : index
    %c0_124 = arith.constant 0 : index
    %95 = vector.load %arg9[%c0_121, %c1_122, %c1_123, %c0_124] : memref<1x4x4x128xbf16, #tpu.memory_space<vmem>>, vector<1x2x2x128xbf16>
    %96 = vector.shape_cast %95 : vector<1x2x2x128xbf16> to vector<4x128xbf16>
    %c4_125 = arith.constant 4 : index
    %c0_126 = arith.constant 0 : index
    %c0_127 = arith.constant 0 : index
    %97 = vector.load %arg5[%c4_125, %c0_126, %c0_127] : memref<9x128x128xbf16, #tpu.memory_space<vmem>>, vector<1x128x128xbf16>
    %98 = vector.shape_cast %97 : vector<1x128x128xbf16> to vector<128x128xbf16>
    %cst_128 = arith.constant dense<0.000000e+00> : vector<4x128xf32>
    %99 = tpu.matmul %96, %98, %cst_128 {dimension_numbers = #tpu.dot_dimension_numbers<[1], [0], [0], [1], [0, 0, 1, 1], [], []>} : vector<4x128xbf16>, vector<128x128xbf16>, vector<4x128xf32> -> vector<4x128xf32>
    %100 = arith.addf %94, %99 : vector<4x128xf32>
    %c0_129 = arith.constant 0 : index
    %c1_130 = arith.constant 1 : index
    %c2_131 = arith.constant 2 : index
    %c0_132 = arith.constant 0 : index
    %101 = vector.load %arg9[%c0_129, %c1_130, %c2_131, %c0_132] : memref<1x4x4x128xbf16, #tpu.memory_space<vmem>>, vector<1x2x2x128xbf16>
    %102 = vector.shape_cast %101 : vector<1x2x2x128xbf16> to vector<4x128xbf16>
    %c5_133 = arith.constant 5 : index
    %c0_134 = arith.constant 0 : index
    %c0_135 = arith.constant 0 : index
    %103 = vector.load %arg5[%c5_133, %c0_134, %c0_135] : memref<9x128x128xbf16, #tpu.memory_space<vmem>>, vector<1x128x128xbf16>
    %104 = vector.shape_cast %103 : vector<1x128x128xbf16> to vector<128x128xbf16>
    %cst_136 = arith.constant dense<0.000000e+00> : vector<4x128xf32>
    %105 = tpu.matmul %102, %104, %cst_136 {dimension_numbers = #tpu.dot_dimension_numbers<[1], [0], [0], [1], [0, 0, 1, 1], [], []>} : vector<4x128xbf16>, vector<128x128xbf16>, vector<4x128xf32> -> vector<4x128xf32>
    %106 = arith.addf %100, %105 : vector<4x128xf32>
    %c0_137 = arith.constant 0 : index
    %c2_138 = arith.constant 2 : index
    %c0_139 = arith.constant 0 : index
    %c0_140 = arith.constant 0 : index
    %107 = vector.load %arg9[%c0_137, %c2_138, %c0_139, %c0_140] : memref<1x4x4x128xbf16, #tpu.memory_space<vmem>>, vector<1x2x2x128xbf16>
    %108 = vector.shape_cast %107 : vector<1x2x2x128xbf16> to vector<4x128xbf16>
    %c6_141 = arith.constant 6 : index
    %c0_142 = arith.constant 0 : index
    %c0_143 = arith.constant 0 : index
    %109 = vector.load %arg5[%c6_141, %c0_142, %c0_143] : memref<9x128x128xbf16, #tpu.memory_space<vmem>>, vector<1x128x128xbf16>
    %110 = vector.shape_cast %109 : vector<1x128x128xbf16> to vector<128x128xbf16>
    %cst_144 = arith.constant dense<0.000000e+00> : vector<4x128xf32>
    %111 = tpu.matmul %108, %110, %cst_144 {dimension_numbers = #tpu.dot_dimension_numbers<[1], [0], [0], [1], [0, 0, 1, 1], [], []>} : vector<4x128xbf16>, vector<128x128xbf16>, vector<4x128xf32> -> vector<4x128xf32>
    %112 = arith.addf %106, %111 : vector<4x128xf32>
    %c0_145 = arith.constant 0 : index
    %c2_146 = arith.constant 2 : index
    %c1_147 = arith.constant 1 : index
    %c0_148 = arith.constant 0 : index
    %113 = vector.load %arg9[%c0_145, %c2_146, %c1_147, %c0_148] : memref<1x4x4x128xbf16, #tpu.memory_space<vmem>>, vector<1x2x2x128xbf16>
    %114 = vector.shape_cast %113 : vector<1x2x2x128xbf16> to vector<4x128xbf16>
    %c7_149 = arith.constant 7 : index
    %c0_150 = arith.constant 0 : index
    %c0_151 = arith.constant 0 : index
    %115 = vector.load %arg5[%c7_149, %c0_150, %c0_151] : memref<9x128x128xbf16, #tpu.memory_space<vmem>>, vector<1x128x128xbf16>
    %116 = vector.shape_cast %115 : vector<1x128x128xbf16> to vector<128x128xbf16>
    %cst_152 = arith.constant dense<0.000000e+00> : vector<4x128xf32>
    %117 = tpu.matmul %114, %116, %cst_152 {dimension_numbers = #tpu.dot_dimension_numbers<[1], [0], [0], [1], [0, 0, 1, 1], [], []>} : vector<4x128xbf16>, vector<128x128xbf16>, vector<4x128xf32> -> vector<4x128xf32>
    %118 = arith.addf %112, %117 : vector<4x128xf32>
    %c0_153 = arith.constant 0 : index
    %c2_154 = arith.constant 2 : index
    %c2_155 = arith.constant 2 : index
    %c0_156 = arith.constant 0 : index
    %119 = vector.load %arg9[%c0_153, %c2_154, %c2_155, %c0_156] : memref<1x4x4x128xbf16, #tpu.memory_space<vmem>>, vector<1x2x2x128xbf16>
    %120 = vector.shape_cast %119 : vector<1x2x2x128xbf16> to vector<4x128xbf16>
    %c8 = arith.constant 8 : index
    %c0_157 = arith.constant 0 : index
    %c0_158 = arith.constant 0 : index
    %121 = vector.load %arg5[%c8, %c0_157, %c0_158] : memref<9x128x128xbf16, #tpu.memory_space<vmem>>, vector<1x128x128xbf16>
    %122 = vector.shape_cast %121 : vector<1x128x128xbf16> to vector<128x128xbf16>
    %cst_159 = arith.constant dense<0.000000e+00> : vector<4x128xf32>
    %123 = tpu.matmul %120, %122, %cst_159 {dimension_numbers = #tpu.dot_dimension_numbers<[1], [0], [0], [1], [0, 0, 1, 1], [], []>} : vector<4x128xbf16>, vector<128x128xbf16>, vector<4x128xf32> -> vector<4x128xf32>
    %124 = arith.addf %118, %123 : vector<4x128xf32>
    %125 = arith.addf %35, %124 : vector<4x128xf32>
    %c0_160 = arith.constant 0 : index
    %c0_161 = arith.constant 0 : index
    %126 = vector.load %arg6[%c0_160, %c0_161] : memref<1x128xf32, #tpu.memory_space<vmem>>, vector<1x128xf32>
    %127 = vector.broadcast %126 : vector<1x128xf32> to vector<4x128xf32>
    %128 = arith.addf %125, %127 : vector<4x128xf32>
    %129 = vector.shape_cast %128 : vector<4x128xf32> to vector<1x2x2x128xf32>
    %c0_162 = arith.constant 0 : index
    %c0_163 = arith.constant 0 : index
    %c0_164 = arith.constant 0 : index
    %c0_165 = arith.constant 0 : index
    %130 = vector.load %arg7[%c0_162, %c0_163, %c0_164, %c0_165] : memref<1x2x2x128xf32, #tpu.memory_space<vmem>>, vector<1x2x2x128xf32>
    tpu.vector_store %arg7[%c0_162, %c0_163, %c0_164, %c0_165], %129 {strides = array<i32>} : memref<1x2x2x128xf32, #tpu.memory_space<vmem>>, vector<1x2x2x128xf32>,
    return
  }
  func.func @transform_0(%arg0: i32) -> (i32, i32, i32, i32) {
    %c0_i32 = arith.constant 0 : i32
    %c0_i32_0 = arith.constant 0 : i32
    %c0_i32_1 = arith.constant 0 : i32
    %c0_i32_2 = arith.constant 0 : i32
    return %arg0, %c0_i32, %c0_i32_0, %c0_i32_1 : i32, i32, i32, i32
  }
  func.func @transform_1(%arg0: i32) -> (i32, i32, i32) {
    %c0_i32 = arith.constant 0 : i32
    %c0_i32_0 = arith.constant 0 : i32
    %c0_i32_1 = arith.constant 0 : i32
    %c0_i32_2 = arith.constant 0 : i32
    return %c0_i32, %c0_i32_0, %c0_i32_1 : i32, i32, i32
  }
  func.func @transform_2(%arg0: i32) -> (i32, i32) {
    %c0_i32 = arith.constant 0 : i32
    %c0_i32_0 = arith.constant 0 : i32
    %c0_i32_1 = arith.constant 0 : i32
    return %c0_i32, %c0_i32_0 : i32, i32
  }
  func.func @transform_3(%arg0: i32) -> (i32, i32) {
    %c0_i32 = arith.constant 0 : i32
    %c0_i32_0 = arith.constant 0 : i32
    %c0_i32_1 = arith.constant 0 : i32
    return %c0_i32, %c0_i32_0 : i32, i32
  }
  func.func @transform_4(%arg0: i32) -> (i32, i32, i32) {
    %c0_i32 = arith.constant 0 : i32
    %c0_i32_0 = arith.constant 0 : i32
    %c0_i32_1 = arith.constant 0 : i32
    %c0_i32_2 = arith.constant 0 : i32
    return %c0_i32, %c0_i32_0, %c0_i32_1 : i32, i32, i32
  }
  func.func @transform_5(%arg0: i32) -> (i32, i32) {
    %c0_i32 = arith.constant 0 : i32
    %c0_i32_0 = arith.constant 0 : i32
    %c0_i32_1 = arith.constant 0 : i32
    return %c0_i32, %c0_i32_0 : i32, i32
  }
  func.func @transform_6(%arg0: i32) -> (i32, i32, i32, i32) {
    %c0_i32 = arith.constant 0 : i32
    %c0_i32_0 = arith.constant 0 : i32
    %c0_i32_1 = arith.constant 0 : i32
    %c0_i32_2 = arith.constant 0 : i32
    return %arg0, %c0_i32, %c0_i32_0, %c0_i32_1 : i32, i32, i32, i32
  }
}

module attributes {stable_mosaic.version = 11 : i64} {
  func.func @_ln_mlp_heads_kernel(%arg0: i32, %arg1: i32, %arg2: memref<1x1x32xf32, #tpu.memory_space<vmem>>, %arg3: memref<1x20x4xf32, #tpu.memory_space<vmem>>, %arg4: memref<1x32xf32, #tpu.memory_space<vmem>>, %arg5: memref<1x32xf32, #tpu.memory_space<vmem>>, %arg6: memref<1x4xf32, #tpu.memory_space<vmem>>, %arg7: memref<1x4xf32, #tpu.memory_space<vmem>>, %arg8: memref<32x512xbf16, #tpu.memory_space<vmem>>, %arg9: memref<4x512xbf16, #tpu.memory_space<vmem>>, %arg10: memref<1x512xf32, #tpu.memory_space<vmem>>, %arg11: memref<512x256xbf16, #tpu.memory_space<vmem>>, %arg12: memref<1x256xf32, #tpu.memory_space<vmem>>, %arg13: memref<1x20x256xf32, #tpu.memory_space<vmem>>, %arg14: memref<20x32xbf16, #tpu.memory_space<vmem>>, %arg15: memref<20x4xbf16, #tpu.memory_space<vmem>>, %arg16: memref<20x256xf32, #tpu.memory_space<vmem>>) attributes {dimension_semantics = [#tpu.dimension_semantics<parallel>, #tpu.dimension_semantics<arbitrary>], iteration_bounds = array<i64: 2, 4>, scalar_prefetch = 0 : i64, scratch_operands = 3 : i64, tpu.core_type = #tpu.core_type<tc>, window_params = [{transform_indices = @transform_0, window_bounds = array<i64: 1, 1, 32>}, {transform_indices = @transform_1, window_bounds = array<i64: 1, 20, 4>}, {pipeline_mode = #tpu.pipeline_mode<synchronous>, transform_indices = @transform_2, window_bounds = array<i64: 1, 32>}, {pipeline_mode = #tpu.pipeline_mode<synchronous>, transform_indices = @transform_3, window_bounds = array<i64: 1, 32>}, {pipeline_mode = #tpu.pipeline_mode<synchronous>, transform_indices = @transform_4, window_bounds = array<i64: 1, 4>}, {pipeline_mode = #tpu.pipeline_mode<synchronous>, transform_indices = @transform_5, window_bounds = array<i64: 1, 4>}, {transform_indices = @transform_6, window_bounds = array<i64: 32, 512>}, {transform_indices = @transform_7, window_bounds = array<i64: 4, 512>}, {transform_indices = @transform_8, window_bounds = array<i64: 1, 512>}, {transform_indices = @transform_9, window_bounds = array<i64: 512, 256>}, {pipeline_mode = #tpu.pipeline_mode<synchronous>, transform_indices = @transform_10, window_bounds = array<i64: 1, 256>}, {transform_indices = @transform_11, window_bounds = array<i64: 1, 20, 256>}]} {
    %c0_i32 = arith.constant 0 : i32
    %0 = arith.cmpi eq, %arg1, %c0_i32 : i32
    %1 = arith.extui %0 : i1 to i32
    %c0_i32_0 = arith.constant 0 : i32
    %2 = arith.cmpi ne, %1, %c0_i32_0 : i32
    scf.if %2 {
      %c0_20 = arith.constant 0 : index
      %c0_21 = arith.constant 0 : index
      %c0_22 = arith.constant 0 : index
      %24 = vector.load %arg2[%c0_20, %c0_21, %c0_22] : memref<1x1x32xf32, #tpu.memory_space<vmem>>, vector<1x1x32xf32>
      %25 = vector.shape_cast %24 : vector<1x1x32xf32> to vector<1x32xf32>
      %c0_23 = arith.constant 0 : index
      %c0_24 = arith.constant 0 : index
      %c0_25 = arith.constant 0 : index
      %26 = vector.load %arg3[%c0_23, %c0_24, %c0_25] : memref<1x20x4xf32, #tpu.memory_space<vmem>>, vector<1x20x4xf32>
      %27 = vector.shape_cast %26 : vector<1x20x4xf32> to vector<20x4xf32>
      %cst_26 = arith.constant dense<0.000000e+00> : vector<1xf32>
      %28 = vector.multi_reduction <add>, %25, %cst_26 [1] : vector<1x32xf32> to vector<1xf32>
      %29 = vector.shape_cast %28 : vector<1xf32> to vector<1x1xf32>
      %cst_27 = arith.constant dense<0.000000e+00> : vector<20xf32>
      %30 = vector.multi_reduction <add>, %27, %cst_27 [1] : vector<20x4xf32> to vector<20xf32>
      %31 = vector.shape_cast %30 : vector<20xf32> to vector<20x1xf32>
      %32 = vector.broadcast %29 : vector<1x1xf32> to vector<20x1xf32>
      %33 = arith.addf %32, %31 : vector<20x1xf32>
      %cst_28 = arith.constant 3.600000e+01 : f32
      %34 = vector.broadcast %cst_28 : f32 to vector<20x1xf32>
      %35 = arith.divf %33, %34 : vector<20x1xf32>
      %36 = vector.broadcast %25 : vector<1x32xf32> to vector<20x32xf32>
      %37 = vector.broadcast %35 : vector<20x1xf32> to vector<20x32xf32>
      %38 = arith.subf %36, %37 : vector<20x32xf32>
      %39 = vector.broadcast %35 : vector<20x1xf32> to vector<20x4xf32>
      %40 = arith.subf %27, %39 : vector<20x4xf32>
      %41 = arith.mulf %38, %38 : vector<20x32xf32>
      %cst_29 = arith.constant dense<0.000000e+00> : vector<20xf32>
      %42 = vector.multi_reduction <add>, %41, %cst_29 [1] : vector<20x32xf32> to vector<20xf32>
      %43 = vector.shape_cast %42 : vector<20xf32> to vector<20x1xf32>
      %44 = arith.mulf %40, %40 : vector<20x4xf32>
      %cst_30 = arith.constant dense<0.000000e+00> : vector<20xf32>
      %45 = vector.multi_reduction <add>, %44, %cst_30 [1] : vector<20x4xf32> to vector<20xf32>
      %46 = vector.shape_cast %45 : vector<20xf32> to vector<20x1xf32>
      %47 = arith.addf %43, %46 : vector<20x1xf32>
      %cst_31 = arith.constant 3.600000e+01 : f32
      %48 = vector.broadcast %cst_31 : f32 to vector<20x1xf32>
      %49 = arith.divf %47, %48 : vector<20x1xf32>
      %cst_32 = arith.constant 9.99999974E-6 : f32
      %50 = vector.broadcast %cst_32 : f32 to vector<20x1xf32>
      %51 = arith.addf %49, %50 : vector<20x1xf32>
      %52 = math.rsqrt %51 : vector<20x1xf32>
      %53 = vector.broadcast %52 : vector<20x1xf32> to vector<20x32xf32>
      %54 = arith.mulf %38, %53 : vector<20x32xf32>
      %c0_33 = arith.constant 0 : index
      %c0_34 = arith.constant 0 : index
      %55 = vector.load %arg4[%c0_33, %c0_34] : memref<1x32xf32, #tpu.memory_space<vmem>>, vector<1x32xf32>
      %56 = vector.broadcast %55 : vector<1x32xf32> to vector<20x32xf32>
      %57 = arith.mulf %54, %56 : vector<20x32xf32>
      %c0_35 = arith.constant 0 : index
      %c0_36 = arith.constant 0 : index
      %58 = vector.load %arg5[%c0_35, %c0_36] : memref<1x32xf32, #tpu.memory_space<vmem>>, vector<1x32xf32>
      %59 = vector.broadcast %58 : vector<1x32xf32> to vector<20x32xf32>
      %60 = arith.addf %57, %59 : vector<20x32xf32>
      %61 = arith.truncf %60 : vector<20x32xf32> to vector<20x32xbf16>
      %c0_37 = arith.constant 0 : index
      %c0_38 = arith.constant 0 : index
      %62 = vector.load %arg14[%c0_37, %c0_38] : memref<20x32xbf16, #tpu.memory_space<vmem>>, vector<20x32xbf16>
      tpu.vector_store %arg14[%c0_37, %c0_38], %61 {strides = array<i32>} : memref<20x32xbf16, #tpu.memory_space<vmem>>, vector<20x32xbf16>,
      %63 = vector.broadcast %52 : vector<20x1xf32> to vector<20x4xf32>
      %64 = arith.mulf %40, %63 : vector<20x4xf32>
      %c0_39 = arith.constant 0 : index
      %c0_40 = arith.constant 0 : index
      %65 = vector.load %arg6[%c0_39, %c0_40] : memref<1x4xf32, #tpu.memory_space<vmem>>, vector<1x4xf32>
      %66 = vector.broadcast %65 : vector<1x4xf32> to vector<20x4xf32>
      %67 = arith.mulf %64, %66 : vector<20x4xf32>
      %c0_41 = arith.constant 0 : index
      %c0_42 = arith.constant 0 : index
      %68 = vector.load %arg7[%c0_41, %c0_42] : memref<1x4xf32, #tpu.memory_space<vmem>>, vector<1x4xf32>
      %69 = vector.broadcast %68 : vector<1x4xf32> to vector<20x4xf32>
      %70 = arith.addf %67, %69 : vector<20x4xf32>
      %71 = arith.truncf %70 : vector<20x4xf32> to vector<20x4xbf16>
      %c0_43 = arith.constant 0 : index
      %c0_44 = arith.constant 0 : index
      %72 = vector.load %arg15[%c0_43, %c0_44] : memref<20x4xbf16, #tpu.memory_space<vmem>>, vector<20x4xbf16>
      tpu.vector_store %arg15[%c0_43, %c0_44], %71 {strides = array<i32>} : memref<20x4xbf16, #tpu.memory_space<vmem>>, vector<20x4xbf16>,
      %cst_45 = arith.constant 0.000000e+00 : f32
      %73 = vector.broadcast %cst_45 : f32 to vector<20x256xf32>
      %c0_46 = arith.constant 0 : index
      %c0_47 = arith.constant 0 : index
      %74 = vector.load %arg16[%c0_46, %c0_47] : memref<20x256xf32, #tpu.memory_space<vmem>>, vector<20x256xf32>
      tpu.vector_store %arg16[%c0_46, %c0_47], %73 {strides = array<i32>} : memref<20x256xf32, #tpu.memory_space<vmem>>, vector<20x256xf32>,
    } else {
    }
    %c0 = arith.constant 0 : index
    %c0_1 = arith.constant 0 : index
    %3 = vector.load %arg14[%c0, %c0_1] : memref<20x32xbf16, #tpu.memory_space<vmem>>, vector<20x32xbf16>
    %c0_2 = arith.constant 0 : index
    %c0_3 = arith.constant 0 : index
    %4 = vector.load %arg8[%c0_2, %c0_3] : memref<32x512xbf16, #tpu.memory_space<vmem>>, vector<32x512xbf16>
    %cst = arith.constant dense<0.000000e+00> : vector<20x512xf32>
    %5 = tpu.matmul %3, %4, %cst {dimension_numbers = #tpu.dot_dimension_numbers<[1], [0], [0], [1], [0, 0, 1, 1], [], []>} : vector<20x32xbf16>, vector<32x512xbf16>, vector<20x512xf32> -> vector<20x512xf32>
    %c0_4 = arith.constant 0 : index
    %c0_5 = arith.constant 0 : index
    %6 = vector.load %arg15[%c0_4, %c0_5] : memref<20x4xbf16, #tpu.memory_space<vmem>>, vector<20x4xbf16>
    %c0_6 = arith.constant 0 : index
    %c0_7 = arith.constant 0 : index
    %7 = vector.load %arg9[%c0_6, %c0_7] : memref<4x512xbf16, #tpu.memory_space<vmem>>, vector<4x512xbf16>
    %cst_8 = arith.constant dense<0.000000e+00> : vector<20x512xf32>
    %8 = tpu.matmul %6, %7, %cst_8 {dimension_numbers = #tpu.dot_dimension_numbers<[1], [0], [0], [1], [0, 0, 1, 1], [], []>} : vector<20x4xbf16>, vector<4x512xbf16>, vector<20x512xf32> -> vector<20x512xf32>
    %9 = arith.addf %5, %8 : vector<20x512xf32>
    %c0_9 = arith.constant 0 : index
    %c0_10 = arith.constant 0 : index
    %10 = vector.load %arg10[%c0_9, %c0_10] : memref<1x512xf32, #tpu.memory_space<vmem>>, vector<1x512xf32>
    %11 = vector.broadcast %10 : vector<1x512xf32> to vector<20x512xf32>
    %12 = arith.addf %9, %11 : vector<20x512xf32>
    %cst_11 = arith.constant 0.000000e+00 : f32
    %13 = vector.broadcast %cst_11 : f32 to vector<20x512xf32>
    %14 = arith.maximumf %12, %13 : vector<20x512xf32>
    %c0_12 = arith.constant 0 : index
    %c0_13 = arith.constant 0 : index
    %15 = vector.load %arg16[%c0_12, %c0_13] : memref<20x256xf32, #tpu.memory_space<vmem>>, vector<20x256xf32>
    %16 = arith.truncf %14 : vector<20x512xf32> to vector<20x512xbf16>
    %c0_14 = arith.constant 0 : index
    %c0_15 = arith.constant 0 : index
    %17 = vector.load %arg11[%c0_14, %c0_15] : memref<512x256xbf16, #tpu.memory_space<vmem>>, vector<512x256xbf16>
    %cst_16 = arith.constant dense<0.000000e+00> : vector<20x256xf32>
    %18 = tpu.matmul %16, %17, %cst_16 {dimension_numbers = #tpu.dot_dimension_numbers<[1], [0], [0], [1], [0, 0, 1, 1], [], []>} : vector<20x512xbf16>, vector<512x256xbf16>, vector<20x256xf32> -> vector<20x256xf32>
    %19 = arith.addf %15, %18 : vector<20x256xf32>
    %c0_17 = arith.constant 0 : index
    %c0_18 = arith.constant 0 : index
    %20 = vector.load %arg16[%c0_17, %c0_18] : memref<20x256xf32, #tpu.memory_space<vmem>>, vector<20x256xf32>
    tpu.vector_store %arg16[%c0_17, %c0_18], %19 {strides = array<i32>} : memref<20x256xf32, #tpu.memory_space<vmem>>, vector<20x256xf32>,
    %c3_i32 = arith.constant 3 : i32
    %21 = arith.cmpi eq, %arg1, %c3_i32 : i32
    %22 = arith.extui %21 : i1 to i32
    %c0_i32_19 = arith.constant 0 : i32
    %23 = arith.cmpi ne, %22, %c0_i32_19 : i32
    scf.if %23 {
      %c0_20 = arith.constant 0 : index
      %c0_21 = arith.constant 0 : index
      %24 = vector.load %arg16[%c0_20, %c0_21] : memref<20x256xf32, #tpu.memory_space<vmem>>, vector<20x256xf32>
      %c0_22 = arith.constant 0 : index
      %c0_23 = arith.constant 0 : index
      %25 = vector.load %arg12[%c0_22, %c0_23] : memref<1x256xf32, #tpu.memory_space<vmem>>, vector<1x256xf32>
      %26 = vector.broadcast %25 : vector<1x256xf32> to vector<20x256xf32>
      %27 = arith.addf %24, %26 : vector<20x256xf32>
      %c0_24 = arith.constant 0 : index
      %c0_25 = arith.constant 0 : index
      %c0_26 = arith.constant 0 : index
      %28 = vector.load %arg13[%c0_24, %c0_25, %c0_26] : memref<1x20x256xf32, #tpu.memory_space<vmem>>, vector<1x20x256xf32>
      %29 = vector.shape_cast %28 : vector<1x20x256xf32> to vector<20x256xf32>
      %30 = vector.shape_cast %27 : vector<20x256xf32> to vector<1x20x256xf32>
      tpu.vector_store %arg13[%c0_24, %c0_25, %c0_26], %30 {strides = array<i32>} : memref<1x20x256xf32, #tpu.memory_space<vmem>>, vector<1x20x256xf32>,
    } else {
    }
    return
  }
  func.func @transform_0(%arg0: i32, %arg1: i32) -> (i32, i32, i32) {
    %c0_i32 = arith.constant 0 : i32
    %c0_i32_0 = arith.constant 0 : i32
    %c0_i32_1 = arith.constant 0 : i32
    return %arg0, %c0_i32, %c0_i32_0 : i32, i32, i32
  }
  func.func @transform_1(%arg0: i32, %arg1: i32) -> (i32, i32, i32) {
    %c0_i32 = arith.constant 0 : i32
    %c0_i32_0 = arith.constant 0 : i32
    %c0_i32_1 = arith.constant 0 : i32
    return %arg0, %c0_i32, %c0_i32_0 : i32, i32, i32
  }
  func.func @transform_2(%arg0: i32, %arg1: i32) -> (i32, i32) {
    %c0_i32 = arith.constant 0 : i32
    %c0_i32_0 = arith.constant 0 : i32
    %c0_i32_1 = arith.constant 0 : i32
    return %c0_i32, %c0_i32_0 : i32, i32
  }
  func.func @transform_3(%arg0: i32, %arg1: i32) -> (i32, i32) {
    %c0_i32 = arith.constant 0 : i32
    %c0_i32_0 = arith.constant 0 : i32
    %c0_i32_1 = arith.constant 0 : i32
    return %c0_i32, %c0_i32_0 : i32, i32
  }
  func.func @transform_4(%arg0: i32, %arg1: i32) -> (i32, i32) {
    %c0_i32 = arith.constant 0 : i32
    %c0_i32_0 = arith.constant 0 : i32
    %c0_i32_1 = arith.constant 0 : i32
    return %c0_i32, %c0_i32_0 : i32, i32
  }
  func.func @transform_5(%arg0: i32, %arg1: i32) -> (i32, i32) {
    %c0_i32 = arith.constant 0 : i32
    %c0_i32_0 = arith.constant 0 : i32
    %c0_i32_1 = arith.constant 0 : i32
    return %c0_i32, %c0_i32_0 : i32, i32
  }
  func.func @transform_6(%arg0: i32, %arg1: i32) -> (i32, i32) {
    %c0_i32 = arith.constant 0 : i32
    %c0_i32_0 = arith.constant 0 : i32
    return %c0_i32, %arg1 : i32, i32
  }
  func.func @transform_7(%arg0: i32, %arg1: i32) -> (i32, i32) {
    %c0_i32 = arith.constant 0 : i32
    %c0_i32_0 = arith.constant 0 : i32
    return %c0_i32, %arg1 : i32, i32
  }
  func.func @transform_8(%arg0: i32, %arg1: i32) -> (i32, i32) {
    %c0_i32 = arith.constant 0 : i32
    %c0_i32_0 = arith.constant 0 : i32
    return %c0_i32, %arg1 : i32, i32
  }
  func.func @transform_9(%arg0: i32, %arg1: i32) -> (i32, i32) {
    %c0_i32 = arith.constant 0 : i32
    %c0_i32_0 = arith.constant 0 : i32
    return %arg1, %c0_i32 : i32, i32
  }
  func.func @transform_10(%arg0: i32, %arg1: i32) -> (i32, i32) {
    %c0_i32 = arith.constant 0 : i32
    %c0_i32_0 = arith.constant 0 : i32
    %c0_i32_1 = arith.constant 0 : i32
    return %c0_i32, %c0_i32_0 : i32, i32
  }
  func.func @transform_11(%arg0: i32, %arg1: i32) -> (i32, i32, i32) {
    %c0_i32 = arith.constant 0 : i32
    %c0_i32_0 = arith.constant 0 : i32
    %c0_i32_1 = arith.constant 0 : i32
    return %arg0, %c0_i32, %c0_i32_0 : i32, i32, i32
  }
}

</mosaic_0001>

<bundles_post_ra>
// kernel: a_call__.3
= control target key start
LH: loop header
LB: loop body
LE: loop exit
PB: predicated region body
PF: predicated region fallthrough
CT: control target
= control target key end

     0   :  { %s2883_s0 = inlined_call_operand.vmem [shape: f32[2,1,32], index: 0, kind: input, shape index: {}]   ;;  %s2884_s1 = inlined_call_operand.vmem [shape: f32[2,20,4], index: 1, kind: input, shape index: {}]   ;;  %s2885_s2 = inlined_call_operand.vmem [shape: f32[1,32], index: 2, kind: input, shape index: {}]   ;;  %s2886_s3 = inlined_call_operand.vmem [shape: f32[1,32], index: 3, kind: input, shape index: {}]   ;;  %s2887_s4 = inlined_call_operand.vmem [shape: f32[1,4], index: 4, kind: input, shape index: {}]   ;;  %s2888_s5 = inlined_call_operand.vmem [shape: f32[1,4], index: 5, kind: input, shape index: {}]   ;;  %s2889_s6 = inlined_call_operand.vmem [shape: bf16[32,2048], index: 6, kind: input, shape index: {}]   ;;  %s2890_s7 = inlined_call_operand.hbm [shape: bf16[4,2048], index: 7, kind: input, shape index: {}]   ;;  %s2891_s8 = inlined_call_operand.vmem [shape: f32[1,2048], index: 8, kind: input, shape index: {}]   ;;  %s2892_s9 = inlined_call_operand.hbm [shape: bf16[2048,256], index: 9, kind: input, shape index: {}]   ;;  %s2893_s10 = inlined_call_operand.vmem [shape: f32[1,256], index: 10, kind: input, shape index: {}]   ;;  %s2894_s11 = inlined_call_operand.vmem [shape: f32[2,20,256], index: 11, kind: output, shape index: {}]  }
   0x1   :  { %2898 = sst [smem:[#allocation17_spill]] %s2885_s2 }
   0x2   :  { %2899 = sst [smem:[#allocation18_spill]] %s2886_s3 }
   0x3   :  { %2900 = sst [smem:[#allocation19_spill]] %s2887_s4 }
   0x4   :  { %2901 = sst [smem:[#allocation20_spill]] %s2888_s5 }
   0x5   :  { %2902 = sst [smem:[#allocation21_spill]] %s2889_s6 }
   0x6   :  { %2903 = sst [smem:[#allocation22_spill]] %s2893_s10 }
   0x7   :  { %16 = vsyncpa [#allocation7], 0 }
   0x8   :  { %18 = vsyncpa [#allocation7 + $0x1], 0 }
   0x9   :  { %19 = vsyncpa [#allocation9], 0 }
   0xa   :  { %21 = vsyncpa [#allocation9 + $0x1], 0  ;;  %s2441_s17 = smov 0   ;;  %s2443_s18 = smov 0  }
   0xb   :  { %s2445_s19 = smov 0   ;;  %s2447_s20 = smov 0  }
   0xc   :  { %s2449_s21 = smov 0   ;;  %s2451_s22 = smov 0  }
   0xd   :  { %s2453_s23 = smov 0   ;;  %s2455_s24 = smov 0  }
   0xe LB: > { %2904 = sst [smem:[#allocation12_spill]] %s2355_s19  ;;  %s1747_s25 = sadd.s32 4294967295, %s2375_s24   ;;  %s2375_s24 = sphi %s2455_s24, %s27_s24   ;;  %s2371_s23 = sphi %s2453_s23, %s2921_s23   ;;  %s2367_s22 = sphi %s2451_s22, %s2925_s22   ;;  %s2363_s21 = sphi %s2449_s21, %s2919_s21   ;;  %s2359_s20 = sphi %s2447_s20, %s2924_s20   ;;  %s2355_s19 = sphi %s2445_s19, %s2918_s19   ;;  %s2351_s18 = sphi %s2443_s18, %s2923_s18   ;;  %s2347_s17 = sphi %s2441_s17, %s2922_s17  }
   0xf   : > { %2905 = sst [smem:[#allocation13_spill]] %s2371_s23  ;;  %s36_s26 = sadd.s32 1, %s2367_s22 }
  0x10   : > { %p37_p0 = scmp.ge.s32.totalorder %s36_s26, 4  ;;  %s39_s27 = sadd.s32 1, %s2371_s23 }
  0x11   : > { %s182_s28 = sadd.s32 1, %s2355_s19  ;;  %p189_p1 = scmp.ne.s32.totalorder %s2355_s19, %s2351_s18 }
  0x12   : > { %s2927_s26 = smov (%p37_p0, %s36_s26), 0  ;;  %s2929_s27 = smov (!%p37_p0, %s39_s27), %s2371_s23 }
  0x13   : > { %2906 = sst [smem:[#allocation14_spill]] %s2927_s26  ;;  %s179_s29 = ssub.s32 %s2367_s22, %s2927_s26 }
  0x14   : > { %p190_p2 = scmp.eq.s32.totalorder %s2375_s24, 0  ;;  %p41_p3 = scmp.ge.s32.totalorder %s2929_s27, 2 }
  0x15   : > { %p180_p4 = scmp.eq.s32.totalorder %s179_s29, 0  ;;  %p221_p6 = scmp.ne.s32.totalorder %s2351_s18, %s2347_s17 }
  0x16   : > { %p2491_p5 = por %p190_p2, %p189_p1  ;;  %s2931_s27 = smov (%p41_p3, %s2929_s27), 0 }
  0x17   : > { %2908 = sst [smem:[#allocation15_spill]] %s2931_s27  ;;  %p222_p7 = scmp.eq.s32.totalorder %s1747_s25, 0 }
  0x18   : > { %s2499_s12 = scalar_select %p180_p4, %s2355_s19, %s182_s28  }
  0x19   : > { %p2501_p8 = por %p222_p7, %p221_p6  ;;  %p1750_p9 = scmp.ge.s32.totalorder %s2375_s24, 8 }
  0x1a   : > { %2909 = sst [smem:[#allocation16_spill]] %s2499_s12 }
  0x1b   : > { %355 = sbr.rel (%p1750_p9) target bundleno = 61 (0x3d), region = 36 }
  0x20   : > { %372 = sbr.rel (!%p2491_p5) target bundleno = 50 (0x32), region = 48  ;;  %s374_s14 = sand.u32 (%p2491_p5), 1, %s2355_s19  }
  0x21   : > { %s2084_s15 = sshll.u32 (%p2491_p5), %s2367_s22, 4  ;;  %s1751_s16 = sshll.u32 (%p2491_p5), %s374_s14, 6 }
  0x22   : > { %s2911_s6 = sld [smem:[#allocation21_spill]] (%p2491_p5)  ;;  %s376_s25 = scalar_lea.vmem (%p2491_p5), [#allocation5], %s1751_s16 }
  0x28   : > { %s379_s28 = scalar_lea.vmem %s2911_s6, %s2084_s15 }
  0x29   : > { %v392_v0 = vld [vmem:[%s379_s28] sm:$0xff]  ;;  %v394_v1 = vld [vmem:[%s379_s28 + $0x8] sm:$0xff] }
  0x2a   : > { %v396_v2 = vld [vmem:[%s379_s28 + $0x40] sm:$0xff]  ;;  %393 = vst [vmem:[%s376_s25] sm:$0xff] %v392_v0  ;;  %v398_v3 = vld [vmem:[%s379_s28 + $0x48] sm:$0xff] }
  0x2b   : > { %395 = vst [vmem:[%s376_s25 + $0x8] sm:$0xff] %v394_v1  ;;  %v400_v4 = vld [vmem:[%s379_s28 + $0x80] sm:$0xff]  ;;  %v402_v5 = vld [vmem:[%s379_s28 + $0x88] sm:$0xff] }
  0x2c   : > { %397 = vst [vmem:[%s376_s25 + $0x10] sm:$0xff] %v396_v2  ;;  %v404_v6 = vld [vmem:[%s379_s28 + $0xc0] sm:$0xff]  ;;  %v406_v7 = vld [vmem:[%s379_s28 + $0xc8] sm:$0xff] }
  0x2d   : > { %399 = vst [vmem:[%s376_s25 + $0x18] sm:$0xff] %v398_v3 }
  0x2e   : > { %401 = vst [vmem:[%s376_s25 + $0x20] sm:$0xff] %v400_v4 }
  0x2f   : > { %403 = vst [vmem:[%s376_s25 + $0x28] sm:$0xff] %v402_v5 }
  0x30   : > { %405 = vst [vmem:[%s376_s25 + $0x30] sm:$0xff] %v404_v6 }
  0x31   : > { %407 = vst [vmem:[%s376_s25 + $0x38] sm:$0xff] %v406_v7 }
  0x32 PF: > { %s414_s14 = sand.u32 1, %s2355_s19   ;;  %s2085_s15 = sshll.u32 %s2367_s22, 3 }
  0x33   : > { %s1754_s16 = sshll.u32 %s414_s14, 3  ;;  %s423_s6 = scalar_lea.hbm %s2890_s7, %s2085_s15 }
  0x34   : > { %s425_s27 = sshll.u32 %s423_s6, 4  ;;  %s418_s26 = scalar_lea.vmem [#allocation6], %s1754_s16  ;;  %s426_s27 = int_to_ptr.hbm [resolvable:$true] %s425_s27 }
  0x35   : > { %s427_s23 = sshll.u32 %s418_s26, 4  ;;  %s415_s28 = scalar_lea.sflag [#allocation7], %s414_s14  ;;  %s428_s23 = int_to_ptr.vmem [resolvable:$true] %s427_s23 }
  0x36   : > { %2164 = dma.hbm_to_vmem [thread:$0]  (%p2491_p5), %s426_s27, 128, %s428_s23, %s415_s28  }
  0x37   : > { %s1757_s25 = sshll.u32 %s414_s14, 9  ;;  %s2087_s12 = sshll.u32 %s2367_s22, 9 }
  0x38   : > { %s452_s19 = scalar_lea.hbm %s2892_s9, %s2087_s12  ;;  %s446_s3 = scalar_lea.vmem [#allocation8], %s1757_s25 }
  0x39   : > { %s455_s4 = sshll.u32 %s446_s3, 4  ;;  %s453_s2 = sshll.u32 %s452_s19, 4  ;;  %s456_s4 = int_to_ptr.vmem [resolvable:$true] %s455_s4  ;;  %s454_s2 = int_to_ptr.hbm [resolvable:$true] %s453_s2 }
  0x3a   : > { %s443_s6 = scalar_lea.sflag [#allocation9], %s414_s14  ;;  %s2377_s15 = smov 128  }
  0x3b   : > { %s2378_s26 = smov 8  }
  0x3c   : > { %2165 = dma.hbm_to_vmem [thread:$0]  (%p2491_p5), %s454_s2, 8192, %s456_s4, %s443_s6, %s2377_s15, %s2377_s15, %s2378_s26  }
  0x3d PF: > { %p1761_p10 = scmp.ge.s32.totalorder %s2375_s24, 1  ;;  %p463_p11 = scmp.lt.s32.totalorder %s2375_s24, 9 }
  0x3f   : > { %p464_p12 = pnand %p1761_p10, %p463_p11 }
  0x40   : > { %s470_s5 = sand.u32 (!%p464_p12), 1, %s2351_s18  }
  0x41   : > { %467 = sbr.rel (%p464_p12) target bundleno = 781 (0x30d), region = 83  ;;  %s1762_s10 = sshll.u32 (!%p464_p12), %s470_s5, 6 }
  0x42   : > { %s1763_s3 = sshll.u32 (!%p464_p12), %s470_s5, 3  ;;  %s2529_s19 = scalar_lea.vmem (!%p464_p12), [#allocation5], %s1762_s10 }
  0x43   : > { %s477_s23 = scalar_lea.sflag (!%p464_p12), [#allocation7], %s470_s5  ;;  %s2531_s27 = scalar_lea.vmem (!%p464_p12), [#allocation6], %s1763_s3 }
  0x46   : > { %2338 = dma.done.wait (%p2501_p8), %s477_s23, 128  }
  0x47   : > { %2340 = vsyncadd (%p2501_p8), %s477_s23, 4294967168  ;;  %s1764_s2 = sshll.u32 %s470_s5, 9  ;;  %s487_s4 = scalar_lea.sflag [#allocation9], %s470_s5 }
  0x48   : > { %s2537_s30 = scalar_lea.vmem [#allocation8], %s1764_s2 }
  0x49   : > { %2342 = dma.done.wait (%p2501_p8), %s487_s4, 8192  }
  0x4a   : > { %2344 = vsyncadd (%p2501_p8), %s487_s4, 4294959104  ;;  %p551_p13 = scmp.lt.s32.totalorder %s2363_s21, 1  ;;  %s1766_s12 = sshll.u32 %s2359_s20, 2 }
  0x4b   : > { %p562_p0 = scmp.lt.s32.totalorder %s1766_s12, 15  ;;  %p1768_p1 = scmp.ne.s32.totalorder %s2359_s20, 0 }
  0x4c   : > { %s2933_s21 = smov (!%p551_p13, %s2363_s21), 1  ;;  %s2912_s4 = sld [smem:[#allocation17_spill]] (!%p1768_p1) }
  0x4d   : > { %s2935_s12 = smov (!%p562_p0, %s1766_s12), 15  ;;  %s2551_s17 = scalar_lea.vmem %s2883_s0, %s2933_s21 }
  0x4e   : > { %s2162_s29 = smul.u32 24, %s2933_s21  ;;  %s564_s13 = scalar_lea.vmem %s2891_s8, %s2935_s12 }
  0x4f   : > { %s2163_s6 = smul.u32 48, %s2933_s21  ;;  %s2914_s25 = sld [smem:[#allocation18_spill]] (!%p1768_p1) }
  0x50   : > { %s558_s5 = scalar_lea.vmem %s2884_s1, %s2162_s29  ;;  %576 = sbr.rel (%p1768_p1) target bundleno = 387 (0x183), region = 99 }
  0x51   : > { %s2563_s23 = scalar_lea.vmem %s2894_s11, %s2163_s6  ;;  %s2915_s26 = sld [smem:[#allocation20_spill]] (!%p1768_p1) }
  0x55   : > { %v579_v8 = vld [vmem:[%s558_s5 + $0x8] sm:$0xff]  ;;  %vm585_vm0 = vcmask 31744   ;;  %v577_v9 = vld [vmem:[%s2551_s17] sm:$0x1]  ;;  %vm581_vm1 = vcmask 253952   ;;  %vm592_vm2 = vcmask 27648  }
  0x56   : > { %v589_v10 = vsel %vm585_vm0, %v579_v8, 0.0  ;;  %v582_v11 = vsel %vm581_vm1, %v577_v9, 0.0  ;;  %v580_v12 = vld [vmem:[%s558_s5 + $0x10] sm:$0xf]  ;;  %v578_v13 = vld [vmem:[%s558_s5] sm:$0xff]  ;;  %v2379_v16 = vmov 36.0  }
  0x57   : > { %590 = vadd.xlane.f32.xlu1 %v589_v10  ;;  %583 = vadd.xlane.f32.xlu0 %v582_v11  ;;  %v593_v14 = vsel %vm592_vm2, %v580_v12, 0.0  ;;  %v586_v15 = vsel %vm585_vm0, %v578_v13, 0.0  ;;  %2241 = vrcp.f32 %v2379_v16  ;;  %v2236_v31 = vld [vmem:[%s2551_s17] ss:$0 sm:$0xff]  ;;  %vm629_vm4 = vcmask 257024   ;;  %s2913_s17 = sld [smem:[#allocation19_spill]] }
  0x58   : > { %vm622_vm5 = vcmask 261120   ;;  %v2380_v6 = vmov 0.0   ;;  %vm706_vm13 = vcmask 254976   ;;  %vm730_vm14 = vcmask 25600  }
  0x59   : > { %732 = vst [vmem:[#allocation4 + $0x28] sm:$0xff] %v2380_v6 }
  0x5a   : > { %733 = vst [vmem:[#allocation4 + $0x10] sm:$0xff] %v2380_v6 }
  0x5b   : > { %734 = vst [vmem:[#allocation4 + $0x8] sm:$0xff] %v2380_v6 }
  0x5c   : > { %735 = vst [vmem:[#allocation4] sm:$0xff] %v2380_v6 }
  0x5d   : > { %v2242_v17 = vpop.eup %2241  ;;  %736 = vst [vmem:[#allocation4 + $0x18] sm:$0xf] %v2380_v6 }
  0x5e   : > { %v601_v18 = vmul.f32 36.0, %v2242_v17  ;;  %vm605_vm3 = vweird.f32 %v2242_v17  ;;  %737 = vst [vmem:[#allocation4 + $0x20] sm:$0xf] %v2380_v6 }
  0x5f   : > { %594 = vadd.xlane.f32.xlu1 %v593_v14  ;;  %587 = vadd.xlane.f32.xlu0 %v586_v15  ;;  %v2239_v14 = vld [vmem:[%s2913_s17] ss:$0 sm:$0xff] }
  0x60   : > { %v602_v19 = vsub.f32 1.0, %v601_v18  ;;  %v2240_v18 = vld [vmem:[%s2915_s26] ss:$0 sm:$0xff] }
  0x62   : > { %v603_v22 = vmul.f32 %v2242_v17, %v602_v19 }
  0x64   : > { %v604_v24 = vadd.f32 %v2242_v17, %v603_v22 }
  0x66   : > { %v606_v30 = vsel %vm605_vm3, %v2242_v17, %v604_v24  ;;  %v2238_v17 = vld [vmem:[%s2914_s25] ss:$0 sm:$0xff] }
  0xca   : > { %v591_v20 = vpop.xlane.xlu1 %590  ;;  %v584_v21 = vpop.xlane.xlu0 %583 }
  0xcb   : > { %v596_v23 = vperm.slane %v584_v21, 0 }
  0xcd   : > { %v598_v29 = vadd.f32 %v596_v23, %v591_v20 }
  0xcf   : > { %v608_v37 = vmul.f32 %v606_v30, %v598_v29 }
  0xd1   : > { %v2587_v45 = vsub.f32 %v2236_v31, %v608_v37  ;;  %v2594_v50 = vsub.f32 %v579_v8, %v608_v37 }
  0xd2   : > { %v595_v25 = vpop.xlane.xlu1 %594  ;;  %v588_v26 = vpop.xlane.xlu0 %587 }
  0xd3   : > { %v599_v27 = vadd.f32 %v596_v23, %v595_v25  ;;  %v597_v28 = vadd.f32 %v596_v23, %v588_v26  ;;  %v620_v47 = vmul.f32 %v2587_v45, %v2587_v45  ;;  %v634_v51 = vmul.f32 %v2594_v50, %v2594_v50 }
  0xd5   : > { %v609_v32 = vmul.f32 %v606_v30, %v599_v27  ;;  %v607_v33 = vmul.f32 %v606_v30, %v597_v28  ;;  %v626_v49 = vsel %vm622_vm5, %v620_v47, 0.0  ;;  %v639_v52 = vsel %vm585_vm0, %v634_v51, 0.0 }
  0xd7   : > { %v2571_v34 = vsub.f32 %v2236_v31, %v609_v32  ;;  %v2573_v35 = vsub.f32 %v578_v13, %v607_v33  ;;  %v2575_v36 = vsub.f32 %v2236_v31, %v607_v33  ;;  %v2585_v44 = vsub.f32 %v580_v12, %v609_v32  ;;  %v2237_v13 = vld [vmem:[%s2912_s4] ss:$0 sm:$0xff] }
  0xd9   : > { %v621_v38 = vmul.f32 %v2571_v34, %v2571_v34  ;;  %v633_v39 = vmul.f32 %v2573_v35, %v2573_v35  ;;  %v619_v40 = vmul.f32 %v2575_v36, %v2575_v36  ;;  %v635_v46 = vmul.f32 %v2585_v44, %v2585_v44 }
  0xdb   : > { %v630_v41 = vsel %vm629_vm4, %v621_v38, 0.0  ;;  %v636_v42 = vsel %vm585_vm0, %v633_v39, 0.0  ;;  %v623_v43 = vsel %vm622_vm5, %v619_v40, 0.0  ;;  %v642_v48 = vsel %vm592_vm2, %v635_v46, 0.0 }
  0xdc   : > { %631 = vadd.xlane.f32.xlu0 %v630_v41  ;;  %637 = vadd.xlane.f32.xlu1 %v636_v42 }
  0xdd   : > { %624 = vadd.xlane.f32.xlu2 %v623_v43 }
  0xe4   : > { %643 = vadd.xlane.f32.xlu0 %v642_v48 }
  0xe5   : > { %627 = vadd.xlane.f32.xlu2 %v626_v49 }
  0xed   : > { %640 = vadd.xlane.f32.xlu2 %v639_v52 }
 0x14f   : > { %v638_v53 = vpop.xlane.xlu1 %637  ;;  %v632_v54 = vpop.xlane.xlu0 %631 }
 0x150   : > { %v625_v55 = vpop.xlane.xlu2 %624 }
 0x151   : > { %v645_v56 = vadd.f32 %v638_v53, %v625_v55 }
 0x153   : > { %v648_v57 = vmul.f32 %v645_v56, %v606_v30 }
 0x155   : > { %v651_v58 = vadd.f32 1e-05, %v648_v57 }
 0x157   : > { %2243 = vrsqrt.f32 %v651_v58  ;;  %v644_v59 = vpop.xlane.xlu0 %643  ;;  %vm660_vm7 = vweird.f32 %v651_v58 }
 0x158   : > { %v628_v60 = vpop.xlane.xlu2 %627  ;;  %v647_v61 = vadd.f32 %v644_v59, %v632_v54 }
 0x15a   : > { %v650_v62 = vmul.f32 %v647_v61, %v606_v30 }
 0x15c   : > { %v653_v63 = vadd.f32 1e-05, %v650_v62 }
 0x15d   : > { %v2244_v0 = vpop.eup %2243 }
 0x15e   : > { %v655_v1 = vmul.f32 %v2244_v0, %v651_v58  ;;  %2245 = vrsqrt.f32 %v653_v63  ;;  %vm661_vm6 = vweird.f32 %v2244_v0  ;;  %vm680_vm10 = vweird.f32 %v653_v63 }
 0x15f   : > { %vm662_vm8 = vmor %vm660_vm7, %vm661_vm6 }
 0x160   : > { %v656_v2 = vmul.f32 %v2244_v0, %v655_v1  ;;  %v641_v3 = vpop.xlane.xlu2 %640 }
 0x161   : > { %v646_v4 = vadd.f32 %v641_v3, %v628_v60 }
 0x162   : > { %v657_v5 = vmul.f32 0.5, %v656_v2 }
 0x163   : > { %v649_v7 = vmul.f32 %v646_v4, %v606_v30 }
 0x164   : > { %v2246_v8 = vpop.eup %2245  ;;  %v658_v9 = vsub.f32 1.5, %v657_v5 }
 0x165   : > { %v675_v10 = vmul.f32 %v2246_v8, %v653_v63  ;;  %v652_v11 = vadd.f32 1e-05, %v649_v7  ;;  %vm681_vm9 = vweird.f32 %v2246_v8 }
 0x166   : > { %v659_v12 = vmul.f32 %v2244_v0, %v658_v9  ;;  %vm682_vm11 = vmor %vm680_vm10, %vm681_vm9 }
 0x167   : > { %v676_v15 = vmul.f32 %v2246_v8, %v675_v10  ;;  %2247 = vrsqrt.f32 %v652_v11  ;;  %vm670_vm15 = vweird.f32 %v652_v11 }
 0x168   : > { %v663_v16 = vsel %vm662_vm8, %v2244_v0, %v659_v12 }
 0x169   : > { %v684_v19 = vmul.f32 %v663_v16, %v2575_v36  ;;  %v708_v20 = vmul.f32 %v663_v16, %v2573_v35  ;;  %v677_v21 = vmul.f32 0.5, %v676_v15 }
 0x16b   : > { %v691_v22 = vmul.f32 %v2237_v13, %v684_v19  ;;  %v715_v23 = vmul.f32 %v2239_v14, %v708_v20  ;;  %v678_v24 = vsub.f32 1.5, %v677_v21 }
 0x16d   : > { %v2248_v25 = vpop.eup %2247  ;;  %v698_v26 = vadd.f32 %v2238_v17, %v691_v22  ;;  %v722_v27 = vadd.f32 %v2240_v18, %v715_v23  ;;  %v679_v28 = vmul.f32 %v2246_v8, %v678_v24 }
 0x16e   : > { %v665_v29 = vmul.f32 %v2248_v25, %v652_v11  ;;  %vm671_vm12 = vweird.f32 %v2248_v25 }
 0x16f   : > { %v701_v30 = vpack.c.bf16 %v698_v26, %v698_v26  ;;  %v725_v31 = vpack.c.bf16 %v722_v27, %v722_v27  ;;  %v683_v32 = vsel %vm682_vm11, %v2246_v8, %v679_v28  ;;  %vm672_vm0 = vmor %vm670_vm15, %vm671_vm12 }
 0x170   : > { %v686_v33 = vmul.f32 %v683_v32, %v2571_v34  ;;  %v710_v36 = vmul.f32 %v683_v32, %v2585_v44  ;;  %v666_v35 = vmul.f32 %v2248_v25, %v665_v29 }
 0x171   : > { %704 = vst.msk [vmem:[#allocation2] sm:$0xf] %vm629_vm4, %v701_v30 }
 0x172   : > { %728 = vst.msk [vmem:[#allocation3] sm:$0xf] %vm592_vm2, %v725_v31  ;;  %v693_v37 = vmul.f32 %v2237_v13, %v686_v33  ;;  %v717_v38 = vmul.f32 %v2239_v14, %v710_v36  ;;  %v667_v39 = vmul.f32 0.5, %v666_v35 }
 0x174   : > { %v700_v40 = vadd.f32 %v2238_v17, %v693_v37  ;;  %v724_v41 = vadd.f32 %v2240_v18, %v717_v38  ;;  %v668_v42 = vsub.f32 1.5, %v667_v39 }
 0x176   : > { %v703_v43 = vpack.c.bf16 %v700_v40, %v700_v40  ;;  %v727_v46 = vpack.c.bf16 %v724_v41, %v724_v41  ;;  %v669_v47 = vmul.f32 %v2248_v25, %v668_v42 }
 0x178   : > { %707 = vst.msk [vmem:[#allocation2 + $0x8] sm:$0x3] %vm706_vm13, %v703_v43  ;;  %v673_v34 = vsel %vm672_vm0, %v2248_v25, %v669_v47 }
 0x179   : > { %731 = vst.msk [vmem:[#allocation3 + $0x8] sm:$0x3] %vm730_vm14, %v727_v46  ;;  %v685_v44 = vmul.f32 %v673_v34, %v2587_v45  ;;  %v709_v48 = vmul.f32 %v673_v34, %v2594_v50 }
 0x17b   : > { %v692_v49 = vmul.f32 %v2237_v13, %v685_v44  ;;  %v716_v51 = vmul.f32 %v2239_v14, %v709_v48 }
 0x17d   : > { %v699_v52 = vadd.f32 %v2238_v17, %v692_v49  ;;  %v723_v53 = vadd.f32 %v2240_v18, %v716_v51 }
 0x17f   : > { %v702_v54 = vpack.c.bf16 %v699_v52, %v699_v52  ;;  %v726_v55 = vpack.c.bf16 %v723_v53, %v723_v53 }
 0x181   : > { %705 = vst.msk [vmem:[#allocation2 + $0x4] sm:$0xf] %vm629_vm4, %v702_v54 }
 0x182   : > { %729 = vst.msk [vmem:[#allocation3 + $0x4] sm:$0xf] %vm592_vm2, %v726_v55 }
 0x183 PF: > { %v752_v45 = vld [vmem:[%s2531_s27] sm:$0xff]  ;;  %vm774_vm1 = vcmask 1041408   ;;  %v2095_v56 = vld [vmem:[%s2529_s19 + $0x2c] sm:$0xf0]  ;;  %v2096_v58 = vld [vmem:[%s2529_s19 + $0x34] sm:$0xf0] }
 0x184   : > { %762 = vst [vmem:[#allocation1] ss:$4 sm:$0xff] %v752_v45  ;;  %v1803_v50 = vld [vmem:[%s2529_s19 + $0x20] sm:$0xf]  ;;  %v1811_v57 = vld [vmem:[%s2529_s19 + $0x28] sm:$0xf] }
 0x185   : > { %v2094_v59 = vld [vmem:[%s2529_s19 + $0x2c] sm:$0xf]  ;;  %v1813_v60 = vld [vmem:[%s2529_s19 + $0x38] sm:$0xf0]  ;;  %v2093_v61 = vld [vmem:[%s2529_s19 + $0x24] sm:$0xf]  ;;  %v1804_v63 = vor.u32 %v2095_v56, %v1803_v50  ;;  %v1812_v6 = vor.u32 %v2096_v58, %v1811_v57 }
 0x186   : > { %v1805_v62 = vld [vmem:[%s2529_s19 + $0x30] sm:$0xf0]  ;;  %v1795_v0 = vld [vmem:[%s2529_s19 + $0x8] sm:$0xf]  ;;  %v2092_v1 = vld [vmem:[%s2529_s19 + $0x14] sm:$0xf0]  ;;  %v1816_v13 = vor.u32 %v2094_v59, %v1813_v60 }
 0x187   : > { %v1787_v2 = vld [vmem:[%s2529_s19] sm:$0xf]  ;;  %v2091_v3 = vld [vmem:[%s2529_s19 + $0xc] sm:$0xf0]  ;;  %vm767_vm2 = vcmask 31744   ;;  %v1808_v15 = vor.u32 %v2093_v61, %v1805_v62  ;;  %v1796_v18 = vor.u32 %v2092_v1, %v1795_v0  ;;  %vm903_vm3 = vcmask 261120  }
 0x188   : > { %v2090_v16 = vld [vmem:[%s2529_s19 + $0xc] sm:$0xf]  ;;  %v1797_v17 = vld [vmem:[%s2529_s19 + $0x18] sm:$0xf0]  ;;  %v1788_v19 = vor.u32 %v2091_v3, %v1787_v2  ;;  %v2089_v20 = vld [vmem:[%s2529_s19 + $0x4] sm:$0xf] }
 0x189   : > { %v2097_v10 = vld [vmem:[#allocation3] sm:$0xff]  ;;  %v1789_v21 = vld [vmem:[%s2529_s19 + $0x10] sm:$0xf0]  ;;  %v1800_v22 = vor.u32 %v2090_v16, %v1797_v17  ;;  %v751_v24 = vld [vmem:[#allocation3 + $0x8] sm:$0x3]  ;;  %p2081_p2 = scmp.ne.s32.totalorder %s2359_s20, 3 }
 0x18a   : > { %v1792_v23 = vor.u32 %v2089_v20, %v1789_v21  ;;  %v758_v25 = vunpack.c.l.b16 %v751_v24  ;;  %v2088_v27 = vld [vmem:[#allocation2] sm:$0xff]  ;;  %v740_v28 = vld [vmem:[#allocation2 + $0x8] sm:$0x3]  ;;  %v2113_v32 = vld [vmem:[%s2537_s30 + $0x74] sm:$0xf0] }
 0x18b   : > { %v763_v4 = vld.sshfl [vmem:[#allocation1] sm:$0xff pattern:$0x73625140]  ;;  %v764_v5 = vld.sshfl [vmem:[#allocation1 + $0x8] sm:$0xff pattern:$0x73625140]  ;;  %v860_v29 = vunpack.c.l.b16 %v740_v28 }
 0x18c   : > { %v775_v7 = vsel %vm774_vm1, %v763_v4, 0  ;;  %v777_v8 = vsel %vm774_vm1, %v764_v5, 0  ;;  %v765_v9 = vld.sshfl [vmem:[#allocation1 + $0x10] sm:$0xff pattern:$0x73625140]  ;;  %v760_v26 = vpack.c.b16 %v758_v25, %v758_v25 }
 0x18d   : > { %790 = vmatpush.bf16.msra.mxu0 %v775_v7  ;;  %808 = vmatpush.bf16.msra.mxu1 %v777_v8  ;;  %v779_v11 = vsel %vm774_vm1, %v765_v9, 0  ;;  %v766_v12 = vld.sshfl [vmem:[#allocation1 + $0x18] sm:$0xff pattern:$0x73625140]  ;;  %v862_v30 = vpack.c.b16 %v860_v29, %v860_v29  ;;  %v1883_v31 = vld [vmem:[%s2537_s30 + $0x70] sm:$0xf] }
 0x18e   : > { %826 = vmatpush.bf16.msra.mxu2 %v779_v11  ;;  %v781_v14 = vsel %vm774_vm1, %v766_v12, 0  ;;  %v1947_v33 = vld [vmem:[%s2537_s30 + $0xf0] sm:$0xf]  ;;  %v1884_v36 = vor.u32 %v2113_v32, %v1883_v31  ;;  %v2129_v35 = vld [vmem:[%s2537_s30 + $0xf4] sm:$0xf0] }
 0x18f   : > { %844 = vmatpush.bf16.msra.mxu3 %v781_v14  ;;  %v1948_v37 = vor.u32 %v2129_v35, %v1947_v33  ;;  %v1875_v38 = vld [vmem:[%s2537_s30 + $0x60] sm:$0xf]  ;;  %v2111_v39 = vld [vmem:[%s2537_s30 + $0x64] sm:$0xf0]  ;;  %v2011_v46 = vld [vmem:[%s2537_s30 + $0x170] sm:$0xf] }
 0x190   : > { %1773 = vmatmul.msk.bf16.vlgmr.msra.gmra.mxu0 %vm767_vm2, %v2097_v10  ;;  %1775 = vmatmul.msk.bf16.vlgmr.msra.gmra.mxu1 %vm767_vm2, %v2097_v10  ;;  %v1939_v40 = vld [vmem:[%s2537_s30 + $0xe0] sm:$0xf]  ;;  %v1876_v41 = vor.u32 %v2111_v39, %v1875_v38  ;;  %v2127_v42 = vld [vmem:[%s2537_s30 + $0xe4] sm:$0xf0]  ;;  %v2145_v47 = vld [vmem:[%s2537_s30 + $0x174] sm:$0xf0] }
 0x191   : > { %916 = vmatpush.bf16.msrb.mxu0 %v1804_v63  ;;  %1777 = vmatmul.msk.bf16.vlgmr.msra.gmra.mxu2 %vm767_vm2, %v2097_v10  ;;  %v1940_v43 = vor.u32 %v2127_v42, %v1939_v40  ;;  %v2075_v34 = vld [vmem:[%s2537_s30 + $0x1f0] sm:$0xf]  ;;  %v2012_v44 = vor.u32 %v2145_v47, %v2011_v46  ;;  %v2161_v48 = vld [vmem:[%s2537_s30 + $0x1f4] sm:$0xf0]  ;;  %v2003_v45 = vld [vmem:[%s2537_s30 + $0x160] sm:$0xf] }
 0x192   : > { %952 = vmatpush.bf16.msrb.mxu2 %v1812_v6  ;;  %1779 = vmatmul.msk.bf16.vlgmr.msra.gmra.mxu3 %vm767_vm2, %v2097_v10  ;;  %v2076_v49 = vor.u32 %v2161_v48, %v2075_v34  ;;  %v1867_v51 = vld [vmem:[%s2537_s30 + $0x50] sm:$0xf]  ;;  %v2109_v52 = vld [vmem:[%s2537_s30 + $0x54] sm:$0xf0]  ;;  %v2143_v50 = vld [vmem:[%s2537_s30 + $0x164] sm:$0xf0] }
 0x193   : > { %970 = vmatpush.bf16.msrb.mxu3 %v1816_v13  ;;  %934 = vmatpush.bf16.msrb.mxu1 %v1808_v15  ;;  %v1931_v53 = vld [vmem:[%s2537_s30 + $0xd0] sm:$0xf]  ;;  %v1868_v54 = vor.u32 %v2109_v52, %v1867_v51  ;;  %v2125_v55 = vld [vmem:[%s2537_s30 + $0xd4] sm:$0xf0]  ;;  %v2004_v57 = vor.u32 %v2143_v50, %v2003_v45  ;;  %v2067_v58 = vld [vmem:[%s2537_s30 + $0x1e0] sm:$0xf] }
 0x194   : > { %v1932_v56 = vor.u32 %v2125_v55, %v1931_v53  ;;  %v2159_v59 = vld [vmem:[%s2537_s30 + $0x1e4] sm:$0xf0]  ;;  %v1859_v61 = vld [vmem:[%s2537_s30 + $0x40] sm:$0xf]  ;;  %v1995_v3 = vld [vmem:[%s2537_s30 + $0x150] sm:$0xf] }
 0x195   : > { %917 = vmatpush.bf16.msrb.mxu0 %v1788_v19  ;;  %v2068_v60 = vor.u32 %v2159_v59, %v2067_v58  ;;  %v2107_v62 = vld [vmem:[%s2537_s30 + $0x44] sm:$0xf0]  ;;  %v1923_v63 = vld [vmem:[%s2537_s30 + $0xc0] sm:$0xf]  ;;  %v2141_v4 = vld [vmem:[%s2537_s30 + $0x154] sm:$0xf0] }
 0x196   : > { %953 = vmatpush.bf16.msrb.mxu2 %v1796_v18  ;;  %v1860_v0 = vor.u32 %v2107_v62, %v1859_v61  ;;  %v2123_v1 = vld [vmem:[%s2537_s30 + $0xc4] sm:$0xf0]  ;;  %v2059_v5 = vld [vmem:[%s2537_s30 + $0x1d0] sm:$0xf]  ;;  %v1996_v8 = vor.u32 %v2141_v4, %v1995_v3  ;;  %v2157_v9 = vld [vmem:[%s2537_s30 + $0x1d4] sm:$0xf0] }
 0x197   : > { %971 = vmatpush.bf16.msrb.mxu3 %v1800_v22  ;;  %935 = vmatpush.bf16.msrb.mxu1 %v1792_v23  ;;  %v1924_v2 = vor.u32 %v2123_v1, %v1923_v63  ;;  %v2060_v10 = vor.u32 %v2157_v9, %v2059_v5  ;;  %v1851_v11 = vld [vmem:[%s2537_s30 + $0x30] sm:$0xf]  ;;  %v2105_v12 = vld [vmem:[%s2537_s30 + $0x34] sm:$0xf0]  ;;  %v1987_v17 = vld [vmem:[%s2537_s30 + $0x140] sm:$0xf] }
 0x198   : > { %v1852_v13 = vor.u32 %v2105_v12, %v1851_v11  ;;  %v1915_v14 = vld [vmem:[%s2537_s30 + $0xb0] sm:$0xf]  ;;  %v2121_v15 = vld [vmem:[%s2537_s30 + $0xb4] sm:$0xf0]  ;;  %v2139_v18 = vld [vmem:[%s2537_s30 + $0x144] sm:$0xf0] }
 0x199   : > { %1414 = vmatpush.bf16.msra.mxu0 %v1884_v36  ;;  %v1916_v16 = vor.u32 %v2121_v15, %v1915_v14  ;;  %v1988_v19 = vor.u32 %v2139_v18, %v1987_v17  ;;  %v2051_v20 = vld [vmem:[%s2537_s30 + $0x1c0] sm:$0xf]  ;;  %v2155_v21 = vld [vmem:[%s2537_s30 + $0x1c4] sm:$0xf0]  ;;  %v2137_v31 = vld [vmem:[%s2537_s30 + $0x134] sm:$0xf0] }
 0x19a   : > { %1450 = vmatpush.bf16.msra.mxu2 %v2012_v44  ;;  %v2052_v22 = vor.u32 %v2155_v21, %v2051_v20  ;;  %v1843_v23 = vld [vmem:[%s2537_s30 + $0x20] sm:$0xf]  ;;  %v2103_v24 = vld [vmem:[%s2537_s30 + $0x24] sm:$0xf0]  ;;  %v2043_v32 = vld [vmem:[%s2537_s30 + $0x1b0] sm:$0xf] }
 0x19b   : > { %1432 = vmatpush.bf16.msra.mxu1 %v1948_v37  ;;  %1468 = vmatpush.bf16.msra.mxu3 %v2076_v49  ;;  %v1907_v25 = vld [vmem:[%s2537_s30 + $0xa0] sm:$0xf]  ;;  %v2153_v37 = vld [vmem:[%s2537_s30 + $0x1b4] sm:$0xf0]  ;;  %v1835_v40 = vld [vmem:[%s2537_s30 + $0x10] sm:$0xf] }
 0x19c   : > { %v2044_v39 = vor.u32 %v2153_v37, %v2043_v32  ;;  %v2117_v46 = vld [vmem:[%s2537_s30 + $0x94] sm:$0xf0]  ;;  %v1971_v34 = vld [vmem:[%s2537_s30 + $0x120] sm:$0xf]  ;;  %v2135_v44 = vld [vmem:[%s2537_s30 + $0x124] sm:$0xf0] }
 0x19d   : > { %1415 = vmatpush.bf16.msra.mxu0 %v1876_v41  ;;  %v2101_v41 = vld [vmem:[%s2537_s30 + $0x14] sm:$0xf0]  ;;  %v2035_v48 = vld [vmem:[%s2537_s30 + $0x1a0] sm:$0xf]  ;;  %v1972_v49 = vor.u32 %v2135_v44, %v1971_v34  ;;  %v2151_v51 = vld [vmem:[%s2537_s30 + $0x1a4] sm:$0xf0] }
 0x19e   : > { %1451 = vmatpush.bf16.msra.mxu2 %v2004_v57  ;;  %v1836_v42 = vor.u32 %v2101_v41, %v1835_v40  ;;  %v2036_v52 = vor.u32 %v2151_v51, %v2035_v48  ;;  %v1827_v53 = vld [vmem:[%s2537_s30] sm:$0xf]  ;;  %v2115_v50 = vld [vmem:[%s2537_s30 + $0x84] sm:$0xf0]  ;;  %v1963_v58 = vld [vmem:[%s2537_s30 + $0x110] sm:$0xf] }
 0x19f   : > { %1433 = vmatpush.bf16.msra.mxu1 %v1940_v43  ;;  %1469 = vmatpush.bf16.msra.mxu3 %v2068_v60  ;;  %v1899_v43 = vld [vmem:[%s2537_s30 + $0x90] sm:$0xf]  ;;  %v1891_v55 = vld [vmem:[%s2537_s30 + $0x80] sm:$0xf]  ;;  %v2133_v59 = vld [vmem:[%s2537_s30 + $0x114] sm:$0xf0] }
 0x1a0   : > { %1774 = vmatmul.msk.bf16.gmra.mxu0 %vm767_vm2, %v760_v26  ;;  %1776 = vmatmul.msk.bf16.gmra.mxu1 %vm767_vm2, %v760_v26  ;;  %v1900_v47 = vor.u32 %v2117_v46, %v1899_v43  ;;  %v1892_v57 = vor.u32 %v2115_v50, %v1891_v55  ;;  %v2027_v60 = vld [vmem:[%s2537_s30 + $0x190] sm:$0xf]  ;;  %v1964_v63 = vor.u32 %v2133_v59, %v1963_v58  ;;  %v2112_v3 = vld [vmem:[%s2537_s30 + $0x74] sm:$0xf]  ;;  %v1885_v4 = vld [vmem:[%s2537_s30 + $0x78] sm:$0xf0] }
 0x1a1   : > { %1778 = vmatmul.msk.bf16.gmra.mxu2 %vm767_vm2, %v760_v26  ;;  %1416 = vmatpush.bf16.msra.mxu0 %v1868_v54  ;;  %v2099_v54 = vld [vmem:[%s2537_s30 + $0x4] sm:$0xf0]  ;;  %v2128_v5 = vld [vmem:[%s2537_s30 + $0xf4] sm:$0xf]  ;;  %v1949_v9 = vld [vmem:[%s2537_s30 + $0xf8] sm:$0xf0] }
 0x1a2   : > { %1780 = vmatmul.msk.bf16.gmra.mxu3 %vm767_vm2, %v760_v26  ;;  %1452 = vmatpush.bf16.msra.mxu2 %v1996_v8  ;;  %v1844_v26 = vor.u32 %v2103_v24, %v1843_v23  ;;  %v1828_v45 = vor.u32 %v2099_v54, %v1827_v53  ;;  %v1888_v8 = vor.u32 %v2112_v3, %v1885_v4  ;;  %v1955_v11 = vld [vmem:[%s2537_s30 + $0x100] sm:$0xf]  ;;  %v2131_v12 = vld [vmem:[%s2537_s30 + $0x104] sm:$0xf0]  ;;  %v2110_v17 = vld [vmem:[%s2537_s30 + $0x64] sm:$0xf] }
 0x1a3   : > { %1434 = vmatpush.bf16.msra.mxu1 %v1932_v56  ;;  %1470 = vmatpush.bf16.msra.mxu3 %v2060_v10  ;;  %v1952_v10 = vor.u32 %v2128_v5, %v1949_v9  ;;  %v1956_v14 = vor.u32 %v2131_v12, %v1955_v11  ;;  %v2147_v15 = vld [vmem:[%s2537_s30 + $0x184] sm:$0xf0]  ;;  %v1877_v18 = vld [vmem:[%s2537_s30 + $0x68] sm:$0xf0]  ;;  %v2144_v24 = vld [vmem:[%s2537_s30 + $0x174] sm:$0xf] }
 0x1a4   : > { %v1880_v20 = vor.u32 %v2110_v17, %v1877_v18  ;;  %v1941_v21 = vld [vmem:[%s2537_s30 + $0xe8] sm:$0xf0]  ;;  %v2108_v37 = vld [vmem:[%s2537_s30 + $0x54] sm:$0xf]  ;;  %v2142_v43 = vld [vmem:[%s2537_s30 + $0x164] sm:$0xf] }
 0x1a5   : > { %1417 = vmatpush.bf16.msra.mxu0 %v1860_v0  ;;  %v2149_v0 = vld [vmem:[%s2537_s30 + $0x194] sm:$0xf0]  ;;  %v2124_v40 = vld [vmem:[%s2537_s30 + $0xd4] sm:$0xf]  ;;  %v2005_v46 = vld [vmem:[%s2537_s30 + $0x168] sm:$0xf0] }
 0x1a6   : > { %1453 = vmatpush.bf16.msra.mxu2 %v1988_v19  ;;  %v2126_v19 = vld [vmem:[%s2537_s30 + $0xe4] sm:$0xf]  ;;  %v2008_v34 = vor.u32 %v2142_v43, %v2005_v46  ;;  %v2069_v48 = vld [vmem:[%s2537_s30 + $0x1e8] sm:$0xf0]  ;;  %v1997_v58 = vld [vmem:[%s2537_s30 + $0x158] sm:$0xf0] }
 0x1a7   : > { %1435 = vmatpush.bf16.msra.mxu1 %v1924_v2  ;;  %1471 = vmatpush.bf16.msra.mxu3 %v2052_v22  ;;  %v2028_v2 = vor.u32 %v2149_v0, %v2027_v60  ;;  %v1944_v23 = vor.u32 %v2126_v19, %v1941_v21  ;;  %v2158_v44 = vld [vmem:[%s2537_s30 + $0x1e4] sm:$0xf]  ;;  %v1925_v55 = vld [vmem:[%s2537_s30 + $0xc8] sm:$0xf0]  ;;  %v2156_v59 = vld [vmem:[%s2537_s30 + $0x1d4] sm:$0xf] }
 0x1a8   : > { %v2106_v51 = vld [vmem:[%s2537_s30 + $0x44] sm:$0xf]  ;;  %v2770_v0 = vld [vmem:[%s564_s13] sm:$0xf]  ;;  %v2061_v3 = vld [vmem:[%s2537_s30 + $0x1d8] sm:$0xf0] }
 0x1a9   : > { %1418 = vmatpush.bf16.msra.mxu0 %v1852_v13  ;;  %v2019_v13 = vld [vmem:[%s2537_s30 + $0x180] sm:$0xf]  ;;  %v2122_v53 = vld [vmem:[%s2537_s30 + $0xc4] sm:$0xf]  ;;  %v2064_v5 = vor.u32 %v2156_v59, %v2061_v3  ;;  %v1853_v9 = vld [vmem:[%s2537_s30 + $0x38] sm:$0xf0] }
 0x1aa   : > { %v1928_v50 = vor.u32 %v2122_v53, %v1925_v55  ;;  %v1917_v12 = vld [vmem:[%s2537_s30 + $0xb8] sm:$0xf0]  ;;  %v2154_v17 = vld [vmem:[%s2537_s30 + $0x1c4] sm:$0xf]  ;;  %v2053_v18 = vld [vmem:[%s2537_s30 + $0x1c8] sm:$0xf0] }
 0x1ab   : > { %1436 = vmatpush.bf16.msra.mxu1 %v1916_v16  ;;  %1472 = vmatpush.bf16.msra.mxu3 %v2044_v39  ;;  %v2020_v16 = vor.u32 %v2147_v15, %v2019_v13  ;;  %v1869_v39 = vld [vmem:[%s2537_s30 + $0x58] sm:$0xf0]  ;;  %v2138_v13 = vld [vmem:[%s2537_s30 + $0x144] sm:$0xf]  ;;  %v1845_v21 = vld [vmem:[%s2537_s30 + $0x28] sm:$0xf0] }
 0x1ac   : > { %v1872_v41 = vor.u32 %v2108_v37, %v1869_v39  ;;  %v2102_v19 = vld [vmem:[%s2537_s30 + $0x24] sm:$0xf]  ;;  %v2136_v37 = vld [vmem:[%s2537_s30 + $0x134] sm:$0xf]  ;;  %v2045_v43 = vld [vmem:[%s2537_s30 + $0x1b8] sm:$0xf0] }
 0x1ad   : > { %1419 = vmatpush.bf16.msra.mxu0 %v1844_v26  ;;  %v2160_v26 = vld [vmem:[%s2537_s30 + $0x1f4] sm:$0xf]  ;;  %v1901_v55 = vld [vmem:[%s2537_s30 + $0x98] sm:$0xf0]  ;;  %v2150_v59 = vld [vmem:[%s2537_s30 + $0x1a4] sm:$0xf] }
 0x1ae   : > { %v2152_v39 = vld [vmem:[%s2537_s30 + $0x1b4] sm:$0xf]  ;;  %s2916_s13 = sld [smem:[#allocation22_spill]] (!%p2081_p2) }
 0x1af   : > { %1473 = vmatpush.bf16.msra.mxu3 %v2036_v52  ;;  %v1861_v52 = vld [vmem:[%s2537_s30 + $0x48] sm:$0xf0] }
 0x1b0   : > { %1817 = vmatmul.msk.bf16.vlgmr.msrb.gmra.mxu0 %vm903_vm3, %v2088_v27  ;;  %1819 = vmatmul.msk.bf16.vlgmr.msrb.gmra.mxu1 %vm903_vm3, %v2088_v27  ;;  %v1864_v54 = vor.u32 %v2106_v51, %v1861_v52  ;;  %v2116_v51 = vld [vmem:[%s2537_s30 + $0x94] sm:$0xf] }
 0x1b1   : > { %1821 = vmatmul.msk.bf16.vlgmr.msrb.gmra.mxu2 %vm903_vm3, %v2088_v27  ;;  %1420 = vmatpush.bf16.msra.mxu0 %v1836_v42  ;;  %v1933_v42 = vld [vmem:[%s2537_s30 + $0xd8] sm:$0xf0] }
 0x1b2   : > { %1823 = vmatmul.msk.bf16.vlgmr.msrb.gmra.mxu3 %vm903_vm3, %v2088_v27  ;;  %v2119_v27 = vld [vmem:[%s2537_s30 + $0xa4] sm:$0xf0] }
 0x1b3   : > { %v1908_v29 = vor.u32 %v2119_v27, %v1907_v25  ;;  %1474 = vmatpush.bf16.msra.mxu3 %v2028_v2  ;;  %v2013_v25 = vld [vmem:[%s2537_s30 + $0x178] sm:$0xf0] }
 0x1b5   : > { %1437 = vmatpush.bf16.msra.mxu1 %v1908_v29  ;;  %1421 = vmatpush.bf16.msra.mxu0 %v1828_v45 }
 0x1b7   : > { %1475 = vmatpush.bf16.msra.mxu3 %v2020_v16 }
 0x1b9   : > { %1438 = vmatpush.bf16.msra.mxu1 %v1900_v47  ;;  %1486 = vmatpush.bf16.msrb.mxu0 %v1888_v8  ;;  %v1936_v47 = vor.u32 %v2124_v40, %v1933_v42  ;;  %v2104_v8 = vld [vmem:[%s2537_s30 + $0x34] sm:$0xf]  ;;  %v2797_v40 = vperm.slane %v2770_v0, 2 }
 0x1ba   : > { %v1856_v11 = vor.u32 %v2104_v8, %v1853_v9  ;;  %v2114_v8 = vld [vmem:[%s2537_s30 + $0x84] sm:$0xf] }
 0x1bd   : > { %1439 = vmatpush.bf16.msra.mxu1 %v1892_v57  ;;  %1487 = vmatpush.bf16.msrb.mxu0 %v1880_v20  ;;  %v2140_v57 = vld [vmem:[%s2537_s30 + $0x154] sm:$0xf]  ;;  %v2056_v20 = vor.u32 %v2154_v17, %v2053_v18 }
 0x1be   : > { %v2000_v2 = vor.u32 %v2140_v57, %v1997_v58  ;;  %v1904_v57 = vor.u32 %v2116_v51, %v1901_v55  ;;  %v2148_v17 = vld [vmem:[%s2537_s30 + $0x194] sm:$0xf] }
 0x1c0   : > { %1818 = vmatmul.msk.bf16.gmra.mxu0 %vm903_vm3, %v862_v30  ;;  %1820 = vmatmul.msk.bf16.gmra.mxu1 %vm903_vm3, %v862_v30 }
 0x1c1   : > { %1822 = vmatmul.msk.bf16.gmra.mxu2 %vm903_vm3, %v862_v30  ;;  %1504 = vmatpush.bf16.msrb.mxu1 %v1952_v10  ;;  %v2120_v10 = vld [vmem:[%s2537_s30 + $0xb4] sm:$0xf] }
 0x1c2   : > { %1824 = vmatmul.msk.bf16.gmra.mxu3 %vm903_vm3, %v862_v30  ;;  %v1979_v30 = vld [vmem:[%s2537_s30 + $0x130] sm:$0xf]  ;;  %1488 = vmatpush.bf16.msrb.mxu0 %v1872_v41  ;;  %v1920_v15 = vor.u32 %v2120_v10, %v1917_v12 }
 0x1c3   : > { %v1980_v35 = vor.u32 %v2137_v31, %v1979_v30  ;;  %v2016_v30 = vor.u32 %v2144_v24, %v2013_v25  ;;  %v2077_v31 = vld [vmem:[%s2537_s30 + $0x1f8] sm:$0xf0]  ;;  %v1909_v24 = vld [vmem:[%s2537_s30 + $0xa8] sm:$0xf0] }
 0x1c5   : > { %1454 = vmatpush.bf16.msra.mxu2 %v1980_v35  ;;  %1505 = vmatpush.bf16.msrb.mxu1 %v1944_v23  ;;  %v2080_v35 = vor.u32 %v2160_v26, %v2077_v31  ;;  %v2118_v23 = vld [vmem:[%s2537_s30 + $0xa4] sm:$0xf]  ;;  %v2787_v26 = vperm.slane %v2770_v0, 0 }
 0x1c6   : > { %1489 = vmatpush.bf16.msrb.mxu0 %v1864_v54 }
 0x1c7   : > { %1540 = vmatpush.bf16.msrb.mxu3 %v2080_v35 }
 0x1c9   : > { %1455 = vmatpush.bf16.msra.mxu2 %v1972_v49  ;;  %v2072_v49 = vor.u32 %v2158_v44, %v2069_v48  ;;  %1506 = vmatpush.bf16.msrb.mxu1 %v1936_v47  ;;  %v2048_v44 = vor.u32 %v2152_v39, %v2045_v43  ;;  %v2100_v48 = vld [vmem:[%s2537_s30 + $0x14] sm:$0xf]  ;;  %v2130_v39 = vld [vmem:[%s2537_s30 + $0x104] sm:$0xf] }
 0x1ca   : > { %1490 = vmatpush.bf16.msrb.mxu0 %v1856_v11 }
 0x1cb   : > { %1541 = vmatpush.bf16.msrb.mxu3 %v2072_v49  ;;  %v1837_v49 = vld [vmem:[%s2537_s30 + $0x18] sm:$0xf0] }
 0x1cc   : > { %v1840_v54 = vor.u32 %v2100_v48, %v1837_v49 }
 0x1cd   : > { %1456 = vmatpush.bf16.msra.mxu2 %v1964_v63  ;;  %1507 = vmatpush.bf16.msrb.mxu1 %v1928_v50 }
 0x1cf   : > { %1542 = vmatpush.bf16.msrb.mxu3 %v2064_v5  ;;  %v1829_v5 = vld [vmem:[%s2537_s30 + $0x8] sm:$0xf0] }
 0x1d1   : > { %1457 = vmatpush.bf16.msra.mxu2 %v1956_v14  ;;  %v1989_v14 = vld [vmem:[%s2537_s30 + $0x148] sm:$0xf0]  ;;  %1508 = vmatpush.bf16.msrb.mxu1 %v1920_v15 }
 0x1d2   : > { %v1992_v16 = vor.u32 %v2138_v13, %v1989_v14  ;;  %v1893_v13 = vld [vmem:[%s2537_s30 + $0x88] sm:$0xf0] }
 0x1d3   : > { %1543 = vmatpush.bf16.msrb.mxu3 %v2056_v20  ;;  %v1896_v15 = vor.u32 %v2114_v8, %v1893_v13  ;;  %v1016_v13 = vld [vmem:[#allocation4 + $0x28] sm:$0xff] }
 0x1d5   : > { %1522 = vmatpush.bf16.msrb.mxu2 %v2016_v30  ;;  %v1912_v30 = vor.u32 %v2118_v23, %v1909_v24 }
 0x1d7   : > { %1509 = vmatpush.bf16.msrb.mxu1 %v1912_v30  ;;  %1544 = vmatpush.bf16.msrb.mxu3 %v2048_v44 }
 0x1d9   : > { %1523 = vmatpush.bf16.msrb.mxu2 %v2008_v34 }
 0x1db   : > { %1510 = vmatpush.bf16.msrb.mxu1 %v1904_v57 }
 0x1dd   : > { %1524 = vmatpush.bf16.msrb.mxu2 %v2000_v2 }
 0x1df   : > { %1511 = vmatpush.bf16.msrb.mxu1 %v1896_v15 }
 0x1e1   : > { %1525 = vmatpush.bf16.msrb.mxu2 %v1992_v16  ;;  %v1965_v16 = vld [vmem:[%s2537_s30 + $0x118] sm:$0xf0] }
 0x20d   : > { %v2677_v6 = vpop.f32.mrf.mxu0  ;;  %v2679_v7 = vpop.f32.mrf.mxu1 }
 0x214   : > { %v2694_v28 = vpop.f32.mrf.mxu2 }
 0x215   : > { %v2699_v33 = vpop.f32.mrf.mxu3  ;;  %v2701_v36 = vpop.f32.mrf.mxu0 }
 0x216   : > { %v2704_v38 = vpop.f32.mrf.mxu1 }
 0x21c   : > { %v2718_v56 = vpop.f32.mrf.mxu2 }
 0x21d   : > { %v2723_v61 = vpop.f32.mrf.mxu3  ;;  %v2725_v62 = vpop.f32.mrf.mxu0 }
 0x21e   : > { %v2728_v1 = vpop.f32.mrf.mxu1 }
 0x224   : > { %v2742_v22 = vpop.f32.mrf.mxu2 }
 0x225   : > { %v2747_v27 = vpop.f32.mrf.mxu3  ;;  %v799_v29 = vpop.f32.mrf.mxu0 }
 0x226   : > { %v817_v32 = vpop.f32.mrf.mxu1  ;;  %v1848_v29 = vor.u32 %v2102_v19, %v1845_v21  ;;  %v2029_v21 = vld [vmem:[%s2537_s30 + $0x198] sm:$0xf0] }
 0x227   : > { %v2791_v32 = vperm.slane %v2770_v0, 1  ;;  %v2032_v30 = vor.u32 %v2148_v17, %v2029_v21 }
 0x228   : > { %1491 = vmatpush.bf16.msrb.mxu0 %v1848_v29 }
 0x22c   : > { %v835_v45 = vpop.f32.mrf.mxu2  ;;  %1492 = vmatpush.bf16.msrb.mxu0 %v1840_v54 }
 0x22d   : > { %v853_v60 = vpop.f32.mrf.mxu3  ;;  %v919_v63 = vpop.f32.mrf.mxu0  ;;  %v2134_v45 = vld [vmem:[%s2537_s30 + $0x124] sm:$0xf] }
 0x22e   : > { %v937_v4 = vpop.f32.mrf.mxu1  ;;  %v920_v25 = vadd.f32 %v919_v63, %v2677_v6  ;;  %v1981_v6 = vld [vmem:[%s2537_s30 + $0x138] sm:$0xf0]  ;;  %v2037_v60 = vld [vmem:[%s2537_s30 + $0x1a8] sm:$0xf0]  ;;  %v2098_v63 = vld [vmem:[%s2537_s30 + $0x4] sm:$0xf] }
 0x22f   : > { %v938_v31 = vadd.f32 %v937_v4, %v2679_v7  ;;  %v1984_v7 = vor.u32 %v2136_v37, %v1981_v6  ;;  %v2040_v4 = vor.u32 %v2150_v59, %v2037_v60  ;;  %v1832_v12 = vor.u32 %v2098_v63, %v1829_v5 }
 0x230   : > { %v992_v46 = vadd.f32 %v2787_v26, %v920_v25 }
 0x231   : > { %v993_v52 = vadd.f32 %v2791_v32, %v938_v31  ;;  %1526 = vmatpush.bf16.msrb.mxu2 %v1984_v7  ;;  %1545 = vmatpush.bf16.msrb.mxu3 %v2040_v4 }
 0x232   : > { %v1004_v9 = vmax.f32 %v992_v46, 0.0  ;;  %1493 = vmatpush.bf16.msrb.mxu0 %v1832_v12  ;;  %v2021_v46 = vld [vmem:[%s2537_s30 + $0x188] sm:$0xf0] }
 0x233   : > { %v1005_v14 = vmax.f32 %v993_v52, 0.0 }
 0x234   : > { %v955_v35 = vpop.f32.mrf.mxu2 }
 0x235   : > { %v973_v41 = vpop.f32.mrf.mxu3  ;;  %v921_v42 = vpop.f32.mrf.mxu0  ;;  %v956_v2 = vadd.f32 %v955_v35, %v2694_v28  ;;  %v2132_v28 = vld [vmem:[%s2537_s30 + $0x114] sm:$0xf]  ;;  %1546 = vmatpush.bf16.msrb.mxu3 %v2032_v30 }
 0x236   : > { %v922_v47 = vadd.f32 %v921_v42, %v2701_v36  ;;  %v939_v34 = vpop.f32.mrf.mxu1  ;;  %v1973_v36 = vld [vmem:[%s2537_s30 + $0x128] sm:$0xf0]  ;;  %v974_v10 = vadd.f32 %v973_v41, %v2699_v33  ;;  %v1968_v20 = vor.u32 %v2132_v28, %v1965_v16 }
 0x237   : > { %v940_v53 = vadd.f32 %v939_v34, %v2704_v38  ;;  %v1976_v58 = vor.u32 %v2134_v45, %v1973_v36  ;;  %v2816_v38 = vperm.slane %v2770_v0, 3  ;;  %v994_v33 = vadd.f32 %v2797_v40, %v956_v2  ;;  %v1957_v41 = vld [vmem:[%s2537_s30 + $0x108] sm:$0xf0] }
 0x238   : > { %v996_v50 = vadd.f32 %v2787_v26, %v922_v47  ;;  %v1960_v43 = vor.u32 %v2130_v39, %v1957_v41 }
 0x239   : > { %v997_v3 = vadd.f32 %v2791_v32, %v940_v53  ;;  %1527 = vmatpush.bf16.msrb.mxu2 %v1976_v58  ;;  %v995_v31 = vadd.f32 %v2816_v38, %v974_v10  ;;  %v1006_v47 = vmax.f32 %v994_v33, 0.0 }
 0x23a   : > { %v1008_v11 = vmax.f32 %v996_v50, 0.0 }
 0x23b   : > { %v1009_v0 = vmax.f32 %v997_v3, 0.0  ;;  %v1007_v48 = vmax.f32 %v995_v31, 0.0 }
 0x23c   : > { %v2826_v18 = vpack.c.bf16 %v1008_v11, %v1004_v9  ;;  %v957_v19 = vpop.f32.mrf.mxu2 }
 0x23d   : > { %v1023_v23 = vpack.c.bf16 %v1009_v0, %v1005_v14  ;;  %v958_v24 = vadd.f32 %v957_v19, %v2718_v56  ;;  %v975_v25 = vpop.f32.mrf.mxu3  ;;  %v924_v29 = vpop.f32.mrf.mxu0  ;;  %1528 = vmatpush.bf16.msrb.mxu2 %v1968_v20  ;;  %v2146_v56 = vld [vmem:[%s2537_s30 + $0x184] sm:$0xf]  ;;  %v1018_v20 = vld [vmem:[#allocation4 + $0x8] sm:$0xff] }
 0x23e   : > { %v976_v35 = vadd.f32 %v975_v25, %v2723_v61  ;;  %v942_v37 = vpop.f32.mrf.mxu1  ;;  %1422 = vmatmul.bf16.vlgmr.msra.gmra.mxu0 %v2826_v18  ;;  %v925_v7 = vadd.f32 %v924_v29, %v2725_v62  ;;  %v2024_v44 = vor.u32 %v2146_v56, %v2021_v46 }
 0x23f   : > { %v998_v6 = vadd.f32 %v2797_v40, %v958_v24  ;;  %1440 = vmatmul.bf16.vlgmr.msra.gmra.mxu1 %v1023_v23  ;;  %v943_v34 = vadd.f32 %v942_v37, %v2728_v1 }
 0x240   : > { %v999_v42 = vadd.f32 %v2816_v38, %v976_v35  ;;  %v1000_v54 = vadd.f32 %v2787_v26, %v925_v7  ;;  %1547 = vmatpush.bf16.msrb.mxu3 %v2024_v44  ;;  %v1020_v35 = vld [vmem:[#allocation4 + $0x18] sm:$0xf]  ;;  %v1017_v44 = vld [vmem:[#allocation4 + $0x10] sm:$0xff] }
 0x241   : > { %v1010_v61 = vmax.f32 %v998_v6, 0.0  ;;  %1529 = vmatpush.bf16.msrb.mxu2 %v1960_v43  ;;  %v1001_v62 = vadd.f32 %v2791_v32, %v943_v34 }
 0x242   : > { %v1011_v49 = vmax.f32 %v999_v42, 0.0  ;;  %v1012_v57 = vmax.f32 %v1000_v54, 0.0 }
 0x243   : > { %v1024_v51 = vpack.c.bf16 %v1010_v61, %v1006_v47  ;;  %v1013_v58 = vmax.f32 %v1001_v62, 0.0 }
 0x244   : > { %v1025_v52 = vpack.c.bf16 %v1011_v49, %v1007_v48  ;;  %v960_v53 = vpop.f32.mrf.mxu2  ;;  %v1026_v63 = vpack.c.bf16 %v1012_v57, %v1012_v57 }
 0x245   : > { %v978_v55 = vpop.f32.mrf.mxu3  ;;  %1458 = vmatmul.bf16.vlgmr.msra.gmra.mxu2 %v1024_v51  ;;  %v926_v45 = vpop.f32.mrf.mxu0  ;;  %v961_v50 = vadd.f32 %v960_v53, %v2742_v22  ;;  %v1027_v3 = vpack.c.bf16 %v1013_v58, %v1013_v58 }
 0x246   : > { %1476 = vmatmul.bf16.vlgmr.msra.gmra.mxu3 %v1025_v52  ;;  %v944_v36 = vpop.f32.mrf.mxu1  ;;  %v979_v1 = vadd.f32 %v978_v55, %v2747_v27  ;;  %v1019_v45 = vld [vmem:[#allocation4] sm:$0xff] }
 0x247   : > { %v1002_v59 = vadd.f32 %v2797_v40, %v961_v50 }
 0x248   : > { %v1003_v26 = vadd.f32 %v2816_v38, %v979_v1 }
 0x249   : > { %v1014_v32 = vmax.f32 %v1002_v59, 0.0 }
 0x24a   : > { %v1015_v4 = vmax.f32 %v1003_v26, 0.0  ;;  %v1021_v26 = vld [vmem:[#allocation4 + $0x20] sm:$0xf] }
 0x24b   : > { %v1028_v5 = vpack.c.bf16 %v1014_v32, %v1014_v32 }
 0x24c   : > { %v962_v60 = vpop.f32.mrf.mxu2  ;;  %v1029_v8 = vpack.c.bf16 %v1015_v4, %v1015_v4 }
 0x24d   : > { %v980_v2 = vpop.f32.mrf.mxu3 }
 0x24e   : > { %1427 = vmatmul.bf16.gmra.mxu0 %v1026_v63 }
 0x24f   : > { %1445 = vmatmul.bf16.gmra.mxu1 %v1027_v3 }
 0x255   : > { %1463 = vmatmul.bf16.gmra.mxu2 %v1028_v5 }
 0x256   : > { %1481 = vmatmul.bf16.gmra.mxu3 %v1029_v8 }
 0x25e   : > { %1494 = vmatmul.bf16.vlgmr.msrb.gmra.mxu0 %v2826_v18 }
 0x25f   : > { %1512 = vmatmul.bf16.vlgmr.msrb.gmra.mxu1 %v1023_v23 }
 0x265   : > { %1530 = vmatmul.bf16.vlgmr.msrb.gmra.mxu2 %v1024_v51 }
 0x266   : > { %1548 = vmatmul.bf16.vlgmr.msrb.gmra.mxu3 %v1025_v52 }
 0x26e   : > { %1499 = vmatmul.bf16.gmra.mxu0 %v1026_v63 }
 0x26f   : > { %1517 = vmatmul.bf16.gmra.mxu1 %v1027_v3 }
 0x275   : > { %1535 = vmatmul.bf16.gmra.mxu2 %v1028_v5 }
 0x276   : > { %1553 = vmatmul.bf16.gmra.mxu3 %v1029_v8 }
 0x2bb   : > { %v1423_v22 = vpop.f32.mrf.mxu0 }
 0x2bc   : > { %v1441_v27 = vpop.f32.mrf.mxu1 }
 0x2bd   : > { %v1442_v9 = vadd.f32 %v1441_v27, %v1423_v22 }
 0x2c3   : > { %v1425_v40 = vpop.f32.mrf.mxu0 }
 0x2c4   : > { %v1443_v38 = vpop.f32.mrf.mxu1 }
 0x2c5   : > { %v1444_v16 = vadd.f32 %v1443_v38, %v1425_v40 }
 0x2c8   : > { %v1459_v10 = vpop.f32.mrf.mxu2 }
 0x2c9   : > { %v1460_v11 = vadd.f32 %v1459_v10, %v1442_v9  ;;  %v1477_v12 = vpop.f32.mrf.mxu3 }
 0x2cb   : > { %v1478_v28 = vadd.f32 %v1477_v12, %v1460_v11  ;;  %v1428_v14 = vpop.f32.mrf.mxu0 }
 0x2cc   : > { %v1446_v0 = vpop.f32.mrf.mxu1 }
 0x2cd   : > { %v1558_v15 = vadd.f32 %v1478_v28, %v1016_v13  ;;  %v1447_v25 = vadd.f32 %v1446_v0, %v1428_v14 }
 0x2cf   : > { %1564 = vst [vmem:[#allocation4 + $0x28] sm:$0xff] %v1558_v15 }
 0x2d0   : > { %v1461_v17 = vpop.f32.mrf.mxu2 }
 0x2d1   : > { %v1462_v18 = vadd.f32 %v1461_v17, %v1444_v16  ;;  %v1479_v19 = vpop.f32.mrf.mxu3 }
 0x2d3   : > { %v1480_v21 = vadd.f32 %v1479_v19, %v1462_v18  ;;  %v1430_v33 = vpop.f32.mrf.mxu0 }
 0x2d4   : > { %v1448_v23 = vpop.f32.mrf.mxu1 }
 0x2d5   : > { %v1560_v24 = vadd.f32 %v1480_v21, %v1018_v20 }
 0x2d7   : > { %1566 = vst [vmem:[#allocation4 + $0x8] sm:$0xff] %v1560_v24 }
 0x2d8   : > { %v1464_v29 = vpop.f32.mrf.mxu2 }
 0x2d9   : > { %v1465_v30 = vadd.f32 %v1464_v29, %v1447_v25  ;;  %v1482_v31 = vpop.f32.mrf.mxu3 }
 0x2db   : > { %v1483_v37 = vadd.f32 %v1482_v31, %v1465_v30  ;;  %v1495_v6 = vpop.f32.mrf.mxu0 }
 0x2dc   : > { %v1513_v39 = vpop.f32.mrf.mxu1 }
 0x2dd   : > { %v1562_v41 = vadd.f32 %v1483_v37, %v1020_v35  ;;  %v1514_v46 = vadd.f32 %v1513_v39, %v1495_v6 }
 0x2df   : > { %1568 = vst [vmem:[#allocation4 + $0x18] sm:$0xf] %v1562_v41 }
 0x2e0   : > { %v1466_v56 = vpop.f32.mrf.mxu2 }
 0x2e1   : > { %v1484_v42 = vpop.f32.mrf.mxu3 }
 0x2e3   : > { %v1497_v7 = vpop.f32.mrf.mxu0 }
 0x2e4   : > { %v1515_v43 = vpop.f32.mrf.mxu1 }
 0x2e5   : > { %v1516_v53 = vadd.f32 %v1515_v43, %v1497_v7 }
 0x2e8   : > { %v1531_v47 = vpop.f32.mrf.mxu2 }
 0x2e9   : > { %v1532_v61 = vadd.f32 %v1531_v47, %v1514_v46  ;;  %v1549_v34 = vpop.f32.mrf.mxu3 }
 0x2eb   : > { %v1550_v48 = vadd.f32 %v1549_v34, %v1532_v61  ;;  %v1500_v49 = vpop.f32.mrf.mxu0 }
 0x2ec   : > { %v1518_v51 = vpop.f32.mrf.mxu1 }
 0x2ed   : > { %v1559_v52 = vadd.f32 %v1550_v48, %v1017_v44  ;;  %v1519_v58 = vadd.f32 %v1518_v51, %v1500_v49 }
 0x2ef   : > { %1565 = vst [vmem:[#allocation4 + $0x10] sm:$0xff] %v1559_v52 }
 0x2f0   : > { %v1533_v54 = vpop.f32.mrf.mxu2 }
 0x2f1   : > { %v1534_v55 = vadd.f32 %v1533_v54, %v1516_v53  ;;  %v1551_v62 = vpop.f32.mrf.mxu3 }
 0x2f3   : > { %v1552_v36 = vadd.f32 %v1551_v62, %v1534_v55  ;;  %v1502_v50 = vpop.f32.mrf.mxu0 }
 0x2f4   : > { %v1520_v1 = vpop.f32.mrf.mxu1 }
 0x2f5   : > { %v1561_v57 = vadd.f32 %v1552_v36, %v1019_v45 }
 0x2f7   : > { %1567 = vst [vmem:[#allocation4] sm:$0xff] %v1561_v57 }
 0x2f8   : > { %v1536_v59 = vpop.f32.mrf.mxu2 }
 0x2f9   : > { %v1537_v60 = vadd.f32 %v1536_v59, %v1519_v58  ;;  %v1554_v63 = vpop.f32.mrf.mxu3 }
 0x2fb   : > { %v1555_v2 = vadd.f32 %v1554_v63, %v1537_v60 }
 0x2fd   : > { %v1563_v3 = vadd.f32 %v1555_v2, %v1021_v26  ;;  %1573 = sbr.rel (%p2081_p2) target bundleno = 781 (0x30d), region = 103 }
 0x2ff   : > { %1569 = vst [vmem:[#allocation4 + $0x20] sm:$0xf] %v1563_v3 }
 0x300   : > { %v1538_v32 = vpop.f32.mrf.mxu2 }
 0x301   : > { %v1556_v4 = vpop.f32.mrf.mxu3 }
 0x302   : > { %v1574_v5 = vld [vmem:[#allocation4 + $0x28] sm:$0xff]  ;;  %v1580_v8 = vld [vmem:[%s2916_s13] sm:$0x3]  ;;  %v1575_v22 = vld [vmem:[#allocation4 + $0x10] sm:$0xff] }
 0x303   : > { %v1582_v27 = vperm.slane %v1580_v8, 0  ;;  %v1583_v40 = vperm.slane %v1580_v8, 1  ;;  %v1576_v38 = vld [vmem:[#allocation4 + $0x8] sm:$0xff]  ;;  %v1577_v9 = vld [vmem:[#allocation4] sm:$0xff]  ;;  %v1578_v10 = vld [vmem:[#allocation4 + $0x18] sm:$0xf] }
 0x305   : > { %v1586_v11 = vadd.f32 %v1582_v27, %v1574_v5  ;;  %v1587_v12 = vadd.f32 %v1583_v40, %v1575_v22  ;;  %v1588_v13 = vadd.f32 %v1582_v27, %v1576_v38  ;;  %v1589_v14 = vadd.f32 %v1583_v40, %v1577_v9 }
 0x306   : > { %v1579_v28 = vld [vmem:[#allocation4 + $0x20] sm:$0xf]  ;;  %v1590_v0 = vadd.f32 %v1582_v27, %v1578_v10 }
 0x307   : > { %1592 = vst [vmem:[%s2563_s23] sm:$0xff] %v1586_v11  ;;  %v1591_v15 = vadd.f32 %v1583_v40, %v1579_v28 }
 0x308   : > { %1593 = vst [vmem:[%s2563_s23 + $0x8] sm:$0xff] %v1587_v12 }
 0x309   : > { %1594 = vst [vmem:[%s2563_s23 + $0x10] sm:$0xff] %v1588_v13 }
 0x30a   : > { %1595 = vst [vmem:[%s2563_s23 + $0x18] sm:$0xff] %v1589_v14 }
 0x30b   : > { %1596 = vst [vmem:[%s2563_s23 + $0x20] sm:$0xf] %v1590_v0 }
 0x30c   : > { %1597 = vst [vmem:[%s2563_s23 + $0x28] sm:$0xf] %v1591_v15 }
 0x30d PF: > { %s27_s24 = sadd.s32 1, %s2375_s24   ;;  %s2917_s20 = sld [smem:[#allocation12_spill]] }
 0x30e   : > { %p24_p3 = scmp.ge.s32.totalorder %s27_s24, 10   ;;  %s2918_s19 = sld [smem:[#allocation16_spill]] }
 0x30f   : > { %s2919_s21 = sld [smem:[#allocation13_spill]]  ;;  %s2922_s17 = smov %s2351_s18 }
 0x310   : > { %s2920_s5 = sld [smem:[#allocation14_spill]] }
 0x311   : > { %s2921_s23 = sld [smem:[#allocation15_spill]] }
 0x312   :  { %26 = sbr.rel (!%p24_p3) target bundleno = 14 (0xe), region = 165 }
 0x313   : > { %s2923_s18 = smov %s2917_s20  ;;  %s2924_s20 = smov %s2367_s22 }
 0x316   : > { %s2925_s22 = smov %s2920_s5 }
 0x317   :  { %1619 = vsyncpa [#allocation7], 1 }
 0x318   :  { %1621 = vsyncpa [#allocation7 + $0x1], 1 }
 0x319   :  { %1622 = vsyncpa [#allocation9], 1 }
 0x31a   :  { %1624 = vsyncpa [#allocation9 + $0x1], 1 }

// kernel: a_call__.2
= control target key start
LH: loop header
LB: loop body
LE: loop exit
PB: predicated region body
PF: predicated region fallthrough
CT: control target
= control target key end

     0   :  { %11 = vsyncpa [#allocation5], 0  ;;  %s7295_s0 = inlined_call_operand.vmem [shape: bf16[2,2,2,512], index: 0, kind: input, shape index: {}]   ;;  %s7296_s1 = inlined_call_operand.hbm [shape: bf16[8,512,128], index: 1, kind: input, shape index: {}]   ;;  %s7297_s2 = inlined_call_operand.vmem [shape: f32[1,128], index: 2, kind: input, shape index: {}, may-alias: {2,5}]   ;;  %s7298_s3 = inlined_call_operand.hbm [shape: bf16[512,256], index: 3, kind: input, shape index: {}]   ;;  %s7299_s4 = inlined_call_operand.hbm [shape: bf16[9,128,128], index: 4, kind: input, shape index: {}]   ;;  %s7300_s5 = inlined_call_operand.vmem [shape: f32[1,128], index: 5, kind: input, shape index: {}, may-alias: {2,5}]   ;;  %s7301_s6 = inlined_call_operand.vmem [shape: f32[2,2,2,128], index: 6, kind: output, shape index: {}]  }
   0x1   :  { %12 = vsyncpa [#allocation7], 0  ;;  %s6974_s21 = smov 0  }
   0x2 LB: > { %s208_s24 = sshll.u32 %s7298_s3, 4  ;;  %s6983_s25 = sadd.s32 4294967295, %s6929_s21   ;;  %s6929_s21 = sphi %s6974_s21, %s18_s21   ;;  %s209_s24 = int_to_ptr.hbm [resolvable:$true] %s208_s24 }
   0x3   : > { %p4791_p0 = scmp.ge.s32.totalorder %s6929_s21, 1  ;;  %p180_p1 = scmp.lt.s32.totalorder %s6929_s21, 3 }
   0x4   : > { %p6800_p2 = scmp.eq.s32.totalorder %s6983_s25, 0  ;;  %s6931_s27 = smov [#allocation6]  }
   0x5   : > { %p6988_p3 = pnand %p4791_p0, %p180_p1  ;;  %s210_s28 = sshll.u32 %s6931_s27, 4  ;;  %s211_s28 = int_to_ptr.vmem [resolvable:$true] %s210_s28 }
   0x6   : > { %s191_s7 = sshll.u32 %s7296_s1, 4  ;;  %s6932_s9 = smov [#allocation4]   ;;  %s192_s7 = int_to_ptr.hbm [resolvable:$true] %s191_s7 }
   0x7   : > { %p6790_p4 = pneg %p6988_p3  ;;  %s193_s10 = sshll.u32 %s6932_s9, 4  ;;  %s194_s10 = int_to_ptr.vmem [resolvable:$true] %s193_s10 }
   0x8   : > { %s6933_s11 = smov 128   ;;  %s6934_s12 = smov 8  }
   0x9   : > { %p6999_p5 = pnand %p6800_p2, %p6790_p4  ;;  %s222_s15 = sshll.u32 %s7299_s4, 4  ;;  %s223_s15 = int_to_ptr.hbm [resolvable:$true] %s222_s15 }
   0xa   : > { %s6935_s16 = smov 64   ;;  %s6936_s17 = smov 4  }
   0xb   : > { %6796 = dma.hbm_to_vmem [thread:$0]  (!%p6999_p5), %s209_s24, 8192, %s211_s28, [#allocation7], %s6933_s11, %s6933_s11, %s6934_s12  }
   0xc   : > { %6793 = dma.hbm_to_vmem [thread:$0]  (!%p6999_p5), %s192_s7, 32768, %s194_s10, [#allocation5], %s6935_s16, %s6935_s16, %s6936_s17  }
   0xd   : > { %s6937_s18 = smov [#allocation8]   ;;  %250 = sbr.rel (%p6988_p3) target bundleno = 753 (0x2f1), region = 44 }
   0xe   : > { %s224_s19 = sshll.u32 %s6937_s18, 4  ;;  %s225_s19 = int_to_ptr.vmem [resolvable:$true] %s224_s19 }
   0xf   : > { %6799 = dma.hbm_to_vmem [thread:$0]  (!%p6999_p5), %s223_s15, 9216, %s225_s19, [#allocation7], %s6935_s16, %s6935_s16, %s6936_s17  }
  0x12   : > { %6920 = dma.done.wait (%p6800_p2), [#allocation5], 32768  }
  0x13   : > { %6922 = vsyncadd (%p6800_p2), [#allocation5], 4294934528 }
  0x14   : > { %6924 = dma.done.wait (%p6800_p2), [#allocation7], 17408  }
  0x15   : > { %6926 = vsyncadd (%p6800_p2), [#allocation7], 4294949888  ;;  %v6425_v0 = vld [vmem:[#allocation4 + $0x138] sm:$0xff]  ;;  %v6424_v4 = vld [vmem:[#allocation4 + $0x130] sm:$0xff]  ;;  %p290_p6 = scmp.lt.s32.totalorder %s6983_s25, 1  ;;  %v6938_v8 = vmov 0  }
  0x16   : > { %v6433_v1 = vld [vmem:[#allocation4 + $0x178] sm:$0xff]  ;;  %778 = vmatpush.bf16.msra.mxu0 %v6425_v0  ;;  %v6432_v5 = vld [vmem:[#allocation4 + $0x170] sm:$0xff]  ;;  %300 = vst [vmem:[#allocation2 + $0x10] sm:$0xff] %v6938_v8  ;;  %v6423_v9 = vld [vmem:[#allocation4 + $0x128] sm:$0xff]  ;;  %vm7307_vm0 = vcmask 1041408   ;;  %vm331_vm3 = vcmask 1043458  }
  0x17   : > { %v6441_v2 = vld [vmem:[#allocation4 + $0x1b8] sm:$0xff]  ;;  %791 = vmatpush.bf16.msra.mxu1 %v6433_v1  ;;  %v6440_v6 = vld [vmem:[#allocation4 + $0x1b0] sm:$0xff]  ;;  %v6431_v10 = vld [vmem:[#allocation4 + $0x168] sm:$0xff]  ;;  %303 = vst [vmem:[#allocation2 + $0x8] sm:$0xff] %v6938_v8  ;;  %s7394_s25 = smov (!%p290_p6, %s6983_s25), 1  ;;  %v444_v21 = vrot.slane %v6938_v8, 1 }
  0x18   : > { %v6449_v3 = vld [vmem:[#allocation4 + $0x1f8] sm:$0xff]  ;;  %804 = vmatpush.bf16.msra.mxu2 %v6441_v2  ;;  %v6448_v7 = vld [vmem:[#allocation4 + $0x1f0] sm:$0xff]  ;;  %v6439_v11 = vld [vmem:[#allocation4 + $0x1a8] sm:$0xff]  ;;  %s4800_s20 = sshll.u32 %s7394_s25, 3  ;;  %vm329_vm1 = vsmask.f32 1282 }
  0x19   : > { %817 = vmatpush.bf16.msra.mxu3 %v6449_v3  ;;  %v6447_v12 = vld [vmem:[#allocation4 + $0x1e8] sm:$0xff]  ;;  %v6422_v13 = vld [vmem:[#allocation4 + $0x120] sm:$0xff]  ;;  %v6421_v17 = vld [vmem:[#allocation4 + $0x118] sm:$0xff]  ;;  %s293_s24 = scalar_lea.vmem %s7295_s0, %s4800_s20  ;;  %vm332_vm2 = vsmask.f32 3338  ;;  %v445_v22 = vrot.slane %v6938_v8, 2 }
  0x1a   : > { %779 = vmatpush.bf16.msra.mxu0 %v6424_v4  ;;  %v6430_v14 = vld [vmem:[#allocation4 + $0x160] sm:$0xff]  ;;  %v6429_v18 = vld [vmem:[#allocation4 + $0x158] sm:$0xff]  ;;  %v446_v23 = vrot.slane %v6938_v8, 3  ;;  %vm336_vm4 = vsmask.f32 5394  ;;  %vm7304_vm5 = vcmask 1041409   ;;  %vm7039_vm7 = vmand %vm7307_vm0, %vm329_vm1 }
  0x1b   : > { %792 = vmatpush.bf16.msra.mxu1 %v6432_v5  ;;  %v6438_v15 = vld [vmem:[#allocation4 + $0x1a0] sm:$0xff]  ;;  %v6437_v19 = vld [vmem:[#allocation4 + $0x198] sm:$0xff]  ;;  %vm7302_vm6 = vcmask 1043459   ;;  %3700 = vst [vmem:[#allocation3] sm:$0x3] %v6938_v8  ;;  %v6420_v24 = vld [vmem:[#allocation4 + $0x110] sm:$0xff] }
  0x1c   : > { %805 = vmatpush.bf16.msra.mxu2 %v6440_v6  ;;  %v6446_v16 = vld [vmem:[#allocation4 + $0x1e0] sm:$0xff]  ;;  %v6445_v20 = vld [vmem:[#allocation4 + $0x1d8] sm:$0xff]  ;;  %v6428_v25 = vld [vmem:[#allocation4 + $0x150] sm:$0xff]  ;;  %3701 = vst [vmem:[#allocation3 + $0x2] sm:$0x3] %v6938_v8  ;;  %vm335_vm8 = vcmask 1045508   ;;  %v460_v32 = vsel %vm7302_vm6, %v445_v22, %v446_v23 }
  0x1d   : > { %818 = vmatpush.bf16.msra.mxu3 %v6448_v7  ;;  %v304_v26 = vld [vmem:[%s293_s24] sm:$0xf]  ;;  %v305_v27 = vld [vmem:[%s293_s24 + $0x4] sm:$0xf]  ;;  %v458_v31 = vsel %vm7304_vm5, 0, %v444_v21  ;;  %vm7303_vm9 = vcmask 1042433   ;;  %vm7047_vm10 = vmand %vm331_vm3, %vm332_vm2 }
  0x1e   : > { %780 = vmatpush.bf16.msra.mxu0 %v6423_v9  ;;  %307 = vst [vmem:[#allocation1] ss:$2 sm:$0xff] %v304_v26  ;;  %v6436_v29 = vld [vmem:[#allocation4 + $0x190] sm:$0xff]  ;;  %vm7306_vm11 = vcmask 1040384   ;;  %vm7305_vm12 = vcmask 1042434   ;;  %vm334_vm13 = vmor %vm7047_vm10, %vm7039_vm7  ;;  %vm339_vm14 = vcmask 1047558   ;;  %v462_v36 = vsel %vm7303_vm9, %v458_v31, %v460_v32 }
  0x1f   : > { %793 = vmatpush.bf16.msra.mxu1 %v6431_v10  ;;  %v6444_v30 = vld [vmem:[#allocation4 + $0x1d0] sm:$0xff]  ;;  %311 = vst [vmem:[#allocation1 + $0x10] ss:$2 sm:$0xff] %v305_v27  ;;  %vm340_vm15 = vsmask.f32 7450  ;;  %v6419_v34 = vld [vmem:[#allocation4 + $0x108] sm:$0xff]  ;;  %vm337_vm1 = vmand %vm335_vm8, %vm336_vm4  ;;  %v455_v41 = vsel %vm7305_vm12, %v445_v22, %v446_v23 }
  0x20   : > { %806 = vmatpush.bf16.msra.mxu2 %v6439_v11  ;;  %3702 = vst [vmem:[#allocation3 + $0x4] sm:$0x3] %v6938_v8  ;;  %v6427_v35 = vld [vmem:[#allocation4 + $0x148] sm:$0xff]  ;;  %vm7060_vm2 = vmor %vm337_vm1, %vm334_vm13  ;;  %v452_v40 = vsel %vm7306_vm11, 0, %v444_v21  ;;  %vm477_vm3 = vsmask.f32 256 }
  0x21   : > { %819 = vmatpush.bf16.msra.mxu3 %v6447_v12  ;;  %3703 = vst [vmem:[#allocation3 + $0x6] sm:$0x3] %v6938_v8  ;;  %v6435_v37 = vld [vmem:[#allocation4 + $0x188] sm:$0xff]  ;;  %vm478_vm10 = vsmask.f32 1284  ;;  %vm7068_vm6 = vmand %vm339_vm14, %vm340_vm15  ;;  %v464_v44 = vrot.slane %v462_v36, 1  ;;  %v456_v49 = vsel %vm7307_vm0, %v452_v40, %v455_v41 }
  0x22   : > { %781 = vmatpush.bf16.msra.mxu0 %v6422_v13  ;;  %v6443_v38 = vld [vmem:[#allocation4 + $0x1c8] sm:$0xff]  ;;  %vm480_vm4 = vsmask.f32 2312  ;;  %vm342_vm8 = vmor %vm7068_vm6, %vm7060_vm2  ;;  %vm482_vm13 = vsmask.f32 3340  ;;  %v6418_v45 = vld [vmem:[#allocation4 + $0x100] sm:$0xff] }
  0x23   : > { %794 = vmatpush.bf16.msra.mxu1 %v6430_v14  ;;  %v6426_v46 = vld [vmem:[#allocation4 + $0x140] sm:$0xff]  ;;  %vm479_vm14 = vmor %vm477_vm3, %vm478_vm10  ;;  %vm484_vm15 = vsmask.f32 4368  ;;  %vm486_vm9 = vsmask.f32 5396  ;;  %v6393_v52 = vld [vmem:[#allocation4 + $0x38] sm:$0xff] }
  0x24   : > { %807 = vmatpush.bf16.msra.mxu2 %v6438_v15  ;;  %v6434_v50 = vld [vmem:[#allocation4 + $0x180] sm:$0xff]  ;;  %vm481_vm1 = vmor %vm479_vm14, %vm480_vm4  ;;  %v6401_v53 = vld [vmem:[#allocation4 + $0x78] sm:$0xff]  ;;  %vm488_vm12 = vsmask.f32 6424  ;;  %vm490_vm0 = vsmask.f32 7452 }
  0x25   : > { %820 = vmatpush.bf16.msra.mxu3 %v6446_v16  ;;  %v308_v43 = vld [vmem:[#allocation1] sm:$0xff]  ;;  %v6442_v51 = vld [vmem:[#allocation4 + $0x1c0] sm:$0xff]  ;;  %vm483_vm5 = vmor %vm481_vm1, %vm482_vm13  ;;  %v492_v57 = vshrl.u32 %v456_v49, 16  ;;  %v497_v58 = vshll.u32 %v464_v44, 16  ;;  %vm7324_vm4 = vcmask 1041408   ;;  %vm7325_vm13 = vcmask 1042433  }
  0x26   : > { %782 = vmatpush.bf16.msra.mxu0 %v6421_v17  ;;  %v313_v47 = vshrl.u32 %v308_v43, 16  ;;  %v316_v48 = vshll.u32 %v308_v43, 16  ;;  %v6409_v55 = vld [vmem:[#allocation4 + $0xb8] sm:$0xff]  ;;  %vm485_vm11 = vmor %vm483_vm5, %vm484_vm15  ;;  %v7081_v60 = vld [vmem:[#allocation1 + $0x10] sm:$0xff]  ;;  %vm7335_vm6 = vcmask 1041409   ;;  %vm7336_vm2 = vcmask 1043459  }
  0x27   : > { %795 = vmatpush.bf16.msra.mxu1 %v6429_v18  ;;  %v6417_v56 = vld [vmem:[#allocation4 + $0xf8] sm:$0xff]  ;;  %vm487_vm3 = vmor %vm485_vm11, %vm486_vm9  ;;  %v6392_v61 = vld [vmem:[#allocation4 + $0x30] sm:$0xff]  ;;  %vm7320_vm9 = vcmask 1040384   ;;  %vm7321_vm11 = vcmask 1042434   ;;  %s6385_s28 = sshll.u32 %s7394_s25, 2 }
  0x28   : > { %808 = vmatpush.bf16.msra.mxu2 %v6437_v19  ;;  %v315_v54 = vrot.slane %v313_v47, 7  ;;  %vm489_vm10 = vmor %vm487_vm3, %vm488_vm12  ;;  %v6400_v62 = vld [vmem:[#allocation4 + $0x70] sm:$0xff]  ;;  %vm7323_vm12 = vcmask 1043459   ;;  %v6391_v11 = vld [vmem:[#allocation4 + $0x28] sm:$0xff]  ;;  %s298_s9 = scalar_lea.vmem %s7301_s6, %s6385_s28 }
  0x29   : > { %821 = vmatpush.bf16.msra.mxu3 %v6445_v20  ;;  %vm7089_vm5 = vmor %vm489_vm10, %vm490_vm0  ;;  %v6408_v1 = vld [vmem:[#allocation4 + $0xb0] sm:$0xff]  ;;  %vm7322_vm0 = vcmask 1041409   ;;  %v6399_v12 = vld [vmem:[#allocation4 + $0x68] sm:$0xff] }
  0x2a   : > { %783 = vmatpush.bf16.msra.mxu0 %v6420_v24  ;;  %v318_v59 = vor.u32 %v316_v48, %v315_v54  ;;  %v6416_v2 = vld [vmem:[#allocation4 + $0xf0] sm:$0xff]  ;;  %v499_v6 = vsel %vm7089_vm5, %v492_v57, %v497_v58  ;;  %v6407_v15 = vld [vmem:[#allocation4 + $0xa8] sm:$0xff]  ;;  %v6390_v21 = vld [vmem:[#allocation4 + $0x20] sm:$0xff] }
  0x2b   : > { %796 = vmatpush.bf16.msra.mxu1 %v6428_v25  ;;  %574 = vst [vmem:[#allocation1] ss:$9 sm:$0xff] %v499_v6  ;;  %v6415_v16 = vld [vmem:[#allocation4 + $0xe8] sm:$0xff]  ;;  %v6398_v22 = vld [vmem:[#allocation4 + $0x60] sm:$0xff]  ;;  %v6405_v36 = vld [vmem:[#allocation4 + $0x98] sm:$0xff] }
  0x2c   : > { %809 = vmatpush.bf16.msra.mxu2 %v6436_v29  ;;  %v344_v63 = vsel %vm342_vm8, %v318_v59, 0  ;;  %v349_v19 = vld [vmem:[#allocation2 + $0x10] sm:$0x55]  ;;  %v6406_v24 = vld [vmem:[#allocation4 + $0xa0] sm:$0xff]  ;;  %vm7326_vm14 = vmmov %vm7320_vm9 }
  0x2d   : > { %822 = vmatpush.bf16.msra.mxu3 %v6444_v30  ;;  %345 = vst [vmem:[#allocation2] sm:$0xff] %v344_v63  ;;  %v447_v3 = vrot.slane %v344_v63, 1  ;;  %v448_v4 = vrot.slane %v344_v63, 2  ;;  %v449_v5 = vrot.slane %v344_v63, 3  ;;  %v6414_v25 = vld [vmem:[#allocation4 + $0xe0] sm:$0xff]  ;;  %v353_v27 = vrot.slane %v349_v19, 1  ;;  %vm7327_vm15 = vmmov %vm7321_vm11 }
  0x2e   : > { %784 = vmatpush.bf16.msra.mxu0 %v6419_v34  ;;  %v354_v29 = vrot.slane %v349_v19, 2  ;;  %v355_v30 = vrot.slane %v349_v19, 3  ;;  %v6389_v34 = vld [vmem:[#allocation4 + $0x18] sm:$0xff]  ;;  %vm7328_vm1 = vmmov %vm7320_vm9  ;;  %v6388_v44 = vld [vmem:[#allocation4 + $0x10] sm:$0xff] }
  0x2f   : > { %797 = vmatpush.bf16.msra.mxu1 %v6427_v35  ;;  %v467_v7 = vsel %vm7320_vm9, %v344_v63, %v447_v3  ;;  %v470_v8 = vsel %vm7321_vm11, %v448_v4, %v449_v5  ;;  %v472_v9 = vsel %vm7322_vm0, %v344_v63, %v447_v3  ;;  %v473_v10 = vsel %vm7323_vm12, %v448_v4, %v449_v5  ;;  %v6397_v35 = vld [vmem:[#allocation4 + $0x58] sm:$0xff]  ;;  %vm7329_vm3 = vmmov %vm7321_vm11  ;;  %v6412_v47 = vld [vmem:[#allocation4 + $0xd0] sm:$0xff] }
  0x30   : > { %810 = vmatpush.bf16.msra.mxu2 %v6435_v37  ;;  %v471_v13 = vsel %vm7324_vm4, %v467_v7, %v470_v8  ;;  %v474_v14 = vsel %vm7325_vm13, %v472_v9, %v473_v10  ;;  %v6413_v37 = vld [vmem:[#allocation4 + $0xd8] sm:$0xff]  ;;  %v366_v40 = vsel %vm7327_vm15, %v354_v29, %v355_v30  ;;  %vm7330_vm10 = vmmov %vm7324_vm4  ;;  %v6387_v54 = vld [vmem:[#allocation4 + $0x8] sm:$0xff] }
  0x31   : > { %823 = vmatpush.bf16.msra.mxu3 %v6443_v38  ;;  %v476_v17 = vrot.slane %v474_v14, 1  ;;  %v500_v18 = vshrl.u32 %v471_v13, 16  ;;  %v362_v38 = vsel %vm7326_vm14, %v349_v19, %v353_v27  ;;  %vm7331_vm9 = vmmov %vm7324_vm4  ;;  %v6411_v57 = vld [vmem:[#allocation4 + $0xc8] sm:$0xff]  ;;  %v6386_v58 = vld [vmem:[#allocation4] sm:$0xff]  ;;  %v319_v14 = vshrl.u32 %v7081_v60, 16 }
  0x32   : > { %785 = vmatpush.bf16.msra.mxu0 %v6418_v45  ;;  %v6396_v45 = vld [vmem:[#allocation4 + $0x50] sm:$0xff]  ;;  %v368_v48 = vsel %vm7330_vm10, %v362_v38, %v366_v40  ;;  %v6394_v59 = vld [vmem:[#allocation4 + $0x40] sm:$0xff]  ;;  %v6473_v3 = vld [vmem:[#allocation4 + $0x2b8] sm:$0xff]  ;;  %vm7340_vm14 = vcmask 1042433  }
  0x33   : > { %798 = vmatpush.bf16.msra.mxu1 %v6426_v46  ;;  %v505_v20 = vshll.u32 %v476_v17, 16  ;;  %v6404_v46 = vld [vmem:[#allocation4 + $0x90] sm:$0xff]  ;;  %v6410_v63 = vld [vmem:[#allocation4 + $0xc0] sm:$0xff]  ;;  %v1085_v4 = vld [vmem:[#allocation2 + $0x10] sm:$0xaa] }
  0x34   : > { %811 = vmatpush.bf16.msra.mxu2 %v6434_v50  ;;  %v350_v23 = vld [vmem:[#allocation2] sm:$0x55]  ;;  %v6456_v9 = vld [vmem:[#allocation4 + $0x230] sm:$0xff]  ;;  %v6455_v13 = vld [vmem:[#allocation4 + $0x228] sm:$0xff] }
  0x35   : > { %824 = vmatpush.bf16.msra.mxu3 %v6442_v51  ;;  %v7103_v26 = vsel %vm7089_vm5, %v500_v18, %v505_v20  ;;  %v356_v31 = vrot.slane %v350_v23, 1  ;;  %v357_v32 = vrot.slane %v350_v23, 2  ;;  %v358_v33 = vrot.slane %v350_v23, 3  ;;  %v6481_v7 = vld [vmem:[#allocation4 + $0x2f8] sm:$0xff]  ;;  %v6464_v10 = vld [vmem:[#allocation4 + $0x270] sm:$0xff]  ;;  %v6463_v17 = vld [vmem:[#allocation4 + $0x268] sm:$0xff] }
  0x36   : > { %1033 = vmatpush.bf16.msrb.mxu0 %v6393_v52  ;;  %577 = vst [vmem:[#allocation1 + $0x1] ss:$9 sm:$0xff] %v7103_v26  ;;  %v1416_v18 = vld [vmem:[#allocation2] sm:$0x55]  ;;  %v6471_v20 = vld [vmem:[#allocation4 + $0x2a8] sm:$0xff]  ;;  %v6454_v29 = vld [vmem:[#allocation4 + $0x220] sm:$0xff] }
  0x37   : > { %1046 = vmatpush.bf16.msrb.mxu1 %v6401_v53  ;;  %v371_v41 = vsel %vm7328_vm1, %v350_v23, %v356_v31  ;;  %v374_v43 = vsel %vm7329_vm3, %v357_v32, %v358_v33  ;;  %v1422_v27 = vrot.slane %v1416_v18, 3  ;;  %v6462_v30 = vld [vmem:[#allocation4 + $0x260] sm:$0xff]  ;;  %vm7332_vm11 = vmmov %vm7328_vm1  ;;  %v6469_v38 = vld [vmem:[#allocation4 + $0x298] sm:$0xff] }
  0x38   : > { %1059 = vmatpush.bf16.msrb.mxu2 %v6409_v55  ;;  %v375_v50 = vsel %vm7331_vm9, %v371_v41, %v374_v43  ;;  %v6395_v55 = vld [vmem:[#allocation4 + $0x48] sm:$0xff]  ;;  %v6470_v31 = vld [vmem:[#allocation4 + $0x2a0] sm:$0xff]  ;;  %vm7333_vm0 = vmmov %vm7329_vm3 }
  0x39   : > { %1072 = vmatpush.bf16.msrb.mxu3 %v6417_v56  ;;  %v6403_v56 = vld [vmem:[#allocation4 + $0x88] sm:$0xff]  ;;  %v6478_v32 = vld [vmem:[#allocation4 + $0x2e0] sm:$0xff]  ;;  %v6477_v40 = vld [vmem:[#allocation4 + $0x2d8] sm:$0xff] }
  0x3a   : > { %1034 = vmatpush.bf16.msrb.mxu0 %v6392_v61  ;;  %v6402_v61 = vld [vmem:[#allocation4 + $0x80] sm:$0xff]  ;;  %vm7334_vm12 = vmmov %vm7324_vm4 }
  0x3b   : > { %1047 = vmatpush.bf16.msrb.mxu1 %v6400_v62  ;;  %v1086_v62 = vld [vmem:[#allocation2] sm:$0xaa]  ;;  %vm7338_vm4 = vmmov %vm7333_vm0 }
  0x3c   : > { %1060 = vmatpush.bf16.msrb.mxu2 %v6408_v1  ;;  %v6457_v1 = vld [vmem:[#allocation4 + $0x238] sm:$0xff]  ;;  %vm7339_vm13 = vmmov %vm7331_vm9 }
  0x3d   : > { %1073 = vmatpush.bf16.msrb.mxu3 %v6416_v2  ;;  %v580_v49 = vld [vmem:[#allocation1 + $0x12] sm:$0xff]  ;;  %v578_v51 = vld [vmem:[#allocation1] sm:$0xff]  ;;  %v579_v52 = vld [vmem:[#allocation1 + $0x9] sm:$0xff] }
  0x3e   : > { %1035 = vmatpush.bf16.msrb.mxu0 %v6391_v11  ;;  %812 = vmatmul.bf16.vlgmr.msra.gmra.mxu2 %v580_v49  ;;  %v581_v53 = vld [vmem:[#allocation1 + $0x1b] sm:$0xff]  ;;  %v6465_v2 = vld [vmem:[#allocation4 + $0x278] sm:$0xff]  ;;  %vm7341_vm15 = vmmov %vm7328_vm1 }
  0x3f   : > { %1048 = vmatpush.bf16.msrb.mxu1 %v6399_v12  ;;  %786 = vmatmul.bf16.vlgmr.msra.gmra.mxu0 %v578_v51  ;;  %830 = vst [vmem:[#allocation1] ss:$9 sm:$0xff] %v368_v48  ;;  %v6472_v11 = vld [vmem:[#allocation4 + $0x2b0] sm:$0xff]  ;;  %vm7343_vm3 = vmmov %vm7331_vm9 }
  0x40   : > { %1061 = vmatpush.bf16.msrb.mxu2 %v6407_v15  ;;  %825 = vmatmul.bf16.vlgmr.msra.gmra.mxu3 %v581_v53  ;;  %832 = vst [vmem:[#allocation1 + $0x1] ss:$9 sm:$0xff] %v375_v50  ;;  %v6480_v12 = vld [vmem:[#allocation4 + $0x2f0] sm:$0xff]  ;;  %v322_v15 = vshll.u32 %v7081_v60, 16  ;;  %v1421_v60 = vrot.slane %v1416_v18, 2  ;;  %vm7345_vm9 = vmmov %vm7333_vm0 }
  0x41   : > { %1074 = vmatpush.bf16.msrb.mxu3 %v6415_v16  ;;  %799 = vmatmul.bf16.vlgmr.msra.gmra.mxu1 %v579_v52  ;;  %v6468_v50 = vld [vmem:[#allocation4 + $0x290] sm:$0xff] }
  0x42   : > { %1036 = vmatpush.bf16.msrb.mxu0 %v6390_v21  ;;  %v6479_v21 = vld [vmem:[#allocation4 + $0x2e8] sm:$0xff]  ;;  %v6476_v51 = vld [vmem:[#allocation4 + $0x2d0] sm:$0xff] }
  0x43   : > { %1049 = vmatpush.bf16.msrb.mxu1 %v6398_v22  ;;  %v321_v22 = vrot.slane %v319_v14, 7  ;;  %v6505_v14 = vld [vmem:[#allocation4 + $0x3b8] sm:$0xff] }
  0x44   : > { %1062 = vmatpush.bf16.msrb.mxu2 %v6406_v24 }
  0x45   : > { %1075 = vmatpush.bf16.msrb.mxu3 %v6414_v25  ;;  %v324_v24 = vor.u32 %v322_v15, %v321_v22  ;;  %v1420_v25 = vrot.slane %v1416_v18, 1  ;;  %v6513_v15 = vld [vmem:[#allocation4 + $0x3f8] sm:$0xff] }
  0x46   : > { %1037 = vmatpush.bf16.msrb.mxu0 %v6389_v34 }
  0x47   : > { %1050 = vmatpush.bf16.msrb.mxu1 %v6397_v35  ;;  %v834_v5 = vld [vmem:[#allocation1 + $0x9] sm:$0xff]  ;;  %v835_v6 = vld [vmem:[#allocation1 + $0x12] sm:$0xff]  ;;  %v833_v8 = vld [vmem:[#allocation1] sm:$0xff]  ;;  %v347_v33 = vsel %vm342_vm8, %v324_v24, 0  ;;  %v1428_v34 = vsel %vm7332_vm11, %v1416_v18, %v1420_v25  ;;  %v1431_v35 = vsel %vm7333_vm0, %v1421_v60, %v1422_v27 }
  0x48   : > { %1063 = vmatpush.bf16.msrb.mxu2 %v6405_v36  ;;  %1092 = vst [vmem:[#allocation1 + $0x10] sm:$0xff] %v1086_v62  ;;  %v836_v16 = vld [vmem:[#allocation1 + $0x1b] sm:$0xff]  ;;  %v6453_v36 = vld [vmem:[#allocation4 + $0x218] sm:$0xff]  ;;  %v2994_v41 = vrot.slane %v347_v33, 1  ;;  %v1432_v42 = vsel %vm7334_vm12, %v1428_v34, %v1431_v35  ;;  %v2995_v43 = vrot.slane %v347_v33, 2  ;;  %v2996_v39 = vrot.slane %v347_v33, 3  ;;  %vm7337_vm8 = vmmov %vm7328_vm1 }
  0x49   : > { %1076 = vmatpush.bf16.msrb.mxu3 %v6413_v37  ;;  %1088 = vst [vmem:[#allocation1] sm:$0xff] %v1085_v4  ;;  %v6461_v37 = vld [vmem:[#allocation4 + $0x258] sm:$0xff]  ;;  %vm7342_vm1 = vmmov %vm7333_vm0  ;;  %v6488_v18 = vld [vmem:[#allocation4 + $0x330] sm:$0xff] }
  0x4a   : > { %1038 = vmatpush.bf16.msrb.mxu0 %v6388_v44  ;;  %348 = vst [vmem:[#allocation2 + $0x18] sm:$0xff] %v347_v33  ;;  %v3007_v53 = vsel %vm7335_vm6, %v347_v33, %v2994_v41  ;;  %v3002_v4 = vsel %vm7341_vm15, %v347_v33, %v2994_v41  ;;  %v6487_v27 = vld [vmem:[#allocation4 + $0x328] sm:$0xff]  ;;  %v6494_v33 = vld [vmem:[#allocation4 + $0x360] sm:$0xff]  ;;  %v6501_v41 = vld [vmem:[#allocation4 + $0x398] sm:$0xff]  ;;  %vm7355_vm15 = vcmask 1042433  }
  0x4b   : > { %1051 = vmatpush.bf16.msrb.mxu1 %v6396_v45  ;;  %v6452_v45 = vld [vmem:[#allocation4 + $0x210] sm:$0xff]  ;;  %v6502_v34 = vld [vmem:[#allocation4 + $0x3a0] sm:$0xff]  ;;  %vm7344_vm10 = vmmov %vm7337_vm8 }
  0x4c   : > { %1064 = vmatpush.bf16.msrb.mxu2 %v6404_v46  ;;  %v6460_v46 = vld [vmem:[#allocation4 + $0x250] sm:$0xff]  ;;  %v6510_v35 = vld [vmem:[#allocation4 + $0x3e0] sm:$0xff]  ;;  %vm7346_vm11 = vmmov %vm7343_vm3 }
  0x4d   : > { %1077 = vmatpush.bf16.msrb.mxu3 %v6412_v47  ;;  %vm7347_vm0 = vmmov %vm7337_vm8 }
  0x4e   : > { %1039 = vmatpush.bf16.msrb.mxu0 %v6387_v54  ;;  %vm7348_vm12 = vmmov %vm7342_vm1 }
  0x4f   : > { %1052 = vmatpush.bf16.msrb.mxu1 %v6395_v55  ;;  %v1094_v19 = vld [vmem:[#allocation1 + $0x11] ss:$2 sm:$0xff]  ;;  %vm7349_vm6 = vmmov %vm7343_vm3 }
  0x50   : > { %1065 = vmatpush.bf16.msrb.mxu2 %v6403_v56  ;;  %v1090_v23 = vld [vmem:[#allocation1 + $0x1] ss:$2 sm:$0xff] }
  0x51   : > { %1078 = vmatpush.bf16.msrb.mxu3 %v6411_v57  ;;  %1160 = vst [vmem:[#allocation1] ss:$9 sm:$0xff] %v1090_v23  ;;  %v1417_v52 = vld [vmem:[#allocation2 + $0x18] sm:$0x55]  ;;  %v3008_v57 = vsel %vm7336_vm2, %v2995_v43, %v2996_v39  ;;  %vm7350_vm2 = vmmov %vm7347_vm0 }
  0x52   : > { %1040 = vmatpush.bf16.msrb.mxu0 %v6386_v58  ;;  %1162 = vst [vmem:[#allocation1 + $0x1] ss:$9 sm:$0xff] %v1094_v19  ;;  %v1423_v54 = vrot.slane %v1417_v52, 1  ;;  %v1424_v55 = vrot.slane %v1417_v52, 2  ;;  %v1425_v56 = vrot.slane %v1417_v52, 3  ;;  %v6451_v58 = vld [vmem:[#allocation4 + $0x208] sm:$0xff] }
  0x53   : > { %1053 = vmatpush.bf16.msrb.mxu1 %v6394_v59  ;;  %v6459_v59 = vld [vmem:[#allocation4 + $0x248] sm:$0xff]  ;;  %v6496_v19 = vld [vmem:[#allocation4 + $0x370] sm:$0xff] }
  0x54   : > { %1066 = vmatpush.bf16.msrb.mxu2 %v6402_v61  ;;  %v1435_v61 = vsel %vm7337_vm8, %v1417_v52, %v1423_v54  ;;  %v1438_v62 = vsel %vm7338_vm4, %v1424_v55, %v1425_v56  ;;  %v5377_v52 = vld [vmem:[#allocation6 + $0x70] sm:$0xf]  ;;  %v6545_v55 = vld [vmem:[#allocation6 + $0xf4] sm:$0xf0]  ;;  %vm7351_vm8 = vmmov %vm7342_vm1  ;;  %vm7352_vm4 = vcmask 1041409  }
  0x55   : > { %1079 = vmatpush.bf16.msrb.mxu3 %v6410_v63  ;;  %1041 = vmatmul.bf16.vlgmr.msrb.gmra.mxu0 %v833_v8  ;;  %v6467_v63 = vld [vmem:[#allocation4 + $0x288] sm:$0xff]  ;;  %v5441_v54 = vld [vmem:[#allocation6 + $0xf0] sm:$0xf] }
  0x56   : > { %1363 = vmatpush.bf16.msra.mxu0 %v6457_v1  ;;  %1054 = vmatmul.bf16.vlgmr.msrb.gmra.mxu1 %v834_v5  ;;  %v6475_v1 = vld [vmem:[#allocation4 + $0x2c8] sm:$0xff]  ;;  %v3005_v5 = vsel %vm7342_vm1, %v2995_v43, %v2996_v39  ;;  %v6484_v43 = vld [vmem:[#allocation4 + $0x310] sm:$0xff]  ;;  %vm7356_vm1 = vmmov %vm7347_vm0 }
  0x57   : > { %1376 = vmatpush.bf16.msra.mxu1 %v6465_v2  ;;  %1067 = vmatmul.bf16.vlgmr.msrb.gmra.mxu2 %v835_v6  ;;  %v1439_v2 = vsel %vm7339_vm13, %v1435_v61, %v1438_v62  ;;  %v6450_v6 = vld [vmem:[#allocation4 + $0x200] sm:$0xff]  ;;  %v6492_v39 = vld [vmem:[#allocation4 + $0x350] sm:$0xff]  ;;  %vm7353_vm13 = vmmov %vm7343_vm3 }
  0x58   : > { %1389 = vmatpush.bf16.msra.mxu2 %v6473_v3  ;;  %1080 = vmatmul.bf16.vlgmr.msrb.gmra.mxu3 %v836_v16  ;;  %v3009_v3 = vsel %vm7340_vm14, %v3007_v53, %v3008_v57  ;;  %v6529_v53 = vld [vmem:[#allocation6 + $0x74] sm:$0xf0]  ;;  %v5505_v56 = vld [vmem:[#allocation6 + $0x170] sm:$0xf]  ;;  %v6498_v61 = vld [vmem:[#allocation4 + $0x380] sm:$0xff]  ;;  %vm7354_vm14 = vcmask 1043459  }
  0x59   : > { %1402 = vmatpush.bf16.msra.mxu3 %v6481_v7  ;;  %v7122_v44 = vld [vmem:[#allocation1 + $0x9] sm:$0xff]  ;;  %v1165_v47 = vld [vmem:[#allocation1 + $0x12] sm:$0xff]  ;;  %v1166_v48 = vld [vmem:[#allocation1 + $0x1b] sm:$0xff]  ;;  %v3011_v8 = vrot.slane %v3009_v3, 1 }
  0x5a   : > { %1364 = vmatpush.bf16.msra.mxu0 %v6456_v9  ;;  %v1163_v49 = vld [vmem:[#allocation1] sm:$0xff]  ;;  %v6458_v7 = vld [vmem:[#allocation4 + $0x240] sm:$0xff]  ;;  %v6561_v57 = vld [vmem:[#allocation6 + $0x174] sm:$0xf0] }
  0x5b   : > { %1377 = vmatpush.bf16.msra.mxu1 %v6464_v10  ;;  %1505 = vst [vmem:[#allocation1] ss:$9 sm:$0xff] %v1432_v42  ;;  %v6466_v9 = vld [vmem:[#allocation4 + $0x280] sm:$0xff]  ;;  %v6509_v42 = vld [vmem:[#allocation4 + $0x3d8] sm:$0xff]  ;;  %v6527_v3 = vld [vmem:[#allocation6 + $0x64] sm:$0xf0] }
  0x5c   : > { %1390 = vmatpush.bf16.msra.mxu2 %v6472_v11  ;;  %1507 = vst [vmem:[#allocation1 + $0x1] ss:$9 sm:$0xff] %v1439_v2  ;;  %v6474_v10 = vld [vmem:[#allocation4 + $0x2c0] sm:$0xff]  ;;  %v3006_v11 = vsel %vm7343_vm3, %v3002_v4, %v3005_v5  ;;  %v5506_v4 = vor.u32 %v6561_v57, %v5505_v56  ;;  %vm7357_vm3 = vmmov %vm7351_vm8 }
  0x5d   : > { %1403 = vmatpush.bf16.msra.mxu3 %v6480_v12  ;;  %v6489_v12 = vld [vmem:[#allocation4 + $0x338] sm:$0xff]  ;;  %v3024_v16 = vshrl.u32 %v3006_v11, 16  ;;  %v6506_v62 = vld [vmem:[#allocation4 + $0x3c0] sm:$0xff]  ;;  %v6575_v11 = vld [vmem:[#allocation6 + $0x1e4] sm:$0xf0] }
  0x5e   : > { %1365 = vmatpush.bf16.msra.mxu0 %v6455_v13  ;;  %v6497_v13 = vld [vmem:[#allocation4 + $0x378] sm:$0xff]  ;;  %v5369_v2 = vld [vmem:[#allocation6 + $0x60] sm:$0xf] }
  0x5f   : > { %1378 = vmatpush.bf16.msra.mxu1 %v6463_v17  ;;  %v3029_v17 = vshll.u32 %v3011_v8, 16  ;;  %v5497_v8 = vld [vmem:[#allocation6 + $0x160] sm:$0xf] }
  0x60   : > { %1391 = vmatpush.bf16.msra.mxu2 %v6471_v20  ;;  %v6504_v20 = vld [vmem:[#allocation4 + $0x3b0] sm:$0xff] }
  0x61   : > { %1404 = vmatpush.bf16.msra.mxu3 %v6479_v21  ;;  %v6512_v21 = vld [vmem:[#allocation4 + $0x3f0] sm:$0xff]  ;;  %v7137_v23 = vsel %vm7089_vm5, %v3024_v16, %v3029_v17 }
  0x62   : > { %1366 = vmatpush.bf16.msra.mxu0 %v6454_v29  ;;  %v6495_v29 = vld [vmem:[#allocation4 + $0x368] sm:$0xff] }
  0x63   : > { %1379 = vmatpush.bf16.msra.mxu1 %v6462_v30  ;;  %v7133_v22 = vld [vmem:[#allocation1 + $0x9] sm:$0xff]  ;;  %v7139_v24 = vld [vmem:[#allocation1 + $0x12] sm:$0xff]  ;;  %v7141_v25 = vld [vmem:[#allocation1 + $0x1b] sm:$0xff] }
  0x64   : > { %1392 = vmatpush.bf16.msra.mxu2 %v6470_v31  ;;  %v7144_v60 = vld [vmem:[#allocation1] sm:$0xff]  ;;  %v6503_v30 = vld [vmem:[#allocation4 + $0x3a8] sm:$0xff] }
  0x65   : > { %1405 = vmatpush.bf16.msra.mxu3 %v6478_v32  ;;  %1876 = vst [vmem:[#allocation1] ss:$9 sm:$0xff] %v7103_v26  ;;  %v6511_v31 = vld [vmem:[#allocation4 + $0x3e8] sm:$0xff]  ;;  %v6486_v32 = vld [vmem:[#allocation4 + $0x320] sm:$0xff] }
  0x66   : > { %1367 = vmatpush.bf16.msra.mxu0 %v6453_v36  ;;  %1879 = vst [vmem:[#allocation1 + $0x1] ss:$9 sm:$0xff] %v7137_v23  ;;  %v2314_v36 = vld [vmem:[#allocation2 + $0x18] sm:$0xaa] }
  0x67   : > { %1380 = vmatpush.bf16.msra.mxu1 %v6461_v37  ;;  %v6485_v37 = vld [vmem:[#allocation4 + $0x318] sm:$0xff] }
  0x68   : > { %1393 = vmatpush.bf16.msra.mxu2 %v6469_v38  ;;  %v6493_v38 = vld [vmem:[#allocation4 + $0x358] sm:$0xff] }
  0x69   : > { %1406 = vmatpush.bf16.msra.mxu3 %v6477_v40 }
  0x6a   : > { %1368 = vmatpush.bf16.msra.mxu0 %v6452_v45  ;;  %v6508_v45 = vld [vmem:[#allocation4 + $0x3d0] sm:$0xff] }
  0x6b   : > { %1381 = vmatpush.bf16.msra.mxu1 %v6460_v46  ;;  %v6483_v46 = vld [vmem:[#allocation4 + $0x308] sm:$0xff] }
  0x6c   : > { %1394 = vmatpush.bf16.msra.mxu2 %v6468_v50  ;;  %v6482_v50 = vld [vmem:[#allocation4 + $0x300] sm:$0xff] }
  0x6d   : > { %1407 = vmatpush.bf16.msra.mxu3 %v6476_v51  ;;  %v7148_v26 = vld [vmem:[#allocation1 + $0x9] sm:$0xff]  ;;  %v7150_v40 = vld [vmem:[#allocation1 + $0x12] sm:$0xff] }
  0x6e   : > { %1369 = vmatpush.bf16.msra.mxu0 %v6451_v58  ;;  %2320 = vst [vmem:[#allocation1 + $0x10] sm:$0xff] %v2314_v36  ;;  %v6490_v51 = vld [vmem:[#allocation4 + $0x340] sm:$0xff]  ;;  %v5569_v58 = vld [vmem:[#allocation6 + $0x1f0] sm:$0xf] }
  0x6f   : > { %1382 = vmatpush.bf16.msra.mxu1 %v6459_v59  ;;  %v6577_v59 = vld [vmem:[#allocation6 + $0x1f4] sm:$0xf0]  ;;  %v5417_v36 = vld [vmem:[#allocation6 + $0xc0] sm:$0xf] }
  0x70   : > { %1395 = vmatpush.bf16.msra.mxu2 %v6467_v63  ;;  %v5378_v63 = vor.u32 %v6529_v53, %v5377_v52  ;;  %v5570_v5 = vor.u32 %v6577_v59, %v5569_v58  ;;  %v5537_v52 = vld [vmem:[#allocation6 + $0x1b0] sm:$0xf]  ;;  %v6569_v53 = vld [vmem:[#allocation6 + $0x1b4] sm:$0xf0]  ;;  %v6519_v59 = vld [vmem:[#allocation6 + $0x24] sm:$0xf0] }
  0x71   : > { %1408 = vmatpush.bf16.msra.mxu3 %v6475_v1  ;;  %v5442_v1 = vor.u32 %v6545_v55, %v5441_v54  ;;  %v7158_v54 = vld [vmem:[#allocation1 + $0x1b] sm:$0xff]  ;;  %v5337_v55 = vld [vmem:[#allocation6 + $0x20] sm:$0xf] }
  0x72   : > { %1370 = vmatpush.bf16.msra.mxu0 %v6450_v6  ;;  %v5433_v6 = vld [vmem:[#allocation6 + $0xe0] sm:$0xf] }
  0x73   : > { %1383 = vmatpush.bf16.msra.mxu1 %v6458_v7  ;;  %v6543_v7 = vld [vmem:[#allocation6 + $0xe4] sm:$0xf0] }
  0x74   : > { %1396 = vmatpush.bf16.msra.mxu2 %v6466_v9  ;;  %v6559_v9 = vld [vmem:[#allocation6 + $0x164] sm:$0xf0] }
  0x75   : > { %1409 = vmatpush.bf16.msra.mxu3 %v6474_v10  ;;  %1371 = vmatmul.bf16.vlgmr.msra.gmra.mxu0 %v1163_v49  ;;  %v6507_v49 = vld [vmem:[#allocation4 + $0x3c8] sm:$0xff]  ;;  %v5561_v10 = vld [vmem:[#allocation6 + $0x1e0] sm:$0xf]  ;;  %v5498_v16 = vor.u32 %v6559_v9, %v5497_v8  ;;  %v5329_v8 = vld [vmem:[#allocation6 + $0x10] sm:$0xf] }
  0x76   : > { %1708 = vmatpush.bf16.msrb.mxu0 %v6489_v12  ;;  %1384 = vmatmul.bf16.vlgmr.msra.gmra.mxu1 %v7122_v44  ;;  %v6500_v44 = vld [vmem:[#allocation4 + $0x390] sm:$0xff]  ;;  %v5370_v12 = vor.u32 %v6527_v3, %v5369_v2  ;;  %v5562_v17 = vor.u32 %v6575_v11, %v5561_v10  ;;  %v5465_v2 = vld [vmem:[#allocation6 + $0x120] sm:$0xf]  ;;  %v6551_v3 = vld [vmem:[#allocation6 + $0x124] sm:$0xf0] }
  0x77   : > { %1721 = vmatpush.bf16.msrb.mxu1 %v6497_v13  ;;  %1397 = vmatmul.bf16.vlgmr.msra.gmra.mxu2 %v1165_v47  ;;  %v6491_v47 = vld [vmem:[#allocation4 + $0x348] sm:$0xff]  ;;  %v5434_v13 = vor.u32 %v6543_v7, %v5433_v6  ;;  %v5338_v6 = vor.u32 %v6519_v59, %v5337_v55  ;;  %v6517_v9 = vld [vmem:[#allocation6 + $0x14] sm:$0xf0]  ;;  %v5466_v10 = vor.u32 %v6551_v3, %v5465_v2  ;;  %v6558_v55 = vld [vmem:[#allocation6 + $0x164] sm:$0xf] }
  0x78   : > { %1734 = vmatpush.bf16.msrb.mxu2 %v6505_v14  ;;  %1410 = vmatmul.bf16.vlgmr.msra.gmra.mxu3 %v1166_v48  ;;  %v6499_v48 = vld [vmem:[#allocation4 + $0x388] sm:$0xff]  ;;  %v5361_v14 = vld [vmem:[#allocation6 + $0x50] sm:$0xf]  ;;  %v6540_v3 = vld [vmem:[#allocation6 + $0xd4] sm:$0xf] }
  0x79   : > { %1747 = vmatpush.bf16.msrb.mxu3 %v6513_v15  ;;  %v6525_v15 = vld [vmem:[#allocation6 + $0x54] sm:$0xf0] }
  0x7a   : > { %1709 = vmatpush.bf16.msrb.mxu0 %v6488_v18  ;;  %v5425_v18 = vld [vmem:[#allocation6 + $0xd0] sm:$0xf] }
  0x7b   : > { %1722 = vmatpush.bf16.msrb.mxu1 %v6496_v19  ;;  %v6541_v19 = vld [vmem:[#allocation6 + $0xd4] sm:$0xf0] }
  0x7c   : > { %1735 = vmatpush.bf16.msrb.mxu2 %v6504_v20  ;;  %v5489_v20 = vld [vmem:[#allocation6 + $0x150] sm:$0xf] }
  0x7d   : > { %1748 = vmatpush.bf16.msrb.mxu3 %v6512_v21  ;;  %v6557_v21 = vld [vmem:[#allocation6 + $0x154] sm:$0xf0] }
  0x7e   : > { %1710 = vmatpush.bf16.msrb.mxu0 %v6487_v27  ;;  %v5553_v27 = vld [vmem:[#allocation6 + $0x1d0] sm:$0xf] }
  0x7f   : > { %1723 = vmatpush.bf16.msrb.mxu1 %v6495_v29  ;;  %v6573_v29 = vld [vmem:[#allocation6 + $0x1d4] sm:$0xf0] }
  0x80   : > { %1736 = vmatpush.bf16.msrb.mxu2 %v6503_v30  ;;  %v7156_v30 = vld [vmem:[#allocation1] sm:$0xff] }
  0x81   : > { %1749 = vmatpush.bf16.msrb.mxu3 %v6511_v31  ;;  %v2313_v31 = vld [vmem:[#allocation2] sm:$0xaa] }
  0x82   : > { %1711 = vmatpush.bf16.msrb.mxu0 %v6486_v32  ;;  %v5362_v32 = vor.u32 %v6525_v15, %v5361_v14  ;;  %2316 = vst [vmem:[#allocation1] sm:$0xff] %v2313_v31  ;;  %v5457_v14 = vld [vmem:[#allocation6 + $0x110] sm:$0xf]  ;;  %v6549_v15 = vld [vmem:[#allocation6 + $0x114] sm:$0xf0] }
  0x83   : > { %1724 = vmatpush.bf16.msrb.mxu1 %v6494_v33  ;;  %v5426_v33 = vor.u32 %v6541_v19, %v5425_v18  ;;  %v5321_v18 = vld [vmem:[#allocation6] sm:$0xf]  ;;  %v5330_v19 = vor.u32 %v6517_v9, %v5329_v8  ;;  %v5458_v31 = vor.u32 %v6549_v15, %v5457_v14  ;;  %v5555_v8 = vld [vmem:[#allocation6 + $0x1d8] sm:$0xf0]  ;;  %v6538_v15 = vld [vmem:[#allocation6 + $0xc4] sm:$0xf] }
  0x84   : > { %1737 = vmatpush.bf16.msrb.mxu2 %v6502_v34  ;;  %v5353_v34 = vld [vmem:[#allocation6 + $0x40] sm:$0xf] }
  0x85   : > { %1750 = vmatpush.bf16.msrb.mxu3 %v6510_v35  ;;  %v6523_v35 = vld [vmem:[#allocation6 + $0x44] sm:$0xf0] }
  0x86   : > { %1712 = vmatpush.bf16.msrb.mxu0 %v6485_v37  ;;  %v6539_v37 = vld [vmem:[#allocation6 + $0xc4] sm:$0xf0] }
  0x87   : > { %1725 = vmatpush.bf16.msrb.mxu1 %v6493_v38  ;;  %v5481_v38 = vld [vmem:[#allocation6 + $0x140] sm:$0xf] }
  0x88   : > { %1738 = vmatpush.bf16.msrb.mxu2 %v6501_v41  ;;  %v5545_v41 = vld [vmem:[#allocation6 + $0x1c0] sm:$0xf] }
  0x89   : > { %1751 = vmatpush.bf16.msrb.mxu3 %v6509_v42  ;;  %v5354_v42 = vor.u32 %v6523_v35, %v5353_v34  ;;  %v2318_v56 = vld [vmem:[#allocation1 + $0x1] ss:$2 sm:$0xff]  ;;  %v6547_v34 = vld [vmem:[#allocation6 + $0x104] sm:$0xf0]  ;;  %v5513_v35 = vld [vmem:[#allocation6 + $0x180] sm:$0xf] }
  0x8a   : > { %1713 = vmatpush.bf16.msrb.mxu0 %v6484_v43  ;;  %v5418_v43 = vor.u32 %v6539_v37, %v5417_v36  ;;  %v5379_v36 = vld [vmem:[#allocation6 + $0x78] sm:$0xf0]  ;;  %v6544_v37 = vld [vmem:[#allocation6 + $0xf4] sm:$0xf] }
  0x8b   : > { %1726 = vmatpush.bf16.msrb.mxu1 %v6492_v39  ;;  %v5345_v39 = vld [vmem:[#allocation6 + $0x30] sm:$0xf] }
  0x8c   : > { %1739 = vmatpush.bf16.msrb.mxu2 %v6500_v44  ;;  %v6521_v44 = vld [vmem:[#allocation6 + $0x34] sm:$0xf0] }
  0x8d   : > { %1752 = vmatpush.bf16.msrb.mxu3 %v6508_v45  ;;  %v5409_v45 = vld [vmem:[#allocation6 + $0xb0] sm:$0xf]  ;;  %v5346_v57 = vor.u32 %v6521_v44, %v5345_v39  ;;  %v5571_v39 = vld [vmem:[#allocation6 + $0x1f8] sm:$0xf0] }
  0x8e   : > { %1714 = vmatpush.bf16.msrb.mxu0 %v6483_v46  ;;  %v2322_v46 = vld [vmem:[#allocation1 + $0x11] ss:$2 sm:$0xff] }
  0x8f   : > { %1727 = vmatpush.bf16.msrb.mxu1 %v6491_v47  ;;  %2388 = vst [vmem:[#allocation1] ss:$9 sm:$0xff] %v2318_v56  ;;  %v5499_v56 = vld [vmem:[#allocation6 + $0x168] sm:$0xf0] }
  0x90   : > { %1740 = vmatpush.bf16.msrb.mxu2 %v6499_v48  ;;  %2390 = vst [vmem:[#allocation1 + $0x1] ss:$9 sm:$0xff] %v2322_v46 }
  0x91   : > { %1753 = vmatpush.bf16.msrb.mxu3 %v6507_v49  ;;  %v6537_v49 = vld [vmem:[#allocation6 + $0xb4] sm:$0xf0] }
  0x92   : > { %1715 = vmatpush.bf16.msrb.mxu0 %v6482_v50  ;;  %v5473_v50 = vld [vmem:[#allocation6 + $0x130] sm:$0xf]  ;;  %v5410_v58 = vor.u32 %v6537_v49, %v5409_v45  ;;  %v5371_v49 = vld [vmem:[#allocation6 + $0x68] sm:$0xf0] }
  0x93   : > { %1728 = vmatpush.bf16.msrb.mxu1 %v6490_v51  ;;  %v6553_v51 = vld [vmem:[#allocation6 + $0x134] sm:$0xf0] }
  0x94   : > { %1741 = vmatpush.bf16.msrb.mxu2 %v6498_v61  ;;  %v5401_v61 = vld [vmem:[#allocation6 + $0xa0] sm:$0xf] }
  0x95   : > { %1754 = vmatpush.bf16.msrb.mxu3 %v6506_v62  ;;  %1716 = vmatmul.bf16.vlgmr.msrb.gmra.mxu0 %v7144_v60  ;;  %v6555_v60 = vld [vmem:[#allocation6 + $0x144] sm:$0xf0]  ;;  %v5474_v62 = vor.u32 %v6553_v51, %v5473_v50 }
  0x96   : > { %2208 = vmatpush.bf16.msra.mxu0 %v5378_v63  ;;  %1729 = vmatmul.bf16.vlgmr.msrb.gmra.mxu1 %v7133_v22  ;;  %v6571_v22 = vld [vmem:[#allocation6 + $0x1c4] sm:$0xf0]  ;;  %v5482_v47 = vor.u32 %v6555_v60, %v5481_v38  ;;  %v5538_v63 = vor.u32 %v6569_v53, %v5537_v52  ;;  %v5443_v38 = vld [vmem:[#allocation6 + $0xf8] sm:$0xf0]  ;;  %v6560_v60 = vld [vmem:[#allocation6 + $0x174] sm:$0xf] }
  0x97   : > { %2221 = vmatpush.bf16.msra.mxu1 %v5442_v1  ;;  %1742 = vmatmul.bf16.vlgmr.msrb.gmra.mxu2 %v7139_v24  ;;  %v5490_v24 = vor.u32 %v6557_v21, %v5489_v20  ;;  %v5546_v48 = vor.u32 %v6571_v22, %v5545_v41  ;;  %v6535_v1 = vld [vmem:[#allocation6 + $0xa4] sm:$0xf0]  ;;  %v6542_v52 = vld [vmem:[#allocation6 + $0xe4] sm:$0xf]  ;;  %v5435_v53 = vld [vmem:[#allocation6 + $0xe8] sm:$0xf0] }
  0x98   : > { %2234 = vmatpush.bf16.msra.mxu2 %v5506_v4  ;;  %1755 = vmatmul.bf16.vlgmr.msrb.gmra.mxu3 %v7141_v25  ;;  %v5554_v25 = vor.u32 %v6573_v29, %v5553_v27  ;;  %v5529_v4 = vld [vmem:[#allocation6 + $0x1a0] sm:$0xf]  ;;  %v5402_v7 = vor.u32 %v6535_v1, %v5401_v61  ;;  %v6515_v21 = vld [vmem:[#allocation6 + $0x4] sm:$0xf0]  ;;  %v5438_v61 = vor.u32 %v6542_v52, %v5435_v53  ;;  %v5331_v52 = vld [vmem:[#allocation6 + $0x18] sm:$0xf0] }
  0x99   : > { %2247 = vmatpush.bf16.msra.mxu3 %v5570_v5  ;;  %v6567_v5 = vld [vmem:[#allocation6 + $0x1a4] sm:$0xf0]  ;;  %v5385_v27 = vld [vmem:[#allocation6 + $0x80] sm:$0xf]  ;;  %v5322_v41 = vor.u32 %v6515_v21, %v5321_v18  ;;  %v5502_v1 = vor.u32 %v6558_v55, %v5499_v56  ;;  %v5483_v18 = vld [vmem:[#allocation6 + $0x148] sm:$0xf0] }
  0x9a   : > { %2209 = vmatpush.bf16.msra.mxu0 %v5370_v12  ;;  %v5530_v11 = vor.u32 %v6567_v5, %v5529_v4  ;;  %v5393_v12 = vld [vmem:[#allocation6 + $0x90] sm:$0xf]  ;;  %v6531_v29 = vld [vmem:[#allocation6 + $0x84] sm:$0xf0]  ;;  %v5427_v4 = vld [vmem:[#allocation6 + $0xd8] sm:$0xf0] }
  0x9b   : > { %2222 = vmatpush.bf16.msra.mxu1 %v5434_v13  ;;  %v6533_v13 = vld [vmem:[#allocation6 + $0x94] sm:$0xf0]  ;;  %v5386_v22 = vor.u32 %v6531_v29, %v5385_v27  ;;  %v6556_v5 = vld [vmem:[#allocation6 + $0x154] sm:$0xf] }
  0x9c   : > { %2235 = vmatpush.bf16.msra.mxu2 %v5498_v16  ;;  %v5521_v16 = vld [vmem:[#allocation6 + $0x190] sm:$0xf]  ;;  %v5394_v20 = vor.u32 %v6533_v13, %v5393_v12  ;;  %v5355_v12 = vld [vmem:[#allocation6 + $0x48] sm:$0xf0]  ;;  %v6520_v29 = vld [vmem:[#allocation6 + $0x34] sm:$0xf] }
  0x9d   : > { %2248 = vmatpush.bf16.msra.mxu3 %v5562_v17  ;;  %v6565_v17 = vld [vmem:[#allocation6 + $0x194] sm:$0xf0]  ;;  %v6532_v56 = vld [vmem:[#allocation6 + $0x94] sm:$0xf] }
  0x9e   : > { %2210 = vmatpush.bf16.msra.mxu0 %v5362_v32  ;;  %v5522_v32 = vor.u32 %v6565_v17, %v5521_v16  ;;  %v5419_v16 = vld [vmem:[#allocation6 + $0xc8] sm:$0xf0]  ;;  %v6554_v17 = vld [vmem:[#allocation6 + $0x144] sm:$0xf] }
  0x9f   : > { %2223 = vmatpush.bf16.msra.mxu1 %v5426_v33  ;;  %v5449_v33 = vld [vmem:[#allocation6 + $0x100] sm:$0xf]  ;;  %v5422_v27 = vor.u32 %v6538_v15, %v5419_v16 }
  0xa0   : > { %2236 = vmatpush.bf16.msra.mxu2 %v5490_v24  ;;  %v6563_v24 = vld [vmem:[#allocation6 + $0x184] sm:$0xf0]  ;;  %v5450_v44 = vor.u32 %v6547_v34, %v5449_v33  ;;  %v6536_v34 = vld [vmem:[#allocation6 + $0xb4] sm:$0xf] }
  0xa1   : > { %2249 = vmatpush.bf16.msra.mxu3 %v5554_v25  ;;  %v6528_v25 = vld [vmem:[#allocation6 + $0x74] sm:$0xf]  ;;  %v5514_v45 = vor.u32 %v6563_v24, %v5513_v35  ;;  %v5411_v35 = vld [vmem:[#allocation6 + $0xb8] sm:$0xf0] }
  0xa2   : > { %2211 = vmatpush.bf16.msra.mxu0 %v5354_v42  ;;  %v5507_v42 = vld [vmem:[#allocation6 + $0x178] sm:$0xf0]  ;;  %v5382_v46 = vor.u32 %v6528_v25, %v5379_v36  ;;  %v6552_v24 = vld [vmem:[#allocation6 + $0x134] sm:$0xf] }
  0xa3   : > { %2224 = vmatpush.bf16.msra.mxu1 %v5418_v43  ;;  %v6576_v43 = vld [vmem:[#allocation6 + $0x1f4] sm:$0xf]  ;;  %v5510_v50 = vor.u32 %v6560_v60, %v5507_v42  ;;  %v5475_v25 = vld [vmem:[#allocation6 + $0x138] sm:$0xf0]  ;;  %v5414_v60 = vor.u32 %v6536_v34, %v5411_v35 }
  0xa4   : > { %2237 = vmatpush.bf16.msra.mxu2 %v5482_v47  ;;  %v5446_v47 = vor.u32 %v6544_v37, %v5443_v38  ;;  %v5574_v51 = vor.u32 %v6576_v43, %v5571_v39  ;;  %v6568_v36 = vld [vmem:[#allocation6 + $0x1b4] sm:$0xf]  ;;  %v5539_v37 = vld [vmem:[#allocation6 + $0x1b8] sm:$0xf0]  ;;  %v5478_v42 = vor.u32 %v6552_v24, %v5475_v25  ;;  %v6534_v39 = vld [vmem:[#allocation6 + $0xa4] sm:$0xf] }
  0xa5   : > { %2250 = vmatpush.bf16.msra.mxu3 %v5546_v48  ;;  %v6526_v48 = vld [vmem:[#allocation6 + $0x64] sm:$0xf]  ;;  %v5542_v43 = vor.u32 %v6568_v36, %v5539_v37  ;;  %v6584_v25 = vld [vmem:[#allocation4 + $0x430] sm:$0xff] }
  0xa6   : > { %2212 = vmatpush.bf16.msra.mxu0 %v5346_v57  ;;  %v6574_v57 = vld [vmem:[#allocation6 + $0x1e4] sm:$0xf]  ;;  %v5374_v59 = vor.u32 %v6526_v48, %v5371_v49  ;;  %v5531_v48 = vld [vmem:[#allocation6 + $0x1a8] sm:$0xf0]  ;;  %v6592_v36 = vld [vmem:[#allocation4 + $0x470] sm:$0xff] }
  0xa7   : > { %2225 = vmatpush.bf16.msra.mxu1 %v5410_v58  ;;  %v5563_v58 = vld [vmem:[#allocation6 + $0x1e8] sm:$0xf0] }
  0xa8   : > { %2238 = vmatpush.bf16.msra.mxu2 %v5474_v62  ;;  %v6524_v62 = vld [vmem:[#allocation6 + $0x54] sm:$0xf]  ;;  %v5566_v2 = vor.u32 %v6574_v57, %v5563_v58  ;;  %v5395_v57 = vld [vmem:[#allocation6 + $0x98] sm:$0xf0] }
  0xa9   : > { %2251 = vmatpush.bf16.msra.mxu3 %v5538_v63  ;;  %v5363_v63 = vld [vmem:[#allocation6 + $0x58] sm:$0xf0]  ;;  %v6548_v58 = vld [vmem:[#allocation6 + $0x114] sm:$0xf] }
  0xaa   : > { %2213 = vmatpush.bf16.msra.mxu0 %v5338_v6  ;;  %v5491_v6 = vld [vmem:[#allocation6 + $0x158] sm:$0xf0]  ;;  %v5366_v9 = vor.u32 %v6524_v62, %v5363_v63  ;;  %v2645_v63 = vld [vmem:[#allocation2 + $0x18] sm:$0x55] }
  0xab   : > { %2226 = vmatpush.bf16.msra.mxu1 %v5402_v7  ;;  %v6572_v7 = vld [vmem:[#allocation6 + $0x1d4] sm:$0xf]  ;;  %v5494_v13 = vor.u32 %v6556_v5, %v5491_v6  ;;  %v5523_v62 = vld [vmem:[#allocation6 + $0x198] sm:$0xf0]  ;;  %v2650_v15 = vrot.slane %v2645_v63, 2  ;;  %v2651_v16 = vrot.slane %v2645_v63, 3 }
  0xac   : > { %2239 = vmatpush.bf16.msra.mxu2 %v5466_v10  ;;  %v5430_v10 = vor.u32 %v6540_v3, %v5427_v4  ;;  %v5558_v14 = vor.u32 %v6572_v7, %v5555_v8  ;;  %v6514_v3 = vld [vmem:[#allocation6 + $0x4] sm:$0xf]  ;;  %v5323_v4 = vld [vmem:[#allocation6 + $0x8] sm:$0xf0] }
  0xad   : > { %2252 = vmatpush.bf16.msra.mxu3 %v5530_v11  ;;  %v6522_v11 = vld [vmem:[#allocation6 + $0x44] sm:$0xf]  ;;  %v5387_v8 = vld [vmem:[#allocation6 + $0x88] sm:$0xf0]  ;;  %v2660_v35 = vsel %vm7345_vm9, %v2650_v15, %v2651_v16  ;;  %vm7359_vm9 = vmmov %vm7349_vm6 }
  0xae   : > { %2214 = vmatpush.bf16.msra.mxu0 %v5330_v19  ;;  %v6570_v19 = vld [vmem:[#allocation6 + $0x1c4] sm:$0xf]  ;;  %v5358_v21 = vor.u32 %v6522_v11, %v5355_v12  ;;  %v5515_v12 = vld [vmem:[#allocation6 + $0x188] sm:$0xf0] }
  0xaf   : > { %2227 = vmatpush.bf16.msra.mxu1 %v5394_v20  ;;  %v5547_v20 = vld [vmem:[#allocation6 + $0x1c8] sm:$0xf0]  ;;  %v6530_v7 = vld [vmem:[#allocation6 + $0x84] sm:$0xf] }
  0xb0   : > { %2240 = vmatpush.bf16.msra.mxu2 %v5458_v31  ;;  %v5347_v31 = vld [vmem:[#allocation6 + $0x38] sm:$0xf0]  ;;  %v5550_v33 = vor.u32 %v6570_v19, %v5547_v20  ;;  %v6562_v11 = vld [vmem:[#allocation6 + $0x184] sm:$0xf]  ;;  %v6579_v16 = vld [vmem:[#allocation4 + $0x408] sm:$0xff] }
  0xb1   : > { %2253 = vmatpush.bf16.msra.mxu3 %v5522_v32  ;;  %v5486_v32 = vor.u32 %v6554_v17, %v5483_v18  ;;  %v5350_v38 = vor.u32 %v6520_v29, %v5347_v31  ;;  %v5326_v17 = vor.u32 %v6514_v3, %v5323_v4  ;;  %v5390_v18 = vor.u32 %v6530_v7, %v5387_v8  ;;  %v6585_v29 = vld [vmem:[#allocation4 + $0x438] sm:$0xff]  ;;  %v6580_v8 = vld [vmem:[#allocation4 + $0x410] sm:$0xff] }
  0xb2   : > { %2215 = vmatpush.bf16.msra.mxu0 %v5322_v41  ;;  %v6518_v41 = vld [vmem:[#allocation6 + $0x24] sm:$0xf]  ;;  %v6593_v31 = vld [vmem:[#allocation4 + $0x478] sm:$0xff] }
  0xb3   : > { %2228 = vmatpush.bf16.msra.mxu1 %v5386_v22  ;;  %v5339_v22 = vld [vmem:[#allocation6 + $0x28] sm:$0xf0] }
  0xb4   : > { %2241 = vmatpush.bf16.msra.mxu2 %v5450_v44  ;;  %v5403_v44 = vld [vmem:[#allocation6 + $0xa8] sm:$0xf0]  ;;  %v5342_v49 = vor.u32 %v6518_v41, %v5339_v22  ;;  %v6600_v41 = vld [vmem:[#allocation4 + $0x4b0] sm:$0xff] }
  0xb5   : > { %2254 = vmatpush.bf16.msra.mxu3 %v5514_v45  ;;  %2216 = vmatmul.bf16.vlgmr.msra.gmra.mxu0 %v7156_v30  ;;  %v6550_v45 = vld [vmem:[#allocation6 + $0x124] sm:$0xf]  ;;  %v6608_v22 = vld [vmem:[#allocation4 + $0x4f0] sm:$0xff] }
  0xb6   : > { %2260 = vmatpush.bf16.msrb.mxu0 %v5382_v46  ;;  %2229 = vmatmul.bf16.vlgmr.msra.gmra.mxu1 %v7148_v26  ;;  %v5467_v46 = vld [vmem:[#allocation6 + $0x128] sm:$0xf0] }
  0xb7   : > { %2273 = vmatpush.bf16.msrb.mxu1 %v5446_v47  ;;  %2242 = vmatmul.bf16.vlgmr.msra.gmra.mxu2 %v7150_v40  ;;  %v6566_v47 = vld [vmem:[#allocation6 + $0x1a4] sm:$0xf]  ;;  %v5470_v53 = vor.u32 %v6550_v45, %v5467_v46 }
  0xb8   : > { %2286 = vmatpush.bf16.msrb.mxu2 %v5510_v50  ;;  %2255 = vmatmul.bf16.vlgmr.msra.gmra.mxu3 %v7158_v54  ;;  %v5406_v50 = vor.u32 %v6534_v39, %v5403_v44  ;;  %v5534_v55 = vor.u32 %v6566_v47, %v5531_v48  ;;  %v7169_v39 = vld [vmem:[#allocation1 + $0x12] sm:$0xff]  ;;  %v7175_v47 = vld [vmem:[#allocation1 + $0x1b] sm:$0xff] }
  0xb9   : > { %2299 = vmatpush.bf16.msrb.mxu3 %v5574_v51  ;;  %v6516_v51 = vld [vmem:[#allocation6 + $0x14] sm:$0xf]  ;;  %v6583_v44 = vld [vmem:[#allocation4 + $0x428] sm:$0xff] }
  0xba   : > { %2261 = vmatpush.bf16.msrb.mxu0 %v5374_v59  ;;  %v5459_v59 = vld [vmem:[#allocation6 + $0x118] sm:$0xf0]  ;;  %v7177_v48 = vld [vmem:[#allocation1] sm:$0xff] }
  0xbb   : > { %2274 = vmatpush.bf16.msrb.mxu1 %v5438_v61  ;;  %v6564_v61 = vld [vmem:[#allocation6 + $0x194] sm:$0xf]  ;;  %v5462_v5 = vor.u32 %v6548_v58, %v5459_v59  ;;  %v6590_v58 = vld [vmem:[#allocation4 + $0x460] sm:$0xff] }
  0xbc   : > { %2287 = vmatpush.bf16.msrb.mxu2 %v5502_v1  ;;  %v5334_v1 = vor.u32 %v6516_v51, %v5331_v52  ;;  %v5526_v6 = vor.u32 %v6564_v61, %v5523_v62  ;;  %v6598_v61 = vld [vmem:[#allocation4 + $0x4a0] sm:$0xff] }
  0xbd   : > { %2300 = vmatpush.bf16.msrb.mxu3 %v5566_v2  ;;  %v5398_v2 = vor.u32 %v6532_v56, %v5395_v57  ;;  %v6582_v57 = vld [vmem:[#allocation4 + $0x420] sm:$0xff] }
  0xbe   : > { %2262 = vmatpush.bf16.msrb.mxu0 %v5366_v9  ;;  %v6546_v9 = vld [vmem:[#allocation6 + $0x104] sm:$0xf]  ;;  %v800_v19 = vpop.f32.mrf.mxu1 }
  0xbf   : > { %2275 = vmatpush.bf16.msrb.mxu1 %v5430_v10  ;;  %v5451_v10 = vld [vmem:[#allocation6 + $0x108] sm:$0xf0]  ;;  %v6606_v62 = vld [vmem:[#allocation4 + $0x4e0] sm:$0xff] }
  0xc0   : > { %2288 = vmatpush.bf16.msrb.mxu2 %v5494_v13  ;;  %v2649_v13 = vrot.slane %v2645_v63, 1  ;;  %v5454_v20 = vor.u32 %v6546_v9, %v5451_v10  ;;  %v6588_v9 = vld [vmem:[#allocation4 + $0x450] sm:$0xff] }
  0xc1   : > { %2301 = vmatpush.bf16.msrb.mxu3 %v5558_v14  ;;  %v787_v14 = vpop.f32.mrf.mxu0  ;;  %v813_v24 = vpop.f32.mrf.mxu2  ;;  %v6596_v10 = vld [vmem:[#allocation4 + $0x490] sm:$0xff] }
  0xc2   : > { %2263 = vmatpush.bf16.msrb.mxu0 %v5358_v21  ;;  %v5518_v21 = vor.u32 %v6562_v11, %v5515_v12  ;;  %v2657_v34 = vsel %vm7344_vm10, %v2645_v63, %v2649_v13  ;;  %v6604_v11 = vld [vmem:[#allocation4 + $0x4d0] sm:$0xff]  ;;  %vm7358_vm10 = vmmov %vm7352_vm4 }
  0xc3   : > { %2276 = vmatpush.bf16.msrb.mxu1 %v5422_v27  ;;  %v801_v27 = vadd.f32 %v800_v19, %v787_v14 }
  0xc4   : > { %2289 = vmatpush.bf16.msrb.mxu2 %v5486_v32  ;;  %v6601_v32 = vld [vmem:[#allocation4 + $0x4b8] sm:$0xff] }
  0xc5   : > { %2302 = vmatpush.bf16.msrb.mxu3 %v5550_v33  ;;  %v6609_v33 = vld [vmem:[#allocation4 + $0x4f8] sm:$0xff]  ;;  %v814_v37 = vadd.f32 %v813_v24, %v801_v27  ;;  %v6578_v27 = vld [vmem:[#allocation4 + $0x400] sm:$0xff] }
  0xc6   : > { %2264 = vmatpush.bf16.msrb.mxu0 %v5350_v38  ;;  %v826_v38 = vpop.f32.mrf.mxu3  ;;  %v802_v46 = vpop.f32.mrf.mxu1 }
  0xc7   : > { %2277 = vmatpush.bf16.msrb.mxu1 %v5414_v60  ;;  %v2661_v60 = vsel %vm7346_vm11, %v2657_v34, %v2660_v35  ;;  %v827_v45 = vadd.f32 %v826_v38, %v814_v37  ;;  %v6617_v34 = vld [vmem:[#allocation4 + $0x538] sm:$0xff]  ;;  %v6824_v37 = vld [vmem:[#allocation2 + $0x10] sm:$0xff]  ;;  %vm7360_vm11 = vmmov %vm7354_vm14 }
  0xc8   : > { %2290 = vmatpush.bf16.msrb.mxu2 %v5478_v42  ;;  %v6625_v35 = vld [vmem:[#allocation4 + $0x578] sm:$0xff]  ;;  %v2997_v38 = vrot.slane %v6824_v37, 1 }
  0xc9   : > { %2303 = vmatpush.bf16.msrb.mxu3 %v5542_v43  ;;  %v789_v42 = vpop.f32.mrf.mxu0  ;;  %v7167_v43 = vld [vmem:[#allocation1 + $0x9] sm:$0xff] }
  0xca   : > { %2265 = vmatpush.bf16.msrb.mxu0 %v5342_v49  ;;  %v2646_v49 = vld [vmem:[#allocation2 + $0x8] sm:$0x55]  ;;  %2734 = vst [vmem:[#allocation1] ss:$9 sm:$0xff] %v2661_v60  ;;  %v6616_v60 = vld [vmem:[#allocation4 + $0x530] sm:$0xff]  ;;  %v2999_v42 = vrot.slane %v6824_v37, 3 }
  0xcb   : > { %2278 = vmatpush.bf16.msrb.mxu1 %v5406_v50  ;;  %v6591_v50 = vld [vmem:[#allocation4 + $0x468] sm:$0xff]  ;;  %v2652_v51 = vrot.slane %v2646_v49, 1  ;;  %v2653_v52 = vrot.slane %v2646_v49, 2 }
  0xcc   : > { %2291 = vmatpush.bf16.msrb.mxu2 %v5470_v53  ;;  %v2654_v53 = vrot.slane %v2646_v49, 3 }
  0xcd   : > { %2304 = vmatpush.bf16.msrb.mxu3 %v5534_v55  ;;  %v815_v55 = vpop.f32.mrf.mxu2 }
  0xce   : > { %2266 = vmatpush.bf16.msrb.mxu0 %v5334_v1  ;;  %v828_v59 = vpop.f32.mrf.mxu3  ;;  %v6581_v1 = vld [vmem:[#allocation4 + $0x418] sm:$0xff] }
  0xcf   : > { %2279 = vmatpush.bf16.msrb.mxu1 %v5398_v2  ;;  %v6589_v2 = vld [vmem:[#allocation4 + $0x458] sm:$0xff] }
  0xd0   : > { %2292 = vmatpush.bf16.msrb.mxu2 %v5462_v5  ;;  %v6597_v5 = vld [vmem:[#allocation4 + $0x498] sm:$0xff] }
  0xd1   : > { %2305 = vmatpush.bf16.msrb.mxu3 %v5526_v6  ;;  %v6605_v6 = vld [vmem:[#allocation4 + $0x4d8] sm:$0xff] }
  0xd2   : > { %2267 = vmatpush.bf16.msrb.mxu0 %v5326_v17  ;;  %v1042_v63 = vpop.f32.mrf.mxu0  ;;  %v6587_v17 = vld [vmem:[#allocation4 + $0x448] sm:$0xff] }
  0xd3   : > { %2280 = vmatpush.bf16.msrb.mxu1 %v5390_v18  ;;  %v1043_v3 = vadd.f32 %v1042_v63, %v827_v45  ;;  %v1055_v4 = vpop.f32.mrf.mxu1  ;;  %v6640_v45 = vld [vmem:[#allocation4 + $0x5f0] sm:$0xff]  ;;  %v6630_v63 = vld [vmem:[#allocation4 + $0x5a0] sm:$0xff] }
  0xd4   : > { %2293 = vmatpush.bf16.msrb.mxu2 %v5454_v20  ;;  %v6595_v20 = vld [vmem:[#allocation4 + $0x488] sm:$0xff] }
  0xd5   : > { %2306 = vmatpush.bf16.msrb.mxu3 %v5518_v21  ;;  %2268 = vmatmul.bf16.vlgmr.msrb.gmra.mxu0 %v7156_v30  ;;  %v2664_v30 = vsel %vm7347_vm0, %v2646_v49, %v2652_v51  ;;  %v1056_v7 = vadd.f32 %v1055_v4, %v1043_v3  ;;  %v6603_v21 = vld [vmem:[#allocation4 + $0x4c8] sm:$0xff]  ;;  %v6613_v3 = vld [vmem:[#allocation4 + $0x518] sm:$0xff]  ;;  %vm7361_vm0 = vmmov %vm7355_vm15 }
  0xd6   : > { %2591 = vmatpush.bf16.msra.mxu0 %v6585_v29  ;;  %2281 = vmatmul.bf16.vlgmr.msrb.gmra.mxu1 %v7148_v26  ;;  %v2667_v26 = vsel %vm7348_vm12, %v2653_v52, %v2654_v53  ;;  %v6586_v29 = vld [vmem:[#allocation4 + $0x440] sm:$0xff]  ;;  %v3014_v52 = vsel %vm7350_vm2, %v6824_v37, %v2997_v38  ;;  %v6621_v4 = vld [vmem:[#allocation4 + $0x558] sm:$0xff]  ;;  %vm7362_vm12 = vmmov %vm7349_vm6 }
  0xd7   : > { %2604 = vmatpush.bf16.msra.mxu1 %v6593_v31  ;;  %2294 = vmatmul.bf16.vlgmr.msrb.gmra.mxu2 %v7150_v40  ;;  %v6599_v40 = vld [vmem:[#allocation4 + $0x4a8] sm:$0xff]  ;;  %v2668_v56 = vsel %vm7349_vm6, %v2664_v30, %v2667_v26  ;;  %v6594_v31 = vld [vmem:[#allocation4 + $0x480] sm:$0xff]  ;;  %vm7363_vm2 = vmmov %vm7356_vm1 }
  0xd8   : > { %2617 = vmatpush.bf16.msra.mxu2 %v6601_v32  ;;  %2307 = vmatmul.bf16.vlgmr.msrb.gmra.mxu3 %v7158_v54  ;;  %v6607_v54 = vld [vmem:[#allocation4 + $0x4e8] sm:$0xff]  ;;  %2736 = vst [vmem:[#allocation1 + $0x1] ss:$9 sm:$0xff] %v2668_v56  ;;  %v6602_v32 = vld [vmem:[#allocation4 + $0x4c0] sm:$0xff] }
  0xd9   : > { %2630 = vmatpush.bf16.msra.mxu3 %v6609_v33  ;;  %v6639_v30 = vld [vmem:[#allocation4 + $0x5e8] sm:$0xff] }
  0xda   : > { %2592 = vmatpush.bf16.msra.mxu0 %v6584_v25  ;;  %v1068_v12 = vpop.f32.mrf.mxu2  ;;  %v1044_v15 = vpop.f32.mrf.mxu0  ;;  %v6633_v25 = vld [vmem:[#allocation4 + $0x5b8] sm:$0xff] }
  0xdb   : > { %2605 = vmatpush.bf16.msra.mxu1 %v6592_v36  ;;  %v1069_v13 = vadd.f32 %v1068_v12, %v1056_v7  ;;  %v1081_v14 = vpop.f32.mrf.mxu3  ;;  %v1057_v19 = vpop.f32.mrf.mxu1  ;;  %v6641_v36 = vld [vmem:[#allocation4 + $0x5f8] sm:$0xff]  ;;  %v6612_v12 = vld [vmem:[#allocation4 + $0x510] sm:$0xff] }
  0xdc   : > { %2618 = vmatpush.bf16.msra.mxu2 %v6600_v41  ;;  %v6624_v41 = vld [vmem:[#allocation4 + $0x570] sm:$0xff] }
  0xdd   : > { %2631 = vmatpush.bf16.msra.mxu3 %v6608_v22  ;;  %v7182_v18 = vadd.f32 %v1081_v14, %v1069_v13  ;;  %v2998_v22 = vrot.slane %v6824_v37, 2  ;;  %v6620_v13 = vld [vmem:[#allocation4 + $0x550] sm:$0xff] }
  0xde   : > { %2593 = vmatpush.bf16.msra.mxu0 %v6583_v44  ;;  %v6632_v44 = vld [vmem:[#allocation4 + $0x5b0] sm:$0xff] }
  0xdf   : > { %2606 = vmatpush.bf16.msra.mxu1 %v6591_v50  ;;  %v7186_v46 = vld [vmem:[#allocation1 + $0x12] sm:$0xff]  ;;  %v7190_v49 = vld [vmem:[#allocation1 + $0x1b] sm:$0xff]  ;;  %v7194_v51 = vld [vmem:[#allocation1 + $0x9] sm:$0xff]  ;;  %v3017_v53 = vsel %vm7351_vm8, %v2998_v22, %v2999_v42 }
  0xe0   : > { %2619 = vmatpush.bf16.msra.mxu2 %v6599_v40  ;;  %v7192_v50 = vld [vmem:[#allocation1] sm:$0xff]  ;;  %v6623_v40 = vld [vmem:[#allocation4 + $0x568] sm:$0xff]  ;;  %vm7364_vm8 = vmmov %vm7357_vm3 }
  0xe1   : > { %2632 = vmatpush.bf16.msra.mxu3 %v6607_v54  ;;  %3106 = vst [vmem:[#allocation1] ss:$9 sm:$0xff] %v7137_v23  ;;  %v6631_v54 = vld [vmem:[#allocation4 + $0x5a8] sm:$0xff] }
  0xe2   : > { %2594 = vmatpush.bf16.msra.mxu0 %v6582_v57  ;;  %v1070_v33 = vpop.f32.mrf.mxu2  ;;  %v6614_v57 = vld [vmem:[#allocation4 + $0x520] sm:$0xff] }
  0xe3   : > { %2607 = vmatpush.bf16.msra.mxu1 %v6590_v58  ;;  %v1083_v24 = vpop.f32.mrf.mxu3  ;;  %v6622_v58 = vld [vmem:[#allocation4 + $0x560] sm:$0xff] }
  0xe4   : > { %2620 = vmatpush.bf16.msra.mxu2 %v6598_v61  ;;  %v6626_v24 = vld [vmem:[#allocation4 + $0x580] sm:$0xff] }
  0xe5   : > { %2633 = vmatpush.bf16.msra.mxu3 %v6606_v62 }
  0xe6   : > { %2595 = vmatpush.bf16.msra.mxu0 %v6581_v1  ;;  %v6638_v1 = vld [vmem:[#allocation4 + $0x5e0] sm:$0xff] }
  0xe7   : > { %2608 = vmatpush.bf16.msra.mxu1 %v6589_v2 }
  0xe8   : > { %2621 = vmatpush.bf16.msra.mxu2 %v6597_v5  ;;  %v6629_v5 = vld [vmem:[#allocation4 + $0x598] sm:$0xff] }
  0xe9   : > { %2634 = vmatpush.bf16.msra.mxu3 %v6605_v6  ;;  %v6637_v6 = vld [vmem:[#allocation4 + $0x5d8] sm:$0xff] }
  0xea   : > { %2596 = vmatpush.bf16.msra.mxu0 %v6580_v8 }
  0xeb   : > { %2609 = vmatpush.bf16.msra.mxu1 %v6588_v9 }
  0xec   : > { %2622 = vmatpush.bf16.msra.mxu2 %v6596_v10  ;;  %v3364_v10 = vld [vmem:[#allocation2 + $0x8] sm:$0xaa] }
  0xed   : > { %2635 = vmatpush.bf16.msra.mxu3 %v6604_v11 }
  0xee   : > { %2597 = vmatpush.bf16.msra.mxu0 %v6579_v16  ;;  %v6628_v16 = vld [vmem:[#allocation4 + $0x590] sm:$0xff] }
  0xef   : > { %2610 = vmatpush.bf16.msra.mxu1 %v6587_v17  ;;  %v6636_v17 = vld [vmem:[#allocation4 + $0x5d0] sm:$0xff] }
  0xf0   : > { %2623 = vmatpush.bf16.msra.mxu2 %v6595_v20 }
  0xf1   : > { %2636 = vmatpush.bf16.msra.mxu3 %v6603_v21 }
  0xf2   : > { %2598 = vmatpush.bf16.msra.mxu0 %v6578_v27  ;;  %v1372_v59 = vpop.f32.mrf.mxu0  ;;  %v6611_v27 = vld [vmem:[#allocation4 + $0x508] sm:$0xff] }
  0xf3   : > { %2611 = vmatpush.bf16.msra.mxu1 %v6586_v29  ;;  %v1385_v61 = vpop.f32.mrf.mxu1  ;;  %v6619_v29 = vld [vmem:[#allocation4 + $0x548] sm:$0xff] }
  0xf4   : > { %2624 = vmatpush.bf16.msra.mxu2 %v6594_v31  ;;  %v1386_v23 = vadd.f32 %v1385_v61, %v1372_v59  ;;  %v6627_v31 = vld [vmem:[#allocation4 + $0x588] sm:$0xff]  ;;  %v6669_v59 = vld [vmem:[#allocation4 + $0x6d8] sm:$0xff] }
  0xf5   : > { %2637 = vmatpush.bf16.msra.mxu3 %v6602_v32  ;;  %2599 = vmatmul.bf16.vlgmr.msra.gmra.mxu0 %v7177_v48  ;;  %v3018_v48 = vsel %vm7353_vm13, %v3014_v52, %v3017_v53  ;;  %v6635_v32 = vld [vmem:[#allocation4 + $0x5c8] sm:$0xff]  ;;  %v3363_v52 = vld [vmem:[#allocation2 + $0x18] sm:$0xaa]  ;;  %vm7367_vm13 = vmmov %vm7349_vm6 }
  0xf6   : > { %2937 = vmatpush.bf16.msrb.mxu0 %v6617_v34  ;;  %2612 = vmatmul.bf16.vlgmr.msra.gmra.mxu1 %v7167_v43  ;;  %v3020_v43 = vsel %vm7354_vm14, %v2998_v22, %v2999_v42  ;;  %v3032_v56 = vshrl.u32 %v3018_v48, 16  ;;  %v6656_v22 = vld [vmem:[#allocation4 + $0x670] sm:$0xff]  ;;  %v6647_v53 = vld [vmem:[#allocation4 + $0x628] sm:$0xff]  ;;  %vm7368_vm14 = vmmov %vm7361_vm0 }
  0xf7   : > { %2950 = vmatpush.bf16.msrb.mxu1 %v6625_v35  ;;  %2625 = vmatmul.bf16.vlgmr.msra.gmra.mxu2 %v7169_v39  ;;  %v3019_v39 = vsel %vm7352_vm4, %v6824_v37, %v2997_v38  ;;  %v6610_v35 = vld [vmem:[#allocation4 + $0x500] sm:$0xff]  ;;  %v6657_v37 = vld [vmem:[#allocation4 + $0x678] sm:$0xff]  ;;  %v6664_v42 = vld [vmem:[#allocation4 + $0x6b0] sm:$0xff] }
  0xf8   : > { %2963 = vmatpush.bf16.msrb.mxu2 %v6633_v25  ;;  %2638 = vmatmul.bf16.vlgmr.msra.gmra.mxu3 %v7175_v47  ;;  %v6615_v47 = vld [vmem:[#allocation4 + $0x528] sm:$0xff]  ;;  %v3021_v26 = vsel %vm7355_vm15, %v3019_v39, %v3020_v43  ;;  %v6634_v25 = vld [vmem:[#allocation4 + $0x5c0] sm:$0xff]  ;;  %v6665_v38 = vld [vmem:[#allocation4 + $0x6b8] sm:$0xff] }
  0xf9   : > { %2976 = vmatpush.bf16.msrb.mxu3 %v6641_v36  ;;  %v3023_v55 = vrot.slane %v3021_v26, 1  ;;  %v6649_v36 = vld [vmem:[#allocation4 + $0x638] sm:$0xff]  ;;  %v6655_v39 = vld [vmem:[#allocation4 + $0x668] sm:$0xff] }
  0xfa   : > { %2938 = vmatpush.bf16.msrb.mxu0 %v6616_v60  ;;  %v1398_v7 = vpop.f32.mrf.mxu2  ;;  %v1374_v14 = vpop.f32.mrf.mxu0  ;;  %v6673_v60 = vld [vmem:[#allocation4 + $0x6f8] sm:$0xff] }
  0xfb   : > { %2951 = vmatpush.bf16.msrb.mxu1 %v6624_v41  ;;  %v3037_v62 = vshll.u32 %v3023_v55, 16  ;;  %v1411_v8 = vpop.f32.mrf.mxu3  ;;  %v1399_v9 = vadd.f32 %v1398_v7, %v1386_v23  ;;  %v1387_v15 = vpop.f32.mrf.mxu1  ;;  %v6648_v41 = vld [vmem:[#allocation4 + $0x630] sm:$0xff]  ;;  %v6642_v14 = vld [vmem:[#allocation4 + $0x600] sm:$0xff] }
  0xfc   : > { %2964 = vmatpush.bf16.msrb.mxu2 %v6632_v44  ;;  %v6672_v44 = vld [vmem:[#allocation4 + $0x6f0] sm:$0xff]  ;;  %v6650_v15 = vld [vmem:[#allocation4 + $0x640] sm:$0xff] }
  0xfd   : > { %2977 = vmatpush.bf16.msrb.mxu3 %v6640_v45  ;;  %v3039_v2 = vsel %vm7089_vm5, %v3032_v56, %v3037_v62  ;;  %v1412_v11 = vadd.f32 %v1411_v8, %v1399_v9  ;;  %v6645_v56 = vld [vmem:[#allocation4 + $0x618] sm:$0xff]  ;;  %v6644_v23 = vld [vmem:[#allocation4 + $0x610] sm:$0xff]  ;;  %v6643_v8 = vld [vmem:[#allocation4 + $0x608] sm:$0xff] }
  0xfe   : > { %2939 = vmatpush.bf16.msrb.mxu0 %v6615_v47  ;;  %3109 = vst [vmem:[#allocation1 + $0x1] ss:$9 sm:$0xff] %v3039_v2  ;;  %v6663_v47 = vld [vmem:[#allocation4 + $0x6a8] sm:$0xff]  ;;  %v6652_v2 = vld [vmem:[#allocation4 + $0x650] sm:$0xff] }
  0xff   : > { %2952 = vmatpush.bf16.msrb.mxu1 %v6623_v40  ;;  %v7206_v19 = vadd.f32 %v1412_v11, %v7182_v18  ;;  %v6618_v18 = vld [vmem:[#allocation4 + $0x540] sm:$0xff]  ;;  %v6671_v40 = vld [vmem:[#allocation4 + $0x6e8] sm:$0xff] }
 0x100   : > { %2965 = vmatpush.bf16.msrb.mxu2 %v6631_v54  ;;  %v6670_v54 = vld [vmem:[#allocation4 + $0x6e0] sm:$0xff]  ;;  %v6651_v9 = vld [vmem:[#allocation4 + $0x648] sm:$0xff] }
 0x101   : > { %2978 = vmatpush.bf16.msrb.mxu3 %v6639_v30  ;;  %v6667_v11 = vld [vmem:[#allocation4 + $0x6c8] sm:$0xff] }
 0x102   : > { %2940 = vmatpush.bf16.msrb.mxu0 %v6614_v57  ;;  %v1400_v33 = vpop.f32.mrf.mxu2  ;;  %v6653_v57 = vld [vmem:[#allocation4 + $0x658] sm:$0xff] }
 0x103   : > { %2953 = vmatpush.bf16.msrb.mxu1 %v6622_v58  ;;  %v1413_v34 = vpop.f32.mrf.mxu3  ;;  %v6661_v58 = vld [vmem:[#allocation4 + $0x698] sm:$0xff]  ;;  %v6688_v33 = vld [vmem:[#allocation4 + $0x770] sm:$0xff] }
 0x104   : > { %2966 = vmatpush.bf16.msrb.mxu2 %v6630_v63  ;;  %v6696_v34 = vld [vmem:[#allocation4 + $0x7b0] sm:$0xff] }
 0x105   : > { %2979 = vmatpush.bf16.msrb.mxu3 %v6638_v1  ;;  %v7208_v20 = vld [vmem:[#allocation1 + $0x9] sm:$0xff]  ;;  %v7210_v21 = vld [vmem:[#allocation1 + $0x12] sm:$0xff]  ;;  %v7216_v45 = vld [vmem:[#allocation1] sm:$0xff] }
 0x106   : > { %2941 = vmatpush.bf16.msrb.mxu0 %v6613_v3  ;;  %3370 = vst [vmem:[#allocation1 + $0x10] sm:$0xff] %v3364_v10  ;;  %v3113_v26 = vld [vmem:[#allocation1 + $0x1b] sm:$0xff] }
 0x107   : > { %2954 = vmatpush.bf16.msrb.mxu1 %v6621_v4  ;;  %3366 = vst [vmem:[#allocation1] sm:$0xff] %v3363_v52  ;;  %v6659_v10 = vld [vmem:[#allocation4 + $0x688] sm:$0xff]  ;;  %v6701_v52 = vld [vmem:[#allocation4 + $0x7d8] sm:$0xff] }
 0x108   : > { %2967 = vmatpush.bf16.msrb.mxu2 %v6629_v5  ;;  %v6660_v5 = vld [vmem:[#allocation4 + $0x690] sm:$0xff] }
 0x109   : > { %2980 = vmatpush.bf16.msrb.mxu3 %v6637_v6  ;;  %v6668_v6 = vld [vmem:[#allocation4 + $0x6d0] sm:$0xff] }
 0x10a   : > { %2942 = vmatpush.bf16.msrb.mxu0 %v6612_v12 }
 0x10b   : > { %2955 = vmatpush.bf16.msrb.mxu1 %v6620_v13 }
 0x10c   : > { %2968 = vmatpush.bf16.msrb.mxu2 %v6628_v16  ;;  %v6658_v16 = vld [vmem:[#allocation4 + $0x680] sm:$0xff] }
 0x10d   : > { %2981 = vmatpush.bf16.msrb.mxu3 %v6636_v17  ;;  %v3372_v43 = vld [vmem:[#allocation1 + $0x11] ss:$2 sm:$0xff] }
 0x10e   : > { %2943 = vmatpush.bf16.msrb.mxu0 %v6611_v27  ;;  %v3368_v55 = vld [vmem:[#allocation1 + $0x1] ss:$2 sm:$0xff]  ;;  %v6666_v17 = vld [vmem:[#allocation4 + $0x6c0] sm:$0xff] }
 0x10f   : > { %2956 = vmatpush.bf16.msrb.mxu1 %v6619_v29  ;;  %3438 = vst [vmem:[#allocation1] ss:$9 sm:$0xff] %v3368_v55  ;;  %v6689_v27 = vld [vmem:[#allocation4 + $0x778] sm:$0xff]  ;;  %v6691_v55 = vld [vmem:[#allocation4 + $0x788] sm:$0xff] }
 0x110   : > { %2969 = vmatpush.bf16.msrb.mxu2 %v6627_v31  ;;  %3440 = vst [vmem:[#allocation1 + $0x1] ss:$9 sm:$0xff] %v3372_v43  ;;  %v6697_v29 = vld [vmem:[#allocation4 + $0x7b8] sm:$0xff]  ;;  %v6692_v43 = vld [vmem:[#allocation4 + $0x790] sm:$0xff] }
 0x111   : > { %2982 = vmatpush.bf16.msrb.mxu3 %v6635_v32  ;;  %v6705_v31 = vld [vmem:[#allocation4 + $0x7f8] sm:$0xff]  ;;  %v6680_v32 = vld [vmem:[#allocation4 + $0x730] sm:$0xff] }
 0x112   : > { %2944 = vmatpush.bf16.msrb.mxu0 %v6610_v35  ;;  %v1717_v48 = vpop.f32.mrf.mxu0  ;;  %v6704_v35 = vld [vmem:[#allocation4 + $0x7f0] sm:$0xff] }
 0x113   : > { %2957 = vmatpush.bf16.msrb.mxu1 %v6618_v18  ;;  %v6679_v18 = vld [vmem:[#allocation4 + $0x728] sm:$0xff] }
 0x114   : > { %2970 = vmatpush.bf16.msrb.mxu2 %v6626_v24  ;;  %v6687_v24 = vld [vmem:[#allocation4 + $0x768] sm:$0xff] }
 0x115   : > { %2983 = vmatpush.bf16.msrb.mxu3 %v6634_v25  ;;  %2945 = vmatmul.bf16.vlgmr.msrb.gmra.mxu0 %v7192_v50  ;;  %v1730_v50 = vpop.f32.mrf.mxu1  ;;  %v6695_v25 = vld [vmem:[#allocation4 + $0x7a8] sm:$0xff] }
 0x116   : > { %3310 = vmatpush.bf16.msra.mxu0 %v6649_v36  ;;  %2958 = vmatmul.bf16.vlgmr.msrb.gmra.mxu1 %v7194_v51  ;;  %v6662_v51 = vld [vmem:[#allocation4 + $0x6a0] sm:$0xff]  ;;  %v1731_v30 = vadd.f32 %v1730_v50, %v1717_v48  ;;  %v6703_v36 = vld [vmem:[#allocation4 + $0x7e8] sm:$0xff] }
 0x117   : > { %3323 = vmatpush.bf16.msra.mxu1 %v6657_v37  ;;  %2971 = vmatmul.bf16.vlgmr.msrb.gmra.mxu2 %v7186_v46  ;;  %v6646_v46 = vld [vmem:[#allocation4 + $0x620] sm:$0xff] }
 0x118   : > { %3336 = vmatpush.bf16.msra.mxu2 %v6665_v38  ;;  %2984 = vmatmul.bf16.vlgmr.msrb.gmra.mxu3 %v7190_v49  ;;  %v6654_v49 = vld [vmem:[#allocation4 + $0x660] sm:$0xff] }
 0x119   : > { %3349 = vmatpush.bf16.msra.mxu3 %v6673_v60  ;;  %v6678_v37 = vld [vmem:[#allocation4 + $0x720] sm:$0xff] }
 0x11a   : > { %3311 = vmatpush.bf16.msra.mxu0 %v6648_v41  ;;  %v1743_v61 = vpop.f32.mrf.mxu2  ;;  %v1719_v3 = vpop.f32.mrf.mxu0  ;;  %v6686_v38 = vld [vmem:[#allocation4 + $0x760] sm:$0xff] }
 0x11b   : > { %3324 = vmatpush.bf16.msra.mxu1 %v6656_v22  ;;  %v1756_v62 = vpop.f32.mrf.mxu3  ;;  %v1744_v63 = vadd.f32 %v1743_v61, %v1731_v30  ;;  %v6702_v22 = vld [vmem:[#allocation4 + $0x7e0] sm:$0xff]  ;;  %v6675_v30 = vld [vmem:[#allocation4 + $0x708] sm:$0xff] }
 0x11c   : > { %3337 = vmatpush.bf16.msra.mxu2 %v6664_v42  ;;  %v6682_v61 = vld [vmem:[#allocation4 + $0x740] sm:$0xff]  ;;  %v3444_v3 = vld [vmem:[#allocation1 + $0x1b] sm:$0xff] }
 0x11d   : > { %3350 = vmatpush.bf16.msra.mxu3 %v6672_v44  ;;  %v1757_v1 = vadd.f32 %v1756_v62, %v1744_v63  ;;  %v1732_v4 = vpop.f32.mrf.mxu1  ;;  %v6685_v44 = vld [vmem:[#allocation4 + $0x758] sm:$0xff]  ;;  %v6690_v62 = vld [vmem:[#allocation4 + $0x780] sm:$0xff] }
 0x11e   : > { %3312 = vmatpush.bf16.msra.mxu0 %v6647_v53  ;;  %v6698_v63 = vld [vmem:[#allocation4 + $0x7c0] sm:$0xff] }
 0x11f   : > { %3325 = vmatpush.bf16.msra.mxu1 %v6655_v39  ;;  %v7219_v7 = vadd.f32 %v1757_v1, %v7206_v19  ;;  %v6681_v19 = vld [vmem:[#allocation4 + $0x738] sm:$0xff]  ;;  %v3441_v1 = vld [vmem:[#allocation1] sm:$0xff] }
 0x120   : > { %3338 = vmatpush.bf16.msra.mxu2 %v6663_v47 }
 0x121   : > { %3351 = vmatpush.bf16.msra.mxu3 %v6671_v40 }
 0x122   : > { %3313 = vmatpush.bf16.msra.mxu0 %v6646_v46  ;;  %v1745_v12 = vpop.f32.mrf.mxu2  ;;  %v6676_v46 = vld [vmem:[#allocation4 + $0x710] sm:$0xff] }
 0x123   : > { %3326 = vmatpush.bf16.msra.mxu1 %v6654_v49  ;;  %v1758_v13 = vpop.f32.mrf.mxu3  ;;  %v6684_v49 = vld [vmem:[#allocation4 + $0x750] sm:$0xff] }
 0x124   : > { %3339 = vmatpush.bf16.msra.mxu2 %v6662_v51  ;;  %v6700_v51 = vld [vmem:[#allocation4 + $0x7d0] sm:$0xff] }
 0x125   : > { %3352 = vmatpush.bf16.msra.mxu3 %v6670_v54 }
 0x126   : > { %3314 = vmatpush.bf16.msra.mxu0 %v6645_v56  ;;  %v6699_v56 = vld [vmem:[#allocation4 + $0x7c8] sm:$0xff] }
 0x127   : > { %3327 = vmatpush.bf16.msra.mxu1 %v6653_v57 }
 0x128   : > { %3340 = vmatpush.bf16.msra.mxu2 %v6661_v58 }
 0x129   : > { %3353 = vmatpush.bf16.msra.mxu3 %v6669_v59  ;;  %v6674_v59 = vld [vmem:[#allocation4 + $0x700] sm:$0xff] }
 0x12a   : > { %3315 = vmatpush.bf16.msra.mxu0 %v6644_v23  ;;  %v3442_v23 = vld [vmem:[#allocation1 + $0x9] sm:$0xff] }
 0x12b   : > { %3328 = vmatpush.bf16.msra.mxu1 %v6652_v2  ;;  %v3443_v2 = vld [vmem:[#allocation1 + $0x12] sm:$0xff] }
 0x12c   : > { %3341 = vmatpush.bf16.msra.mxu2 %v6660_v5 }
 0x12d   : > { %3354 = vmatpush.bf16.msra.mxu3 %v6668_v6 }
 0x12e   : > { %3316 = vmatpush.bf16.msra.mxu0 %v6643_v8 }
 0x12f   : > { %3329 = vmatpush.bf16.msra.mxu1 %v6651_v9 }
 0x130   : > { %3342 = vmatpush.bf16.msra.mxu2 %v6659_v10 }
 0x131   : > { %3355 = vmatpush.bf16.msra.mxu3 %v6667_v11 }
 0x132   : > { %3317 = vmatpush.bf16.msra.mxu0 %v6642_v14  ;;  %v2217_v60 = vpop.f32.mrf.mxu0 }
 0x133   : > { %3330 = vmatpush.bf16.msra.mxu1 %v6650_v15  ;;  %v2230_v41 = vpop.f32.mrf.mxu1 }
 0x134   : > { %3343 = vmatpush.bf16.msra.mxu2 %v6658_v16  ;;  %v2231_v42 = vadd.f32 %v2230_v41, %v2217_v60 }
 0x135   : > { %3356 = vmatpush.bf16.msra.mxu3 %v6666_v17  ;;  %3318 = vmatmul.bf16.vlgmr.msra.gmra.mxu0 %v7216_v45  ;;  %v6693_v45 = vld [vmem:[#allocation4 + $0x798] sm:$0xff] }
 0x136   : > { %3641 = vmatpush.bf16.msrb.mxu0 %v6681_v19  ;;  %3331 = vmatmul.bf16.vlgmr.msra.gmra.mxu1 %v7208_v20  ;;  %v6677_v20 = vld [vmem:[#allocation4 + $0x718] sm:$0xff] }
 0x137   : > { %3654 = vmatpush.bf16.msrb.mxu1 %v6689_v27  ;;  %3344 = vmatmul.bf16.vlgmr.msra.gmra.mxu2 %v7210_v21  ;;  %v6694_v21 = vld [vmem:[#allocation4 + $0x7a0] sm:$0xff] }
 0x138   : > { %3667 = vmatpush.bf16.msrb.mxu2 %v6697_v29  ;;  %3357 = vmatmul.bf16.vlgmr.msra.gmra.mxu3 %v3113_v26  ;;  %v6683_v26 = vld [vmem:[#allocation4 + $0x748] sm:$0xff] }
 0x139   : > { %3680 = vmatpush.bf16.msrb.mxu3 %v6705_v31 }
 0x13a   : > { %3642 = vmatpush.bf16.msrb.mxu0 %v6680_v32  ;;  %v2243_v53 = vpop.f32.mrf.mxu2  ;;  %v2219_v48 = vpop.f32.mrf.mxu0 }
 0x13b   : > { %3655 = vmatpush.bf16.msrb.mxu1 %v6688_v33  ;;  %v2256_v39 = vpop.f32.mrf.mxu3  ;;  %v2244_v47 = vadd.f32 %v2243_v53, %v2231_v42  ;;  %v2232_v50 = vpop.f32.mrf.mxu1 }
 0x13c   : > { %3668 = vmatpush.bf16.msrb.mxu2 %v6696_v34 }
 0x13d   : > { %3681 = vmatpush.bf16.msrb.mxu3 %v6704_v35  ;;  %v2257_v40 = vadd.f32 %v2256_v39, %v2244_v47 }
 0x13e   : > { %3643 = vmatpush.bf16.msrb.mxu0 %v6679_v18 }
 0x13f   : > { %3656 = vmatpush.bf16.msrb.mxu1 %v6687_v24  ;;  %v2312_v54 = vadd.f32 %v2257_v40, %v7219_v7 }
 0x140   : > { %3669 = vmatpush.bf16.msrb.mxu2 %v6695_v25 }
 0x141   : > { %3682 = vmatpush.bf16.msrb.mxu3 %v6703_v36 }
 0x142   : > { %3644 = vmatpush.bf16.msrb.mxu0 %v6678_v37  ;;  %v2245_v57 = vpop.f32.mrf.mxu2 }
 0x143   : > { %3657 = vmatpush.bf16.msrb.mxu1 %v6686_v38  ;;  %v2258_v58 = vpop.f32.mrf.mxu3 }
 0x144   : > { %3670 = vmatpush.bf16.msrb.mxu2 %v6694_v21 }
 0x145   : > { %3683 = vmatpush.bf16.msrb.mxu3 %v6702_v22 }
 0x146   : > { %3645 = vmatpush.bf16.msrb.mxu0 %v6677_v20 }
 0x147   : > { %3658 = vmatpush.bf16.msrb.mxu1 %v6685_v44 }
 0x148   : > { %3671 = vmatpush.bf16.msrb.mxu2 %v6693_v45 }
 0x149   : > { %3684 = vmatpush.bf16.msrb.mxu3 %v6701_v52 }
 0x14a   : > { %3646 = vmatpush.bf16.msrb.mxu0 %v6676_v46  ;;  %v6721_v46 = vld [vmem:[#allocation8 + $0x78] sm:$0xff] }
 0x14b   : > { %3659 = vmatpush.bf16.msrb.mxu1 %v6684_v49 }
 0x14c   : > { %3672 = vmatpush.bf16.msrb.mxu2 %v6692_v43 }
 0x14d   : > { %3685 = vmatpush.bf16.msrb.mxu3 %v6700_v51  ;;  %v6720_v51 = vld [vmem:[#allocation8 + $0x70] sm:$0xff] }
 0x14e   : > { %3647 = vmatpush.bf16.msrb.mxu0 %v6675_v30 }
 0x14f   : > { %3660 = vmatpush.bf16.msrb.mxu1 %v6683_v26  ;;  %v3758_v26 = vld [vmem:[#allocation3] sm:$0x3] }
 0x150   : > { %3673 = vmatpush.bf16.msrb.mxu2 %v6691_v55  ;;  %v3763_v57 = vrot.slane %v3758_v26, 2  ;;  %v3764_v58 = vrot.slane %v3758_v26, 3 }
 0x151   : > { %3686 = vmatpush.bf16.msrb.mxu3 %v6699_v56  ;;  %v3762_v56 = vrot.slane %v3758_v26, 1 }
 0x152   : > { %3648 = vmatpush.bf16.msrb.mxu0 %v6674_v59  ;;  %v2269_v4 = vpop.f32.mrf.mxu0  ;;  %v6719_v59 = vld [vmem:[#allocation8 + $0x68] sm:$0xff] }
 0x153   : > { %3661 = vmatpush.bf16.msrb.mxu1 %v6682_v61  ;;  %v2282_v5 = vpop.f32.mrf.mxu1  ;;  %v6713_v61 = vld [vmem:[#allocation8 + $0x38] sm:$0xff] }
 0x154   : > { %3674 = vmatpush.bf16.msrb.mxu2 %v6690_v62  ;;  %v2283_v6 = vadd.f32 %v2282_v5, %v2269_v4  ;;  %v3775_v4 = vsel %vm7358_vm10, %v3758_v26, %v3762_v56 }
 0x155   : > { %3687 = vmatpush.bf16.msrb.mxu3 %v6698_v63  ;;  %3649 = vmatmul.bf16.vlgmr.msrb.gmra.mxu0 %v3441_v1 }
 0x156   : > { %3662 = vmatmul.bf16.vlgmr.msrb.gmra.mxu1 %v3442_v23  ;;  %3880 = vmatpush.bf16.msra.mxu0 %v6721_v46  ;;  %v6708_v46 = vld [vmem:[#allocation8 + $0x10] sm:$0xff] }
 0x157   : > { %3675 = vmatmul.bf16.vlgmr.msrb.gmra.mxu2 %v3443_v2  ;;  %v3770_v2 = vsel %vm7356_vm1, %v3758_v26, %v3762_v56  ;;  %3948 = vmatpush.bf16.msra.mxu1 %v6713_v61  ;;  %v6707_v26 = vld [vmem:[#allocation8 + $0x8] sm:$0xff]  ;;  %v6737_v56 = vld [vmem:[#allocation8 + $0xf8] sm:$0xff]  ;;  %v6736_v61 = vld [vmem:[#allocation8 + $0xf0] sm:$0xff] }
 0x158   : > { %3688 = vmatmul.bf16.vlgmr.msrb.gmra.mxu3 %v3444_v3  ;;  %v3773_v3 = vsel %vm7357_vm3, %v3763_v57, %v3764_v58 }
 0x159   : > { %4129 = vmatpush.bf16.msra.mxu3 %v6737_v56  ;;  %v6748_v56 = vld [vmem:[#allocation8 + $0x150] sm:$0xff] }
 0x15a   : > { %v2295_v7 = vpop.f32.mrf.mxu2  ;;  %v2271_v11 = vpop.f32.mrf.mxu0  ;;  %3881 = vmatpush.bf16.msra.mxu0 %v6720_v51  ;;  %v3737_v51 = vld [vmem:[#allocation3 + $0x4] sm:$0x3] }
 0x15b   : > { %v2308_v8 = vpop.f32.mrf.mxu3  ;;  %v2296_v9 = vadd.f32 %v2295_v7, %v2283_v6  ;;  %v2284_v12 = vpop.f32.mrf.mxu1  ;;  %v3774_v7 = vsel %vm7359_vm9, %v3770_v2, %v3773_v3  ;;  %v6725_v2 = vld [vmem:[#allocation8 + $0x98] sm:$0xff]  ;;  %vm7373_vm9 = vmmov %vm7361_vm0 }
 0x15c   : > { %v6822_v12 = vld [vmem:[%s7297_s2] ss:$0 sm:$0xff] }
 0x15d   : > { %v7225_v10 = vadd.f32 %v2308_v8, %v2296_v9  ;;  %v3776_v8 = vsel %vm7360_vm11, %v3763_v57, %v3764_v58  ;;  %v6706_v58 = vld [vmem:[#allocation8] sm:$0xff]  ;;  %4130 = vmatpush.bf16.msra.mxu3 %v6736_v61 }
 0x15e   : > { %3882 = vmatpush.bf16.msra.mxu0 %v6719_v59  ;;  %v6726_v59 = vld [vmem:[#allocation8 + $0xa0] sm:$0xff] }
 0x162   : > { %v2297_v13 = vpop.f32.mrf.mxu2 }
 0x163   : > { %v2310_v14 = vpop.f32.mrf.mxu3  ;;  %v3777_v13 = vsel %vm7361_vm0, %v3775_v4, %v3776_v8 }
 0x164   : > { %v6718_v14 = vld [vmem:[#allocation8 + $0x60] sm:$0xff] }
 0x165   : > { %3883 = vmatpush.bf16.msra.mxu0 %v6718_v14 }
 0x172   : > { %v2600_v15 = vpop.f32.mrf.mxu0 }
 0x173   : > { %v2613_v16 = vpop.f32.mrf.mxu1 }
 0x174   : > { %v2614_v17 = vadd.f32 %v2613_v16, %v2600_v15  ;;  %v6712_v15 = vld [vmem:[#allocation8 + $0x30] sm:$0xff]  ;;  %v3779_v16 = vrot.slane %v3777_v13, 1 }
 0x175   : > { %3949 = vmatpush.bf16.msra.mxu1 %v6712_v15  ;;  %v6734_v15 = vld [vmem:[#allocation8 + $0xe0] sm:$0xff] }
 0x17a   : > { %v2626_v19 = vpop.f32.mrf.mxu2  ;;  %v2602_v32 = vpop.f32.mrf.mxu0 }
 0x17b   : > { %v2639_v27 = vpop.f32.mrf.mxu3  ;;  %v2627_v29 = vadd.f32 %v2626_v19, %v2614_v17  ;;  %v2615_v33 = vpop.f32.mrf.mxu1  ;;  %v3792_v17 = vshrl.u32 %v3774_v7, 16  ;;  %v6711_v32 = vld [vmem:[#allocation8 + $0x28] sm:$0xff] }
 0x17c   : > { %3950 = vmatpush.bf16.msra.mxu1 %v6711_v32  ;;  %v3740_v32 = vld [vmem:[#allocation3] sm:$0x1] }
 0x17d   : > { %v2640_v31 = vadd.f32 %v2639_v27, %v2627_v29  ;;  %v3797_v27 = vshll.u32 %v3779_v16, 16  ;;  %v6744_v16 = vld [vmem:[#allocation8 + $0x130] sm:$0xff] }
 0x17f   : > { %v2643_v34 = vadd.f32 %v2640_v31, %v2312_v54  ;;  %v6717_v31 = vld [vmem:[#allocation8 + $0x58] sm:$0xff]  ;;  %v3799_v33 = vsel %vm7089_vm5, %v3792_v17, %v3797_v27 }
 0x180   : > { %3826 = vst [vmem:[#allocation1] ss:$9 sm:$0xff] %v3799_v33  ;;  %3884 = vmatpush.bf16.msra.mxu0 %v6717_v31  ;;  %v6733_v27 = vld [vmem:[#allocation8 + $0xd8] sm:$0xff]  ;;  %v6722_v31 = vld [vmem:[#allocation8 + $0x80] sm:$0xff]  ;;  %v6732_v33 = vld [vmem:[#allocation8 + $0xd0] sm:$0xff] }
 0x182   : > { %v2628_v35 = vpop.f32.mrf.mxu2 }
 0x183   : > { %v2641_v18 = vpop.f32.mrf.mxu3 }
 0x192   : > { %v2946_v24 = vpop.f32.mrf.mxu0 }
 0x193   : > { %v2959_v25 = vpop.f32.mrf.mxu1 }
 0x194   : > { %v2960_v47 = vadd.f32 %v2959_v25, %v2946_v24 }
 0x19a   : > { %v2972_v36 = vpop.f32.mrf.mxu2  ;;  %v2948_v38 = vpop.f32.mrf.mxu0 }
 0x19b   : > { %v2985_v37 = vpop.f32.mrf.mxu3  ;;  %v2961_v60 = vpop.f32.mrf.mxu1  ;;  %v2973_v49 = vadd.f32 %v2972_v36, %v2960_v47  ;;  %v6716_v36 = vld [vmem:[#allocation8 + $0x50] sm:$0xff]  ;;  %v3734_v47 = vld [vmem:[#allocation3 + $0x2] sm:$0x3] }
 0x19c   : > { %3885 = vmatpush.bf16.msra.mxu0 %v6716_v36  ;;  %v6731_v36 = vld [vmem:[#allocation8 + $0xc8] sm:$0xff] }
 0x19d   : > { %v2986_v54 = vadd.f32 %v2985_v37, %v2973_v49  ;;  %v6710_v37 = vld [vmem:[#allocation8 + $0x20] sm:$0xff]  ;;  %v6728_v49 = vld [vmem:[#allocation8 + $0xb0] sm:$0xff] }
 0x19e   : > { %3951 = vmatpush.bf16.msra.mxu1 %v6710_v37  ;;  %v6741_v37 = vld [vmem:[#allocation8 + $0x118] sm:$0xff] }
 0x19f   : > { %v2989_v62 = vadd.f32 %v2986_v54, %v2643_v34 }
 0x1a2   : > { %v2974_v41 = vpop.f32.mrf.mxu2 }
 0x1a3   : > { %v2987_v21 = vpop.f32.mrf.mxu3 }
 0x1b2   : > { %v3319_v22 = vpop.f32.mrf.mxu0 }
 0x1b3   : > { %v3332_v42 = vpop.f32.mrf.mxu1 }
 0x1b4   : > { %v3333_v40 = vadd.f32 %v3332_v42, %v3319_v22  ;;  %v6715_v22 = vld [vmem:[#allocation8 + $0x48] sm:$0xff]  ;;  %v6709_v42 = vld [vmem:[#allocation8 + $0x18] sm:$0xff] }
 0x1b5   : > { %3886 = vmatpush.bf16.msra.mxu0 %v6715_v22  ;;  %3952 = vmatpush.bf16.msra.mxu1 %v6709_v42  ;;  %v6751_v22 = vld [vmem:[#allocation8 + $0x168] sm:$0xff]  ;;  %v6761_v42 = vld [vmem:[#allocation8 + $0x1b8] sm:$0xff] }
 0x1b9   : > { %3953 = vmatpush.bf16.msra.mxu1 %v6708_v46  ;;  %v6749_v46 = vld [vmem:[#allocation8 + $0x158] sm:$0xff] }
 0x1ba   : > { %v3345_v20 = vpop.f32.mrf.mxu2  ;;  %v3321_v45 = vpop.f32.mrf.mxu0 }
 0x1bb   : > { %v3358_v44 = vpop.f32.mrf.mxu3  ;;  %v3334_v52 = vpop.f32.mrf.mxu1  ;;  %v3346_v43 = vadd.f32 %v3345_v20, %v3333_v40  ;;  %v6729_v20 = vld [vmem:[#allocation8 + $0xb8] sm:$0xff]  ;;  %v6714_v40 = vld [vmem:[#allocation8 + $0x40] sm:$0xff] }
 0x1bc   : > { %4041 = vmatpush.bf16.msra.mxu2 %v6729_v20  ;;  %3887 = vmatpush.bf16.msra.mxu0 %v6714_v40 }
 0x1bd   : > { %v3359_v55 = vadd.f32 %v3358_v44, %v3346_v43  ;;  %3954 = vmatpush.bf16.msra.mxu1 %v6707_v26 }
 0x1bf   : > { %v3362_v9 = vadd.f32 %v3359_v55, %v2989_v62  ;;  %v6727_v55 = vld [vmem:[#allocation8 + $0xa8] sm:$0xff] }
 0x1c0   : > { %4042 = vmatpush.bf16.msra.mxu2 %v6728_v49  ;;  %v6759_v49 = vld [vmem:[#allocation8 + $0x1a8] sm:$0xff] }
 0x1c1   : > { %3955 = vmatpush.bf16.msra.mxu1 %v6706_v58  ;;  %v6768_v58 = vld [vmem:[#allocation8 + $0x1f0] sm:$0xff] }
 0x1c2   : > { %v3347_v53 = vpop.f32.mrf.mxu2 }
 0x1c3   : > { %v3360_v39 = vpop.f32.mrf.mxu3 }
 0x1c4   : > { %4043 = vmatpush.bf16.msra.mxu2 %v6727_v55 }
 0x1c8   : > { %4044 = vmatpush.bf16.msra.mxu2 %v6726_v59 }
 0x1cc   : > { %4045 = vmatpush.bf16.msra.mxu2 %v6725_v2  ;;  %v6757_v2 = vld [vmem:[#allocation8 + $0x198] sm:$0xff] }
 0x1d2   : > { %v3650_v48 = vpop.f32.mrf.mxu0 }
 0x1d3   : > { %v3663_v50 = vpop.f32.mrf.mxu1 }
 0x1d4   : > { %v3664_v30 = vadd.f32 %v3663_v50, %v3650_v48 }
 0x1da   : > { %v3676_v63 = vpop.f32.mrf.mxu2  ;;  %v3652_v5 = vpop.f32.mrf.mxu0 }
 0x1db   : > { %v3689_v1 = vpop.f32.mrf.mxu3  ;;  %v3677_v23 = vadd.f32 %v3676_v63, %v3664_v30  ;;  %v3665_v6 = vpop.f32.mrf.mxu1 }
 0x1dd   : > { %v3690_v11 = vadd.f32 %v3689_v1, %v3677_v23 }
 0x1df   : > { %v3693_v19 = vadd.f32 %v3690_v11, %v3362_v9  ;;  %v6735_v9 = vld [vmem:[#allocation8 + $0xe8] sm:$0xff]  ;;  %v6745_v11 = vld [vmem:[#allocation8 + $0x138] sm:$0xff] }
 0x1e0   : > { %4131 = vmatpush.bf16.msra.mxu3 %v6735_v9  ;;  %4265 = vmatpush.bf16.msrb.mxu0 %v6745_v11 }
 0x1e1   : > { %v3698_v29 = vadd.f32 %v6822_v12, %v3693_v19  ;;  %v6724_v12 = vld [vmem:[#allocation8 + $0x90] sm:$0xff]  ;;  %v6723_v19 = vld [vmem:[#allocation8 + $0x88] sm:$0xff] }
 0x1e2   : > { %v3678_v34 = vpop.f32.mrf.mxu2  ;;  %4046 = vmatpush.bf16.msra.mxu2 %v6724_v12 }
 0x1e3   : > { %v3691_v35 = vpop.f32.mrf.mxu3  ;;  %v3699_v18 = vmax.f32 %v3698_v29, 0.0  ;;  %v6743_v29 = vld [vmem:[#allocation8 + $0x128] sm:$0xff]  ;;  %v6742_v34 = vld [vmem:[#allocation8 + $0x120] sm:$0xff] }
 0x1e4   : > { %4132 = vmatpush.bf16.msra.mxu3 %v6734_v15  ;;  %4266 = vmatpush.bf16.msrb.mxu0 %v6744_v16  ;;  %v6756_v15 = vld [vmem:[#allocation8 + $0x190] sm:$0xff]  ;;  %v6766_v16 = vld [vmem:[#allocation8 + $0x1e0] sm:$0xff] }
 0x1e5   : > { %v3705_v24 = vrot.slane %v3699_v18, 2  ;;  %v3707_v25 = vpack.c.bf16 %v3699_v18, %v3699_v18 }
 0x1e6   : > { %4047 = vmatpush.bf16.msra.mxu2 %v6723_v19 }
 0x1e7   : > { %v3708_v38 = vpack.c.bf16 %v3705_v24, %v3705_v24  ;;  %v3711_v60 = vrot.slane %v3707_v25, 2  ;;  %v6753_v24 = vld [vmem:[#allocation8 + $0x178] sm:$0xff] }
 0x1e8   : > { %4133 = vmatpush.bf16.msra.mxu3 %v6733_v27  ;;  %4267 = vmatpush.bf16.msrb.mxu0 %v6743_v29 }
 0x1e9   : > { %v3712_v41 = vrot.slane %v3708_v38, 2  ;;  %v3715_v21 = vsel %vm7362_vm12, %v3707_v25, %v3711_v60  ;;  %4359 = vmatpush.bf16.msrb.mxu1 %v6753_v24  ;;  %v6730_v60 = vld [vmem:[#allocation8 + $0xc0] sm:$0xff]  ;;  %vm7376_vm12 = vmmov %vm7364_vm8 }
 0x1ea   : > { %v3719_v44 = vshrl.u32 %v3715_v21, 16  ;;  %v3722_v53 = vshll.u32 %v3715_v21, 16  ;;  %4048 = vmatpush.bf16.msra.mxu2 %v6722_v31  ;;  %v6740_v21 = vld [vmem:[#allocation8 + $0x110] sm:$0xff]  ;;  %v6755_v31 = vld [vmem:[#allocation8 + $0x188] sm:$0xff] }
 0x1eb   : > { %v3718_v45 = vsel %vm7349_vm6, %v3708_v38, %v3712_v41  ;;  %v6752_v38 = vld [vmem:[#allocation8 + $0x170] sm:$0xff]  ;;  %v3961_v41 = vld [vmem:[#allocation3] sm:$0x2] }
 0x1ec   : > { %v3721_v52 = vrot.slane %v3719_v44, 7  ;;  %v3725_v39 = vshrl.u32 %v3718_v45, 16  ;;  %v3728_v43 = vshll.u32 %v3718_v45, 16  ;;  %4134 = vmatpush.bf16.msra.mxu3 %v6732_v33  ;;  %4268 = vmatpush.bf16.msrb.mxu0 %v6742_v34  ;;  %v6739_v44 = vld [vmem:[#allocation8 + $0x108] sm:$0xff]  ;;  %v6750_v45 = vld [vmem:[#allocation8 + $0x160] sm:$0xff]  ;;  %v6777_v33 = vld [vmem:[#allocation8 + $0x238] sm:$0xff] }
 0x1ed   : > { %4360 = vmatpush.bf16.msrb.mxu1 %v6752_v38  ;;  %v6776_v38 = vld [vmem:[#allocation8 + $0x230] sm:$0xff] }
 0x1ee   : > { %v3724_v48 = vor.u32 %v3722_v53, %v3721_v52  ;;  %v3727_v50 = vrot.slane %v3725_v39, 7  ;;  %4448 = vmatpush.bf16.msrb.mxu2 %v6761_v42  ;;  %v6760_v52 = vld [vmem:[#allocation8 + $0x1b0] sm:$0xff] }
 0x1f0   : > { %v3730_v54 = vor.u32 %v3728_v43, %v3727_v50  ;;  %v3735_v30 = vsel %vm7039_vm7, %v3724_v48, %v3734_v47  ;;  %4135 = vmatpush.bf16.msra.mxu3 %v6731_v36  ;;  %4269 = vmatpush.bf16.msrb.mxu0 %v6741_v37  ;;  %v6738_v47 = vld [vmem:[#allocation8 + $0x100] sm:$0xff]  ;;  %v6769_v48 = vld [vmem:[#allocation8 + $0x1f8] sm:$0xff]  ;;  %v6764_v37 = vld [vmem:[#allocation8 + $0x1d0] sm:$0xff] }
 0x1f1   : > { %3736 = vst [vmem:[#allocation3 + $0x2] sm:$0x3] %v3735_v30  ;;  %4361 = vmatpush.bf16.msrb.mxu1 %v6751_v22  ;;  %v6754_v36 = vld [vmem:[#allocation8 + $0x180] sm:$0xff] }
 0x1f2   : > { %v3738_v57 = vsel %vm7039_vm7, %v3730_v54, %v3737_v51  ;;  %vm7365_vm7 = vmmov %vm7352_vm4  ;;  %4449 = vmatpush.bf16.msrb.mxu2 %v6760_v52  ;;  %v4463_v52 = vld [vmem:[#allocation3 + $0x6] sm:$0x3] }
 0x1f3   : > { %3739 = vst [vmem:[#allocation3 + $0x4] sm:$0x3] %v3738_v57  ;;  %vm7366_vm4 = vmmov %vm7360_vm11  ;;  %v6758_v57 = vld [vmem:[#allocation8 + $0x1a0] sm:$0xff] }
 0x1f4   : > { %4136 = vmatpush.bf16.msra.mxu3 %v6730_v60  ;;  %4270 = vmatpush.bf16.msrb.mxu0 %v6740_v21  ;;  %vm7369_vm15 = vmmov %vm7365_vm7  ;;  %v6775_v21 = vld [vmem:[#allocation8 + $0x228] sm:$0xff] }
 0x1f5   : > { %4362 = vmatpush.bf16.msrb.mxu1 %v6750_v45  ;;  %vm7370_vm1 = vmmov %vm7366_vm4 }
 0x1f6   : > { %4450 = vmatpush.bf16.msrb.mxu2 %v6759_v49  ;;  %vm7371_vm3 = vmmov %vm7365_vm7  ;;  %v4471_v49 = vrot.slane %v4463_v52, 3 }
 0x1f7   : > { %vm7372_vm10 = vmmov %vm7370_vm1 }
 0x1f8   : > { %v3759_v62 = vld [vmem:[#allocation3 + $0x2] sm:$0x3]  ;;  %4271 = vmatpush.bf16.msrb.mxu0 %v6739_v44  ;;  %4584 = vmatpush.bf16.msrb.mxu3 %v6769_v48  ;;  %vm7374_vm11 = vmmov %vm7361_vm0  ;;  %v6774_v44 = vld [vmem:[#allocation8 + $0x220] sm:$0xff] }
 0x1f9   : > { %v3765_v63 = vrot.slane %v3759_v62, 1  ;;  %v3766_v1 = vrot.slane %v3759_v62, 2  ;;  %v3767_v23 = vrot.slane %v3759_v62, 3  ;;  %v3741_v18 = vld [vmem:[#allocation3 + $0x2] sm:$0x1]  ;;  %4363 = vmatpush.bf16.msrb.mxu1 %v6749_v46  ;;  %vm7375_vm0 = vmmov %vm7363_vm2  ;;  %v4470_v46 = vrot.slane %v4463_v52, 2 }
 0x1fa   : > { %v3962_v25 = vld [vmem:[#allocation3 + $0x2] sm:$0x2]  ;;  %v4144_v39 = vld [vmem:[#allocation3 + $0x4] sm:$0x3]  ;;  %4451 = vmatpush.bf16.msrb.mxu2 %v6758_v57  ;;  %vm7377_vm6 = vmmov %vm7375_vm0 }
 0x1fb   : > { %v3782_v3 = vsel %vm7363_vm2, %v3759_v62, %v3765_v63  ;;  %v3785_v28 = vsel %vm7364_vm8, %v3766_v1, %v3767_v23  ;;  %v3787_v4 = vsel %vm7365_vm7, %v3759_v62, %v3765_v63  ;;  %v3788_v5 = vsel %vm7366_vm4, %v3766_v1, %v3767_v23  ;;  %v4143_v53 = vld [vmem:[#allocation3 + $0x2] sm:$0x3]  ;;  %v6747_v23 = vld [vmem:[#allocation8 + $0x148] sm:$0xff]  ;;  %vm7378_vm2 = vmmov %vm7364_vm8 }
 0x1fc   : > { %v3786_v6 = vsel %vm7367_vm13, %v3782_v3, %v3785_v28  ;;  %v3789_v7 = vsel %vm7368_vm14, %v3787_v4, %v3788_v5  ;;  %v4147_v40 = vrot.slane %v4143_v53, 1  ;;  %v4148_v51 = vrot.slane %v4143_v53, 2  ;;  %4272 = vmatpush.bf16.msrb.mxu0 %v6738_v47  ;;  %4585 = vmatpush.bf16.msrb.mxu3 %v6768_v58  ;;  %v6767_v3 = vld [vmem:[#allocation8 + $0x1e8] sm:$0xff]  ;;  %v4055_v5 = vld [vmem:[#allocation3 + $0x2] sm:$0x1]  ;;  %vm7379_vm8 = vmmov %vm7367_vm13 }
 0x1fd   : > { %v3791_v8 = vrot.slane %v3789_v7, 1  ;;  %v3800_v13 = vshrl.u32 %v3786_v6, 16  ;;  %v4149_v54 = vrot.slane %v4143_v53, 3  ;;  %v4150_v30 = vrot.slane %v4144_v39, 1  ;;  %4364 = vmatpush.bf16.msrb.mxu1 %v6748_v56  ;;  %v4056_v6 = vld [vmem:[#allocation3 + $0x4] sm:$0x1]  ;;  %vm7380_vm7 = vmmov %vm7379_vm8 }
 0x1fe   : > { %v4151_v26 = vrot.slane %v4144_v39, 2  ;;  %v4152_v55 = vrot.slane %v4144_v39, 3  ;;  %v4160_v59 = vsel %vm7369_vm15, %v4143_v53, %v4147_v40  ;;  %v4155_v7 = vsel %vm7375_vm0, %v4143_v53, %v4147_v40  ;;  %4452 = vmatpush.bf16.msrb.mxu2 %v6757_v2  ;;  %v4280_v60 = vld [vmem:[#allocation3 + $0x4] sm:$0x2]  ;;  %v4279_v22 = vld [vmem:[#allocation3 + $0x2] sm:$0x2]  ;;  %vm7381_vm4 = vmmov %vm7371_vm3 }
 0x1ff   : > { %v3805_v14 = vshll.u32 %v3791_v8, 16  ;;  %v4161_v61 = vsel %vm7370_vm1, %v4148_v51, %v4149_v54  ;;  %v4172_v62 = vsel %vm7371_vm3, %v4144_v39, %v4150_v30  ;;  %v4158_v8 = vsel %vm7376_vm12, %v4148_v51, %v4149_v54  ;;  %v4462_v45 = vld [vmem:[#allocation3 + $0x4] sm:$0x3]  ;;  %v6771_v54 = vld [vmem:[#allocation8 + $0x208] sm:$0xff]  ;;  %vm7382_vm13 = vmmov %vm7370_vm1 }
 0x200   : > { %v4173_v63 = vsel %vm7372_vm10, %v4151_v26, %v4152_v55  ;;  %v4162_v1 = vsel %vm7373_vm9, %v4160_v59, %v4161_v61  ;;  %4586 = vmatpush.bf16.msrb.mxu3 %v6767_v3  ;;  %v4167_v11 = vsel %vm7377_vm6, %v4144_v39, %v4150_v30  ;;  %v4170_v12 = vsel %vm7378_vm2, %v4151_v26, %v4152_v55  ;;  %v6773_v53 = vld [vmem:[#allocation8 + $0x218] sm:$0xff]  ;;  %v6772_v39 = vld [vmem:[#allocation8 + $0x210] sm:$0xff]  ;;  %vm7383_vm14 = vmmov %vm7371_vm3 }
 0x201   : > { %v3807_v17 = vsel %vm7089_vm5, %v3800_v13, %v3805_v14  ;;  %v4174_v28 = vsel %vm7374_vm11, %v4172_v62, %v4173_v63  ;;  %v4164_v9 = vrot.slane %v4162_v1, 1  ;;  %4365 = vmatpush.bf16.msrb.mxu1 %v6747_v23  ;;  %v6746_v14 = vld [vmem:[#allocation8 + $0x140] sm:$0xff]  ;;  %v4171_v19 = vsel %vm7380_vm7, %v4167_v11, %v4170_v12  ;;  %vm7384_vm15 = vmmov %vm7370_vm1  ;;  %v4375_v63 = vld [vmem:[#allocation3 + $0x6] sm:$0x1] }
 0x202   : > { %3829 = vst [vmem:[#allocation1 + $0x1] ss:$9 sm:$0xff] %v3807_v17  ;;  %v4176_v13 = vrot.slane %v4174_v28, 1  ;;  %v4159_v17 = vsel %vm7379_vm8, %v4155_v7, %v4158_v8  ;;  %4453 = vmatpush.bf16.msrb.mxu2 %v6756_v15  ;;  %v4466_v47 = vrot.slane %v4462_v45, 1  ;;  %v4469_v40 = vrot.slane %v4463_v52, 1  ;;  %vm7385_vm1 = vmmov %vm7373_vm9  ;;  %v6770_v58 = vld [vmem:[#allocation8 + $0x200] sm:$0xff] }
 0x203   : > { %v4182_v27 = vshll.u32 %v4164_v9, 16  ;;  %v4177_v34 = vshrl.u32 %v4159_v17, 16  ;;  %v4468_v51 = vrot.slane %v4462_v45, 3  ;;  %v4492_v26 = vsel %vm7382_vm13, %v4470_v46, %v4471_v49  ;;  %vm7386_vm3 = vmmov %vm7385_vm1  ;;  %v4374_v23 = vld [vmem:[#allocation3 + $0x4] sm:$0x1] }
 0x204   : > { %4587 = vmatpush.bf16.msrb.mxu3 %v6766_v16  ;;  %v4190_v29 = vshll.u32 %v4176_v13, 16  ;;  %v4491_v30 = vsel %vm7381_vm4, %v4463_v52, %v4469_v40  ;;  %v4479_v55 = vsel %vm7383_vm14, %v4462_v45, %v4466_v47  ;;  %vm7387_vm10 = vmmov %vm7375_vm0  ;;  %v4599_v15 = vld [vmem:[#allocation3 + $0x6] sm:$0x2]  ;;  %v4598_v16 = vld [vmem:[#allocation3 + $0x4] sm:$0x2] }
 0x205   : > { %4366 = vmatpush.bf16.msrb.mxu1 %v6746_v14  ;;  %v4184_v24 = vsel %vm7089_vm5, %v4177_v34, %v4182_v27  ;;  %v4493_v57 = vsel %vm7385_vm1, %v4491_v30, %v4492_v26  ;;  %v4486_v61 = vsel %vm7387_vm10, %v4463_v52, %v4469_v40  ;;  %vm7388_vm9 = vmmov %vm7378_vm2 }
 0x206   : > { %4454 = vmatpush.bf16.msrb.mxu2 %v6755_v31  ;;  %v4489_v62 = vsel %vm7388_vm9, %v4470_v46, %v4471_v49  ;;  %vm7389_vm11 = vmmov %vm7375_vm0  ;;  %v4495_v3 = vrot.slane %v4493_v57, 1  ;;  %v6823_v46 = vld [vmem:[%s7300_s5] ss:$0 sm:$0xff] }
 0x207   : > { %v4474_v2 = vsel %vm7389_vm11, %v4462_v45, %v4466_v47  ;;  %vm7390_vm0 = vmmov %vm7378_vm2 }
 0x208   : > { %vm7391_vm12 = vmmov %vm7380_vm7  ;;  %v4509_v8 = vshll.u32 %v4495_v3, 16 }
 0x209   : > { %v3830_v35 = vld [vmem:[#allocation1] sm:$0xff]  ;;  %vm7392_vm6 = vmmov %vm7380_vm7 }
 0x20a   : > { %3894 = vst [vmem:[#allocation1] ss:$9 sm:$0xff] %v3740_v32  ;;  %3888 = vmatmul.bf16.vlgmr.msra.gmra.mxu0 %v3830_v35  ;;  %v6765_v32 = vld [vmem:[#allocation8 + $0x1d8] sm:$0xff]  ;;  %v4185_v35 = vshrl.u32 %v4171_v19, 16  ;;  %4455 = vmatpush.bf16.msrb.mxu2 %v6754_v36 }
 0x20b   : > { %3897 = vst [vmem:[#allocation1 + $0x1] ss:$9 sm:$0xff] %v3741_v18  ;;  %4588 = vmatpush.bf16.msrb.mxu3 %v6765_v32  ;;  %4678 = vmatpush.bf16.msra.mxu0 %v6777_v33 }
 0x20c   : > { %3968 = vst [vmem:[#allocation1 + $0x10] sm:$0xff] %v3962_v25  ;;  %v4192_v25 = vsel %vm7089_vm5, %v4185_v35, %v4190_v29 }
 0x20f   : > { %4589 = vmatpush.bf16.msrb.mxu3 %v6764_v37  ;;  %4679 = vmatpush.bf16.msra.mxu0 %v6776_v38 }
 0x212   : > { %v3898_v20 = vld [vmem:[#allocation1] sm:$0xff] }
 0x213   : > { %3964 = vst [vmem:[#allocation1] sm:$0xff] %v3961_v41  ;;  %3956 = vmatmul.bf16.vlgmr.msra.gmra.mxu1 %v3898_v20  ;;  %v3970_v43 = vld [vmem:[#allocation1 + $0x11] ss:$2 sm:$0xff]  ;;  %4680 = vmatpush.bf16.msra.mxu0 %v6775_v21 }
 0x214   : > { %v6763_v41 = vld [vmem:[#allocation8 + $0x1c8] sm:$0xff]  ;;  %v6762_v20 = vld [vmem:[#allocation8 + $0x1c0] sm:$0xff] }
 0x215   : > { %4590 = vmatpush.bf16.msrb.mxu3 %v6763_v41 }
 0x217   : > { %4681 = vmatpush.bf16.msra.mxu0 %v6774_v44 }
 0x219   : > { %4591 = vmatpush.bf16.msrb.mxu3 %v6762_v20 }
 0x21a   : > { %v3966_v50 = vld [vmem:[#allocation1 + $0x1] ss:$2 sm:$0xff] }
 0x21b   : > { %3988 = vst [vmem:[#allocation1] ss:$9 sm:$0xff] %v3966_v50  ;;  %4682 = vmatpush.bf16.msra.mxu0 %v6773_v53 }
 0x21c   : > { %3990 = vst [vmem:[#allocation1 + $0x1] ss:$9 sm:$0xff] %v3970_v43  ;;  %v4467_v43 = vrot.slane %v4462_v45, 2 }
 0x21e   : > { %v4480_v56 = vsel %vm7384_vm15, %v4467_v43, %v4468_v51  ;;  %v4477_v28 = vsel %vm7390_vm0, %v4467_v43, %v4468_v51 }
 0x21f   : > { %4683 = vmatpush.bf16.msra.mxu0 %v6772_v39  ;;  %v4481_v59 = vsel %vm7386_vm3, %v4479_v55, %v4480_v56 }
 0x223   : > { %v3991_v4 = vld [vmem:[#allocation1] sm:$0xff]  ;;  %4684 = vmatpush.bf16.msra.mxu0 %v6771_v54 }
 0x224   : > { %4075 = vst [vmem:[#allocation1] ss:$9 sm:$0xff] %v4055_v5  ;;  %4049 = vmatmul.bf16.vlgmr.msra.gmra.mxu2 %v3991_v4  ;;  %v4483_v4 = vrot.slane %v4481_v59, 1  ;;  %v4490_v5 = vsel %vm7391_vm12, %v4486_v61, %v4489_v62 }
 0x225   : > { %4078 = vst [vmem:[#allocation1 + $0x1] ss:$9 sm:$0xff] %v4056_v6  ;;  %v4478_v6 = vsel %vm7392_vm6, %v4474_v2, %v4477_v28  ;;  %v4504_v7 = vshrl.u32 %v4490_v5, 16 }
 0x226   : > { %v4501_v9 = vshll.u32 %v4483_v4, 16  ;;  %v4496_v11 = vshrl.u32 %v4478_v6, 16 }
 0x227   : > { %4685 = vmatpush.bf16.msra.mxu0 %v6770_v58  ;;  %v4511_v12 = vsel %vm7089_vm5, %v4504_v7, %v4509_v8 }
 0x228   : > { %v4503_v14 = vsel %vm7089_vm5, %v4496_v11, %v4501_v9 }
 0x22c   : > { %v4079_v18 = vld [vmem:[#allocation1] sm:$0xff] }
 0x22d   : > { %4211 = vst [vmem:[#allocation1] ss:$9 sm:$0xff] %v4184_v24  ;;  %4137 = vmatmul.bf16.vlgmr.msra.gmra.mxu3 %v4079_v18 }
 0x22e   : > { %4214 = vst [vmem:[#allocation1 + $0x1] ss:$9 sm:$0xff] %v4192_v25 }
 0x22f   : > { %4286 = vst [vmem:[#allocation1 + $0x10] sm:$0xff] %v4280_v60 }
 0x235   : > { %v4215_v42 = vld [vmem:[#allocation1] sm:$0xff] }
 0x236   : > { %4282 = vst [vmem:[#allocation1] sm:$0xff] %v4279_v22  ;;  %4273 = vmatmul.bf16.vlgmr.msrb.gmra.mxu0 %v4215_v42  ;;  %v4288_v50 = vld [vmem:[#allocation1 + $0x11] ss:$2 sm:$0xff] }
 0x23d   : > { %v4284_v48 = vld [vmem:[#allocation1 + $0x1] ss:$2 sm:$0xff] }
 0x23e   : > { %4306 = vst [vmem:[#allocation1] ss:$9 sm:$0xff] %v4284_v48 }
 0x23f   : > { %4308 = vst [vmem:[#allocation1 + $0x1] ss:$9 sm:$0xff] %v4288_v50 }
 0x246   : > { %v4309_v1 = vld [vmem:[#allocation1] sm:$0xff] }
 0x247   : > { %4394 = vst [vmem:[#allocation1] ss:$9 sm:$0xff] %v4374_v23  ;;  %4367 = vmatmul.bf16.vlgmr.msrb.gmra.mxu1 %v4309_v1 }
 0x248   : > { %4397 = vst [vmem:[#allocation1 + $0x1] ss:$9 sm:$0xff] %v4375_v63 }
 0x24f   : > { %v4398_v13 = vld [vmem:[#allocation1] sm:$0xff] }
 0x250   : > { %4530 = vst [vmem:[#allocation1] ss:$9 sm:$0xff] %v4503_v14  ;;  %4456 = vmatmul.bf16.vlgmr.msrb.gmra.mxu2 %v4398_v13 }
 0x251   : > { %4533 = vst [vmem:[#allocation1 + $0x1] ss:$9 sm:$0xff] %v4511_v12 }
 0x252   : > { %4605 = vst [vmem:[#allocation1 + $0x10] sm:$0xff] %v4599_v15 }
 0x258   : > { %v4534_v17 = vld [vmem:[#allocation1] sm:$0xff] }
 0x259   : > { %4592 = vmatmul.bf16.vlgmr.msrb.gmra.mxu3 %v4534_v17  ;;  %4601 = vst [vmem:[#allocation1] sm:$0xff] %v4598_v16  ;;  %v4607_v19 = vld [vmem:[#allocation1 + $0x11] ss:$2 sm:$0xff] }
 0x260   : > { %v4603_v27 = vld [vmem:[#allocation1 + $0x1] ss:$2 sm:$0xff] }
 0x261   : > { %4625 = vst [vmem:[#allocation1] ss:$9 sm:$0xff] %v4603_v27 }
 0x262   : > { %4627 = vst [vmem:[#allocation1 + $0x1] ss:$9 sm:$0xff] %v4607_v19 }
 0x269   : > { %v4628_v29 = vld [vmem:[#allocation1] sm:$0xff] }
 0x26a   : > { %4686 = vmatmul.bf16.vlgmr.msra.gmra.mxu0 %v4628_v29 }
 0x287   : > { %v3889_v31 = vpop.f32.mrf.mxu0 }
 0x28f   : > { %v3891_v32 = vpop.f32.mrf.mxu0 }
 0x290   : > { %v3957_v33 = vpop.f32.mrf.mxu1 }
 0x291   : > { %v3958_v0 = vadd.f32 %v3957_v33, %v3889_v31 }
 0x298   : > { %v3959_v34 = vpop.f32.mrf.mxu1 }
 0x2a7   : > { %v4050_v35 = vpop.f32.mrf.mxu2 }
 0x2a8   : > { %v4054_v21 = vadd.f32 %v4050_v35, %v3958_v0 }
 0x2af   : > { %v4052_v18 = vpop.f32.mrf.mxu2 }
 0x2b0   : > { %v4138_v24 = vpop.f32.mrf.mxu3 }
 0x2b1   : > { %v4142_v42 = vadd.f32 %v4138_v24, %v4054_v21 }
 0x2b3   : > { %v4274_v25 = vpop.f32.mrf.mxu0 }
 0x2b4   : > { %v4278_v44 = vadd.f32 %v4274_v25, %v4142_v42 }
 0x2b8   : > { %v4140_v36 = vpop.f32.mrf.mxu3 }
 0x2bb   : > { %v4276_v37 = vpop.f32.mrf.mxu0 }
 0x2c4   : > { %v4368_v38 = vpop.f32.mrf.mxu1 }
 0x2c5   : > { %v4372_v45 = vadd.f32 %v4368_v38, %v4278_v44 }
 0x2cc   : > { %v4370_v60 = vpop.f32.mrf.mxu1 }
 0x2d3   : > { %v4457_v41 = vpop.f32.mrf.mxu2 }
 0x2d4   : > { %v4461_v52 = vadd.f32 %v4457_v41, %v4372_v45 }
 0x2db   : > { %v4459_v22 = vpop.f32.mrf.mxu2 }
 0x2dc   : > { %v4593_v20 = vpop.f32.mrf.mxu3 }
 0x2dd   : > { %v4597_v39 = vadd.f32 %v4593_v20, %v4461_v52 }
 0x2e4   : > { %v4595_v53 = vpop.f32.mrf.mxu3 }
 0x2e7   : > { %v4687_v47 = vpop.f32.mrf.mxu0 }
 0x2e8   : > { %v4691_v40 = vadd.f32 %v4687_v47, %v4597_v39 }
 0x2ea   : > { %v4692_v49 = vadd.f32 %v4691_v40, %v7225_v10 }
 0x2ec   : > { %v4697_v48 = vadd.f32 %v6823_v46, %v4692_v49 }
 0x2ee   : > { %v4699_v50 = vrot.slane %v4697_v48, 2  ;;  %4701 = vst [vmem:[%s298_s9] sm:$0x3] %v4697_v48 }
 0x2ef   : > { %v4689_v43 = vpop.f32.mrf.mxu0 }
 0x2f0   : > { %4702 = vst [vmem:[%s298_s9 + $0x2] sm:$0x3] %v4699_v50 }
 0x2f1 PF: > { %s18_s21 = sadd.s32 1, %s6929_s21  }
 0x2f2   : > { %p15_p7 = scmp.ge.s32.totalorder %s18_s21, 4  }
 0x2f4   :  { %17 = sbr.rel (!%p15_p7) target bundleno = 2 (0x2), region = 137 }
 0x2f9   :  { %4724 = vsyncpa [#allocation5], 1 }
 0x2fa   :  { %4726 = vsyncpa [#allocation5 + $0x1], 1 }
 0x2fb   :  { %4727 = vsyncpa [#allocation7], 1 }

</bundles_post_ra>
